<compile_context>
chip_gen: v7x
topology: tpu7x:2x2x1
jax: 0.10.0
libtpu: 0.0.40
codegen_flags: <defaults>
</compile_context>

<pallas_src>
import jax
import jax.numpy as jnp
from jax.experimental import pallas as pl
from jax.experimental.pallas import tpu as pltpu

IN_DIM = 784        # 28*28 (fixed by the module's .view(-1, 784))
HID_DIM = 400       # fc1 / fc3 hidden size
MSG_DIM = 32        # message (latent) dimension

IN_PAD = 896        # 7 * 128  (padded 784)
HID_PAD = 512       # 4 * 128  (padded 400)
MSG_PAD = 128       # lane-padded latent width
HEAD_PAD = 256      # fused head: [mu (0:128) | logvar (128:256)]


def _round_up(n, m):
    return ((n + m - 1) // m) * m


def _vae_kernel(n_valid_ref,
                x_ref, eps_ref,
                w1_ref, b1_ref, wh_ref, bh_ref,
                w3_ref, b3_ref, w4_ref, b4_ref,
                loss_ref, recon_ref, msg_ref):
    x = x_ref[...]                                    # (T, IN_PAD)  f32
    eps = eps_ref[...]                                # (T, MSG_PAD) f32 (cols>=32 are 0)
    tile_b = x.shape[0]

    # ---- Sender (encoder): bf16 matmuls, f32 accumulation ----
    h1 = jnp.dot(x.astype(jnp.bfloat16), w1_ref[...],
                 preferred_element_type=jnp.float32) + b1_ref[...]
    h1 = jnp.maximum(h1, 0.0)                         # (T, HID_PAD)

    heads = jnp.dot(h1.astype(jnp.bfloat16), wh_ref[...],
                    preferred_element_type=jnp.float32) + bh_ref[...]
    mu = heads[:, :MSG_PAD]                           # cols >= 32 are exactly 0
    logvar = heads[:, MSG_PAD:]                       # cols >= 32 are exactly 0

    # ---- Reparameterization (training mode; eps supplied from wrapper) ----
    std = jnp.exp(0.5 * logvar)                       # padded cols -> 1.0
    z = mu + eps * std                                # padded cols -> 0.0

    # ---- Receiver (decoder) ----
    h3 = jnp.dot(z.astype(jnp.bfloat16), w3_ref[...],
                 preferred_element_type=jnp.float32) + b3_ref[...]
    h3 = jnp.maximum(h3, 0.0)
    logits = jnp.dot(h3.astype(jnp.bfloat16), w4_ref[...],
                     preferred_element_type=jnp.float32) + b4_ref[...]

    # ---- sigmoid / log-sigmoid sharing one exp per element ----
    e = jnp.exp(-jnp.abs(logits))
    lp = jnp.log(1.0 + e)
    pos = logits >= 0.0
    inv = 1.0 / (1.0 + e)
    y = jnp.where(pos, inv, e * inv)                  # sigmoid(logits)
    log_y = jnp.where(pos, -lp, logits - lp)          # log(sigmoid(logits))
    log_1my = jnp.where(pos, -logits - lp, -lp)       # log(1 - sigmoid(logits))
    # PyTorch F.binary_cross_entropy clamps each log term at -100.
    log_y = jnp.maximum(log_y, -100.0)
    log_1my = jnp.maximum(log_1my, -100.0)

    # ---- losses (mask padded feature columns and padded batch rows) ----
    col_ids = jax.lax.broadcasted_iota(jnp.int32, (1, IN_PAD), 1)
    col_mask = (col_ids < IN_DIM).astype(jnp.float32)

    bce_terms = (x * log_y + (1.0 - x) * log_1my) * col_mask
    bce_row = -jnp.sum(bce_terms, axis=1, keepdims=True)            # (T, 1)
    # Padded latent cols: 1 + 0 - 0 - 1 = 0, contribute nothing.
    kld_row = -0.5 * jnp.sum(1.0 + logvar - mu * mu - std * std,
                             axis=1, keepdims=True)                 # (T, 1)

    row_ids = (pl.program_id(0) * tile_b
               + jax.lax.broadcasted_iota(jnp.int32, (tile_b, 1), 0))
    row_mask = (row_ids < n_valid_ref[0]).astype(jnp.float32)

    partial = jnp.sum((bce_row + kld_row) * row_mask)

    loss_ref[...] = jnp.broadcast_to(partial, loss_ref.shape)       # per-tile partial
    recon_ref[...] = y
    msg_ref[...] = z


def init_params(key):
    """Deterministic synthetic weights in natural (in, out) layout for x @ W."""
    ks = jax.random.split(key, 5)

    def lin(k, fan_in, fan_out):
        w = 0.05 * jax.random.normal(k, (fan_in, fan_out), jnp.float32)
        b = jnp.zeros((fan_out,), jnp.float32)
        return w, b

    w1, b1 = lin(ks[0], IN_DIM, HID_DIM)
    w21, b21 = lin(ks[1], HID_DIM, MSG_DIM)
    w22, b22 = lin(ks[2], HID_DIM, MSG_DIM)
    w3, b3 = lin(ks[3], MSG_DIM, HID_DIM)
    w4, b4 = lin(ks[4], HID_DIM, IN_DIM)
    return {"w1": w1, "b1": b1, "w21": w21, "b21": b21, "w22": w22, "b22": b22,
            "w3": w3, "b3": b3, "w4": w4, "b4": b4}


def pack_params(p):
    """Zero-pad to lane multiples, fuse the mu/logvar heads, cast weights to bf16."""
    def pad2(a, rows, cols):
        return jnp.zeros((rows, cols), a.dtype).at[:a.shape[0], :a.shape[1]].set(a)

    # Fused head: mu weights in cols [0:32], logvar weights in cols [128:160].
    wh = jnp.zeros((HID_PAD, HEAD_PAD), jnp.float32)
    wh = wh.at[:HID_DIM, :MSG_DIM].set(p["w21"])
    wh = wh.at[:HID_DIM, MSG_PAD:MSG_PAD + MSG_DIM].set(p["w22"])
    bh = jnp.zeros((1, HEAD_PAD), jnp.float32)
    bh = bh.at[0, :MSG_DIM].set(p["b21"])
    bh = bh.at[0, MSG_PAD:MSG_PAD + MSG_DIM].set(p["b22"])

    return {
        "w1": pad2(p["w1"], IN_PAD, HID_PAD).astype(jnp.bfloat16),
        "b1": pad2(p["b1"].reshape(1, -1), 1, HID_PAD),
        "wh": wh.astype(jnp.bfloat16),
        "bh": bh,
        "w3": pad2(p["w3"], MSG_PAD, HID_PAD).astype(jnp.bfloat16),
        "b3": pad2(p["b3"].reshape(1, -1), 1, HID_PAD),
        "w4": pad2(p["w4"], HID_PAD, IN_PAD).astype(jnp.bfloat16),
        "b4": pad2(p["b4"].reshape(1, -1), 1, IN_PAD),
    }


def vae_game_forward(x_img, eps, packed):
    """x_img: (B, 1, 28, 28) float32 in [0, 1]; eps: (B, MSG_DIM) standard normal."""
    B = x_img.shape[0]
    x = x_img.reshape(B, IN_DIM).astype(jnp.float32)  # torch .view(-1, 784)

    tile_b = min(256, _round_up(max(B, 1), 8))
    b_pad = _round_up(B, tile_b)
    num_tiles = b_pad // tile_b

    x_pad = jnp.zeros((b_pad, IN_PAD), jnp.float32).at[:B, :IN_DIM].set(x)
    eps_pad = jnp.zeros((b_pad, MSG_PAD), jnp.float32).at[:B, :MSG_DIM].set(eps)
    n_valid = jnp.array([B], jnp.int32)

    batch_tile = lambda i, nv: (i, 0)
    resident = lambda i, nv: (0, 0)

    grid_spec = pltpu.PrefetchScalarGridSpec(
        num_scalar_prefetch=1,
        grid=(num_tiles,),
        in_specs=[
            pl.BlockSpec((tile_b, IN_PAD), batch_tile),     # x
            pl.BlockSpec((tile_b, MSG_PAD), batch_tile),    # eps (lane-padded)
            pl.BlockSpec((IN_PAD, HID_PAD), resident),      # w1
            pl.BlockSpec((1, HID_PAD), resident),           # b1
            pl.BlockSpec((HID_PAD, HEAD_PAD), resident),    # wh (fused mu/logvar)
            pl.BlockSpec((1, HEAD_PAD), resident),          # bh
            pl.BlockSpec((MSG_PAD, HID_PAD), resident),     # w3
            pl.BlockSpec((1, HID_PAD), resident),           # b3
            pl.BlockSpec((HID_PAD, IN_PAD), resident),      # w4
            pl.BlockSpec((1, IN_PAD), resident),            # b4
        ],
        out_specs=(
            pl.BlockSpec((1, 8, 128), lambda i, nv: (i, 0, 0)),   # per-tile loss
            pl.BlockSpec((tile_b, IN_PAD), batch_tile),           # recon (padded)
            pl.BlockSpec((tile_b, MSG_PAD), batch_tile),          # message (padded)
        ),
    )

    loss_parts, recon_pad, msg_pad = pl.pallas_call(
        _vae_kernel,
        out_shape=(
            jax.ShapeDtypeStruct((num_tiles, 8, 128), jnp.float32),
            jax.ShapeDtypeStruct((b_pad, IN_PAD), jnp.float32),
            jax.ShapeDtypeStruct((b_pad, MSG_PAD), jnp.float32),
        ),
        grid_spec=grid_spec,
        compiler_params=pltpu.CompilerParams(
            dimension_semantics=("parallel",),
            vmem_limit_bytes=32 * 1024 * 1024,
        ),
    )(n_valid, x_pad, eps_pad,
      packed["w1"], packed["b1"], packed["wh"], packed["bh"],
      packed["w3"], packed["b3"], packed["w4"], packed["b4"])

    loss = jnp.sum(loss_parts[:, 0, 0])               # loss.mean() of a scalar
    recon = recon_pad[:B, :IN_DIM]
    msg = msg_pad[:B, :MSG_DIM]

    # Interaction log (glue, plain JAX). No detach needed outside autodiff.
    # TODO(synk): eval-mode branch (message = mu) not exposed; training path only
    # (the original `if self.train:` is always truthy anyway).
    log = {
        "sender_input": x,
        "receiver_output": recon,
        "message": msg,
        "message_length": jnp.ones((B,), jnp.float32),
    }
    return loss, log


if __name__ == "__main__":
    key = jax.random.PRNGKey(0)
    k_param, k_x, k_eps = jax.random.split(key, 3)

    B = 12  # exercises the padded-row mask (tile_b rounds up to 16)
    params = init_params(k_param)
    packed = pack_params(params)
    x_img = jax.random.uniform(k_x, (B, 1, 28, 28), jnp.float32)   # MNIST-like in [0,1]
    eps = jax.random.normal(k_eps, (B, MSG_DIM), jnp.float32)      # reparam noise

    loss, log = vae_game_forward(x_img, eps, packed)
    jax.block_until_ready((loss, log["receiver_output"], log["message"]))

    # ---- pure-JAX reference (same bf16 matmul casting points, f32 math) ----
    bf = lambda a: a.astype(jnp.bfloat16)
    x = x_img.reshape(B, IN_DIM)
    h1 = jnp.maximum(jnp.dot(bf(x), bf(params["w1"]),
                             preferred_element_type=jnp.float32) + params["b1"], 0.0)
    mu = jnp.dot(bf(h1), bf(params["w21"]),
                 preferred_element_type=jnp.float32) + params["b21"]
    logvar = jnp.dot(bf(h1), bf(params["w22"]),
                     preferred_element_type=jnp.float32) + params["b22"]
    z = mu + eps * jnp.exp(0.5 * logvar)
    h3 = jnp.maximum(jnp.dot(bf(z), bf(params["w3"]),
                             preferred_element_type=jnp.float32) + params["b3"], 0.0)
    logits = jnp.dot(bf(h3), bf(params["w4"]),
                     preferred_element_type=jnp.float32) + params["b4"]
    y = jax.nn.sigmoid(logits)
    bce = -jnp.sum(x * jnp.maximum(jnp.log(y), -100.0)
                   + (1.0 - x) * jnp.maximum(jnp.log(1.0 - y), -100.0))
    kld = -0.5 * jnp.sum(1.0 + logvar - mu * mu - jnp.exp(logvar))
    ref_loss = bce + kld

    assert jnp.allclose(loss, ref_loss, rtol=1e-3, atol=1.0), (loss, ref_loss)
    assert jnp.allclose(log["receiver_output"], y, rtol=1e-3, atol=1e-4)
    assert jnp.allclose(log["message"], z, rtol=1e-3, atol=1e-3)

    print("KERNEL_OK")
</pallas_src>

<mosaic_0001>
module attributes {stable_mosaic.version = 11 : i64} {
  func.func @_vae_kernel(%arg0: i32, %arg1: memref<1xi32, #tpu.memory_space<smem>>, %arg2: memref<16x896xf32, #tpu.memory_space<vmem>>, %arg3: memref<16x128xf32, #tpu.memory_space<vmem>>, %arg4: memref<896x512xbf16, #tpu.memory_space<vmem>>, %arg5: memref<1x512xf32, #tpu.memory_space<vmem>>, %arg6: memref<512x256xbf16, #tpu.memory_space<vmem>>, %arg7: memref<1x256xf32, #tpu.memory_space<vmem>>, %arg8: memref<128x512xbf16, #tpu.memory_space<vmem>>, %arg9: memref<1x512xf32, #tpu.memory_space<vmem>>, %arg10: memref<512x896xbf16, #tpu.memory_space<vmem>>, %arg11: memref<1x896xf32, #tpu.memory_space<vmem>>, %arg12: memref<1x8x128xf32, #tpu.memory_space<vmem>>, %arg13: memref<16x896xf32, #tpu.memory_space<vmem>>, %arg14: memref<16x128xf32, #tpu.memory_space<vmem>>) attributes {dimension_semantics = [#tpu.dimension_semantics<parallel>], iteration_bounds = array<i64: 1>, scalar_prefetch = 1 : i64, scratch_operands = 0 : i64, tpu.core_type = #tpu.core_type<tc>, window_params = [{transform_indices = @transform_0, window_bounds = array<i64: 16, 896>}, {transform_indices = @transform_1, window_bounds = array<i64: 16, 128>}, {pipeline_mode = #tpu.pipeline_mode<synchronous>, transform_indices = @transform_2, window_bounds = array<i64: 896, 512>}, {pipeline_mode = #tpu.pipeline_mode<synchronous>, transform_indices = @transform_3, window_bounds = array<i64: 1, 512>}, {pipeline_mode = #tpu.pipeline_mode<synchronous>, transform_indices = @transform_4, window_bounds = array<i64: 512, 256>}, {pipeline_mode = #tpu.pipeline_mode<synchronous>, transform_indices = @transform_5, window_bounds = array<i64: 1, 256>}, {pipeline_mode = #tpu.pipeline_mode<synchronous>, transform_indices = @transform_6, window_bounds = array<i64: 128, 512>}, {pipeline_mode = #tpu.pipeline_mode<synchronous>, transform_indices = @transform_7, window_bounds = array<i64: 1, 512>}, {pipeline_mode = #tpu.pipeline_mode<synchronous>, transform_indices = @transform_8, window_bounds = array<i64: 512, 896>}, {pipeline_mode = #tpu.pipeline_mode<synchronous>, transform_indices = @transform_9, window_bounds = array<i64: 1, 896>}, {transform_indices = @transform_10, window_bounds = array<i64: 1, 8, 128>}, {transform_indices = @transform_11, window_bounds = array<i64: 16, 896>}, {transform_indices = @transform_12, window_bounds = array<i64: 16, 128>}]} {
    %c0 = arith.constant 0 : index
    %c0_0 = arith.constant 0 : index
    %0 = vector.load %arg2[%c0, %c0_0] : memref<16x896xf32, #tpu.memory_space<vmem>>, vector<16x896xf32>
    %c0_1 = arith.constant 0 : index
    %c0_2 = arith.constant 0 : index
    %1 = vector.load %arg3[%c0_1, %c0_2] : memref<16x128xf32, #tpu.memory_space<vmem>>, vector<16x128xf32>
    %2 = arith.truncf %0 : vector<16x896xf32> to vector<16x896xbf16>
    %c0_3 = arith.constant 0 : index
    %c0_4 = arith.constant 0 : index
    %3 = vector.load %arg4[%c0_3, %c0_4] : memref<896x512xbf16, #tpu.memory_space<vmem>>, vector<896x512xbf16>
    %cst = arith.constant dense<0.000000e+00> : vector<16x512xf32>
    %4 = tpu.matmul %2, %3, %cst {dimension_numbers = #tpu.dot_dimension_numbers<[1], [0], [0], [1], [0, 0, 1, 1], [], []>} : vector<16x896xbf16>, vector<896x512xbf16>, vector<16x512xf32> -> vector<16x512xf32>
    %c0_5 = arith.constant 0 : index
    %c0_6 = arith.constant 0 : index
    %5 = vector.load %arg5[%c0_5, %c0_6] : memref<1x512xf32, #tpu.memory_space<vmem>>, vector<1x512xf32>
    %6 = vector.broadcast %5 : vector<1x512xf32> to vector<16x512xf32>
    %7 = arith.addf %4, %6 : vector<16x512xf32>
    %cst_7 = arith.constant 0.000000e+00 : f32
    %8 = vector.broadcast %cst_7 : f32 to vector<16x512xf32>
    %9 = arith.maximumf %7, %8 : vector<16x512xf32>
    %10 = arith.truncf %9 : vector<16x512xf32> to vector<16x512xbf16>
    %c0_8 = arith.constant 0 : index
    %c0_9 = arith.constant 0 : index
    %11 = vector.load %arg6[%c0_8, %c0_9] : memref<512x256xbf16, #tpu.memory_space<vmem>>, vector<512x256xbf16>
    %cst_10 = arith.constant dense<0.000000e+00> : vector<16x256xf32>
    %12 = tpu.matmul %10, %11, %cst_10 {dimension_numbers = #tpu.dot_dimension_numbers<[1], [0], [0], [1], [0, 0, 1, 1], [], []>} : vector<16x512xbf16>, vector<512x256xbf16>, vector<16x256xf32> -> vector<16x256xf32>
    %c0_11 = arith.constant 0 : index
    %c0_12 = arith.constant 0 : index
    %13 = vector.load %arg7[%c0_11, %c0_12] : memref<1x256xf32, #tpu.memory_space<vmem>>, vector<1x256xf32>
    %14 = vector.broadcast %13 : vector<1x256xf32> to vector<16x256xf32>
    %15 = arith.addf %12, %14 : vector<16x256xf32>
    %16 = vector.extract_strided_slice %15 {offsets = [0, 0], sizes = [16, 128], strides = [1, 1]} : vector<16x256xf32> to vector<16x128xf32>
    %17 = vector.extract_strided_slice %15 {offsets = [0, 128], sizes = [16, 128], strides = [1, 1]} : vector<16x256xf32> to vector<16x128xf32>
    %cst_13 = arith.constant 5.000000e-01 : f32
    %18 = vector.broadcast %cst_13 : f32 to vector<16x128xf32>
    %19 = arith.mulf %18, %17 : vector<16x128xf32>
    %20 = math.exp %19 : vector<16x128xf32>
    %21 = arith.mulf %1, %20 : vector<16x128xf32>
    %22 = arith.addf %16, %21 : vector<16x128xf32>
    %23 = arith.truncf %22 : vector<16x128xf32> to vector<16x128xbf16>
    %c0_14 = arith.constant 0 : index
    %c0_15 = arith.constant 0 : index
    %24 = vector.load %arg8[%c0_14, %c0_15] : memref<128x512xbf16, #tpu.memory_space<vmem>>, vector<128x512xbf16>
    %cst_16 = arith.constant dense<0.000000e+00> : vector<16x512xf32>
    %25 = tpu.matmul %23, %24, %cst_16 {dimension_numbers = #tpu.dot_dimension_numbers<[1], [0], [0], [1], [0, 0, 1, 1], [], []>} : vector<16x128xbf16>, vector<128x512xbf16>, vector<16x512xf32> -> vector<16x512xf32>
    %c0_17 = arith.constant 0 : index
    %c0_18 = arith.constant 0 : index
    %26 = vector.load %arg9[%c0_17, %c0_18] : memref<1x512xf32, #tpu.memory_space<vmem>>, vector<1x512xf32>
    %27 = vector.broadcast %26 : vector<1x512xf32> to vector<16x512xf32>
    %28 = arith.addf %25, %27 : vector<16x512xf32>
    %cst_19 = arith.constant 0.000000e+00 : f32
    %29 = vector.broadcast %cst_19 : f32 to vector<16x512xf32>
    %30 = arith.maximumf %28, %29 : vector<16x512xf32>
    %31 = arith.truncf %30 : vector<16x512xf32> to vector<16x512xbf16>
    %c0_20 = arith.constant 0 : index
    %c0_21 = arith.constant 0 : index
    %32 = vector.load %arg10[%c0_20, %c0_21] : memref<512x896xbf16, #tpu.memory_space<vmem>>, vector<512x896xbf16>
    %cst_22 = arith.constant dense<0.000000e+00> : vector<16x896xf32>
    %33 = tpu.matmul %31, %32, %cst_22 {dimension_numbers = #tpu.dot_dimension_numbers<[1], [0], [0], [1], [0, 0, 1, 1], [], []>} : vector<16x512xbf16>, vector<512x896xbf16>, vector<16x896xf32> -> vector<16x896xf32>
    %c0_23 = arith.constant 0 : index
    %c0_24 = arith.constant 0 : index
    %34 = vector.load %arg11[%c0_23, %c0_24] : memref<1x896xf32, #tpu.memory_space<vmem>>, vector<1x896xf32>
    %35 = vector.broadcast %34 : vector<1x896xf32> to vector<16x896xf32>
    %36 = arith.addf %33, %35 : vector<16x896xf32>
    %37 = math.absf %36 : vector<16x896xf32>
    %cst_25 = arith.constant 0.000000e+00 : f32
    %38 = vector.broadcast %cst_25 : f32 to vector<16x896xf32>
    %39 = arith.subf %38, %37 : vector<16x896xf32>
    %40 = math.exp %39 : vector<16x896xf32>
    %cst_26 = arith.constant 1.000000e+00 : f32
    %41 = vector.broadcast %cst_26 : f32 to vector<16x896xf32>
    %42 = arith.addf %41, %40 : vector<16x896xf32>
    %43 = math.log %42 : vector<16x896xf32>
    %cst_27 = arith.constant 0.000000e+00 : f32
    %44 = vector.broadcast %cst_27 : f32 to vector<16x896xf32>
    %45 = arith.cmpf oge, %36, %44 : vector<16x896xf32>
    %cst_28 = arith.constant 1.000000e+00 : f32
    %46 = vector.broadcast %cst_28 : f32 to vector<16x896xf32>
    %47 = arith.addf %46, %40 : vector<16x896xf32>
    %cst_29 = arith.constant 1.000000e+00 : f32
    %48 = vector.broadcast %cst_29 : f32 to vector<16x896xf32>
    %49 = arith.divf %48, %47 : vector<16x896xf32>
    %50 = arith.mulf %40, %49 : vector<16x896xf32>
    %51 = arith.select %45, %49, %50 : vector<16x896xi1>, vector<16x896xf32>
    %cst_30 = arith.constant 0.000000e+00 : f32
    %52 = vector.broadcast %cst_30 : f32 to vector<16x896xf32>
    %53 = arith.subf %52, %43 : vector<16x896xf32>
    %54 = arith.subf %36, %43 : vector<16x896xf32>
    %55 = arith.select %45, %53, %54 : vector<16x896xi1>, vector<16x896xf32>
    %cst_31 = arith.constant 0.000000e+00 : f32
    %56 = vector.broadcast %cst_31 : f32 to vector<16x896xf32>
    %57 = arith.subf %56, %36 : vector<16x896xf32>
    %58 = arith.subf %57, %43 : vector<16x896xf32>
    %cst_32 = arith.constant 0.000000e+00 : f32
    %59 = vector.broadcast %cst_32 : f32 to vector<16x896xf32>
    %60 = arith.subf %59, %43 : vector<16x896xf32>
    %61 = arith.select %45, %58, %60 : vector<16x896xi1>, vector<16x896xf32>
    %cst_33 = arith.constant -1.000000e+02 : f32
    %62 = vector.broadcast %cst_33 : f32 to vector<16x896xf32>
    %63 = arith.maximumf %55, %62 : vector<16x896xf32>
    %cst_34 = arith.constant -1.000000e+02 : f32
    %64 = vector.broadcast %cst_34 : f32 to vector<16x896xf32>
    %65 = arith.maximumf %61, %64 : vector<16x896xf32>
    %66 = tpu.iota {dimensions = array<i32: 1>} : vector<1x896xi32>
    %c784_i32 = arith.constant 784 : i32
    %67 = vector.broadcast %c784_i32 : i32 to vector<1x896xi32>
    %68 = arith.cmpi slt, %66, %67 : vector<1x896xi32>
    %69 = arith.extui %68 : vector<1x896xi1> to vector<1x896xi32>
    %70 = arith.sitofp %69 : vector<1x896xi32> to vector<1x896xf32>
    %71 = arith.mulf %0, %63 : vector<16x896xf32>
    %cst_35 = arith.constant 1.000000e+00 : f32
    %72 = vector.broadcast %cst_35 : f32 to vector<16x896xf32>
    %73 = arith.subf %72, %0 : vector<16x896xf32>
    %74 = arith.mulf %73, %65 : vector<16x896xf32>
    %75 = arith.addf %71, %74 : vector<16x896xf32>
    %76 = vector.broadcast %70 : vector<1x896xf32> to vector<16x896xf32>
    %77 = arith.mulf %75, %76 : vector<16x896xf32>
    %cst_36 = arith.constant dense<0.000000e+00> : vector<16xf32>
    %78 = vector.multi_reduction <add>, %77, %cst_36 [1] : vector<16x896xf32> to vector<16xf32>
    %79 = vector.shape_cast %78 : vector<16xf32> to vector<16x1xf32>
    %cst_37 = arith.constant 0.000000e+00 : f32
    %80 = vector.broadcast %cst_37 : f32 to vector<16x1xf32>
    %81 = arith.subf %80, %79 : vector<16x1xf32>
    %cst_38 = arith.constant 1.000000e+00 : f32
    %82 = vector.broadcast %cst_38 : f32 to vector<16x128xf32>
    %83 = arith.addf %82, %17 : vector<16x128xf32>
    %84 = arith.mulf %16, %16 : vector<16x128xf32>
    %85 = arith.subf %83, %84 : vector<16x128xf32>
    %86 = arith.mulf %20, %20 : vector<16x128xf32>
    %87 = arith.subf %85, %86 : vector<16x128xf32>
    %cst_39 = arith.constant dense<0.000000e+00> : vector<16xf32>
    %88 = vector.multi_reduction <add>, %87, %cst_39 [1] : vector<16x128xf32> to vector<16xf32>
    %89 = vector.shape_cast %88 : vector<16xf32> to vector<16x1xf32>
    %cst_40 = arith.constant -5.000000e-01 : f32
    %90 = vector.broadcast %cst_40 : f32 to vector<16x1xf32>
    %91 = arith.mulf %90, %89 : vector<16x1xf32>
    %c16_i32 = arith.constant 16 : i32
    %92 = arith.muli %arg0, %c16_i32 : i32
    %93 = tpu.iota {dimensions = array<i32: 0>} : vector<16x1xi32>
    %94 = vector.broadcast %92 : i32 to vector<16x1xi32>
    %95 = arith.addi %94, %93 : vector<16x1xi32>
    %c0_41 = arith.constant 0 : index
    %96 = memref.load %arg1[%c0_41] : memref<1xi32, #tpu.memory_space<smem>>
    %97 = vector.broadcast %96 : i32 to vector<16x1xi32>
    %98 = arith.cmpi slt, %95, %97 : vector<16x1xi32>
    %99 = arith.extui %98 : vector<16x1xi1> to vector<16x1xi32>
    %100 = arith.sitofp %99 : vector<16x1xi32> to vector<16x1xf32>
    %101 = arith.addf %81, %91 : vector<16x1xf32>
    %102 = arith.mulf %101, %100 : vector<16x1xf32>
    %103 = vector.shape_cast %102 : vector<16x1xf32> to vector<1x16x1xf32>
    %cst_42 = arith.constant dense<0.000000e+00> : vector<1xf32>
    %104 = vector.multi_reduction <add>, %103, %cst_42 [1, 2] : vector<1x16x1xf32> to vector<1xf32>
    %105 = vector.shape_cast %104 : vector<1xf32> to vector<1x1x1xf32>
    %106 = vector.extract %105[0, 0, 0] : f32 from vector<1x1x1xf32>
    %107 = vector.broadcast %106 : f32 to vector<1x8x128xf32>
    %c0_43 = arith.constant 0 : index
    %c0_44 = arith.constant 0 : index
    %c0_45 = arith.constant 0 : index
    %108 = vector.load %arg12[%c0_43, %c0_44, %c0_45] : memref<1x8x128xf32, #tpu.memory_space<vmem>>, vector<1x8x128xf32>
    tpu.vector_store %arg12[%c0_43, %c0_44, %c0_45], %107 {strides = array<i32>} : memref<1x8x128xf32, #tpu.memory_space<vmem>>, vector<1x8x128xf32>,
    %c0_46 = arith.constant 0 : index
    %c0_47 = arith.constant 0 : index
    %109 = vector.load %arg13[%c0_46, %c0_47] : memref<16x896xf32, #tpu.memory_space<vmem>>, vector<16x896xf32>
    tpu.vector_store %arg13[%c0_46, %c0_47], %51 {strides = array<i32>} : memref<16x896xf32, #tpu.memory_space<vmem>>, vector<16x896xf32>,
    %c0_48 = arith.constant 0 : index
    %c0_49 = arith.constant 0 : index
    %110 = vector.load %arg14[%c0_48, %c0_49] : memref<16x128xf32, #tpu.memory_space<vmem>>, vector<16x128xf32>
    tpu.vector_store %arg14[%c0_48, %c0_49], %22 {strides = array<i32>} : memref<16x128xf32, #tpu.memory_space<vmem>>, vector<16x128xf32>,
    return
  }
  func.func @transform_0(%arg0: i32, %arg1: memref<1xi32, #tpu.memory_space<smem>>) -> (i32, i32) {
    %c0_i32 = arith.constant 0 : i32
    %c0_i32_0 = arith.constant 0 : i32
    return %arg0, %c0_i32 : i32, i32
  }
  func.func @transform_1(%arg0: i32, %arg1: memref<1xi32, #tpu.memory_space<smem>>) -> (i32, i32) {
    %c0_i32 = arith.constant 0 : i32
    %c0_i32_0 = arith.constant 0 : i32
    return %arg0, %c0_i32 : i32, i32
  }
  func.func @transform_2(%arg0: i32, %arg1: memref<1xi32, #tpu.memory_space<smem>>) -> (i32, i32) {
    %c0_i32 = arith.constant 0 : i32
    %c0_i32_0 = arith.constant 0 : i32
    %c0_i32_1 = arith.constant 0 : i32
    return %c0_i32, %c0_i32_0 : i32, i32
  }
  func.func @transform_3(%arg0: i32, %arg1: memref<1xi32, #tpu.memory_space<smem>>) -> (i32, i32) {
    %c0_i32 = arith.constant 0 : i32
    %c0_i32_0 = arith.constant 0 : i32
    %c0_i32_1 = arith.constant 0 : i32
    return %c0_i32, %c0_i32_0 : i32, i32
  }
  func.func @transform_4(%arg0: i32, %arg1: memref<1xi32, #tpu.memory_space<smem>>) -> (i32, i32) {
    %c0_i32 = arith.constant 0 : i32
    %c0_i32_0 = arith.constant 0 : i32
    %c0_i32_1 = arith.constant 0 : i32
    return %c0_i32, %c0_i32_0 : i32, i32
  }
  func.func @transform_5(%arg0: i32, %arg1: memref<1xi32, #tpu.memory_space<smem>>) -> (i32, i32) {
    %c0_i32 = arith.constant 0 : i32
    %c0_i32_0 = arith.constant 0 : i32
    %c0_i32_1 = arith.constant 0 : i32
    return %c0_i32, %c0_i32_0 : i32, i32
  }
  func.func @transform_6(%arg0: i32, %arg1: memref<1xi32, #tpu.memory_space<smem>>) -> (i32, i32) {
    %c0_i32 = arith.constant 0 : i32
    %c0_i32_0 = arith.constant 0 : i32
    %c0_i32_1 = arith.constant 0 : i32
    return %c0_i32, %c0_i32_0 : i32, i32
  }
  func.func @transform_7(%arg0: i32, %arg1: memref<1xi32, #tpu.memory_space<smem>>) -> (i32, i32) {
    %c0_i32 = arith.constant 0 : i32
    %c0_i32_0 = arith.constant 0 : i32
    %c0_i32_1 = arith.constant 0 : i32
    return %c0_i32, %c0_i32_0 : i32, i32
  }
  func.func @transform_8(%arg0: i32, %arg1: memref<1xi32, #tpu.memory_space<smem>>) -> (i32, i32) {
    %c0_i32 = arith.constant 0 : i32
    %c0_i32_0 = arith.constant 0 : i32
    %c0_i32_1 = arith.constant 0 : i32
    return %c0_i32, %c0_i32_0 : i32, i32
  }
  func.func @transform_9(%arg0: i32, %arg1: memref<1xi32, #tpu.memory_space<smem>>) -> (i32, i32) {
    %c0_i32 = arith.constant 0 : i32
    %c0_i32_0 = arith.constant 0 : i32
    %c0_i32_1 = arith.constant 0 : i32
    return %c0_i32, %c0_i32_0 : i32, i32
  }
  func.func @transform_10(%arg0: i32, %arg1: memref<1xi32, #tpu.memory_space<smem>>) -> (i32, i32, i32) {
    %c0_i32 = arith.constant 0 : i32
    %c0_i32_0 = arith.constant 0 : i32
    %c0_i32_1 = arith.constant 0 : i32
    return %arg0, %c0_i32, %c0_i32_0 : i32, i32, i32
  }
  func.func @transform_11(%arg0: i32, %arg1: memref<1xi32, #tpu.memory_space<smem>>) -> (i32, i32) {
    %c0_i32 = arith.constant 0 : i32
    %c0_i32_0 = arith.constant 0 : i32
    return %arg0, %c0_i32 : i32, i32
  }
  func.func @transform_12(%arg0: i32, %arg1: memref<1xi32, #tpu.memory_space<smem>>) -> (i32, i32) {
    %c0_i32 = arith.constant 0 : i32
    %c0_i32_0 = arith.constant 0 : i32
    return %arg0, %c0_i32 : i32, i32
  }
}

</mosaic_0001>

<bundles_post_ra>
// kernel: tpu_custom_call.1
= control target key start
LH: loop header
LB: loop body
LE: loop exit
PB: predicated region body
PF: predicated region fallthrough
CT: control target
= control target key end

     0   :  { %20 = vsyncpa [#allocation5], 0  ;;  %s7348_s0 = inlined_call_operand.<no memory space> [shape: s32[1], index: 0, kind: input, shape index: {}]   ;;  %s7349_s1 = inlined_call_operand.hbm [shape: f32[16,896], index: 1, kind: input, shape index: {}]   ;;  %s7350_s2 = inlined_call_operand.hbm [shape: f32[16,128], index: 2, kind: input, shape index: {}]   ;;  %s7351_s3 = inlined_call_operand.hbm [shape: bf16[896,512], index: 3, kind: input, shape index: {}]   ;;  %s7352_s4 = inlined_call_operand.vmem [shape: f32[1,512], index: 4, kind: input, shape index: {}]   ;;  %s7353_s5 = inlined_call_operand.hbm [shape: bf16[512,256], index: 5, kind: input, shape index: {}]   ;;  %s7354_s6 = inlined_call_operand.vmem [shape: f32[1,256], index: 6, kind: input, shape index: {}]   ;;  %s7355_s7 = inlined_call_operand.hbm [shape: bf16[128,512], index: 7, kind: input, shape index: {}]   ;;  %s7356_s8 = inlined_call_operand.vmem [shape: f32[1,512], index: 8, kind: input, shape index: {}]   ;;  %s7357_s9 = inlined_call_operand.hbm [shape: bf16[512,896], index: 9, kind: input, shape index: {}]   ;;  %s7358_s10 = inlined_call_operand.vmem [shape: f32[1,896], index: 10, kind: input, shape index: {}]   ;;  %s7359_s11 = inlined_call_operand.hbm [shape: f32[1,8,128], index: 11, kind: output, shape index: {0}]   ;;  %s7360_s12 = inlined_call_operand.hbm [shape: f32[16,896], index: 12, kind: output, shape index: {1}]   ;;  %s7361_s13 = inlined_call_operand.hbm [shape: f32[16,128], index: 13, kind: output, shape index: {2}]  }
   0x1   :  { %21 = vsyncpa [#allocation8], 0 }
   0x2   :  { %22 = vsyncpa [#allocation11], 0 }
   0x3   :  { %23 = vsyncpa [#allocation14], 0 }
   0x4   :  { %24 = vsyncpa [#allocation6], 0 }
   0x5   :  { %25 = vsyncpa [#allocation17], 0  ;;  %s6760_s25 = smov [#allocation7]   ;;  %s6550_s29 = scalar_lea.hbm %s7350_s2, 256 }
   0x6   :  { %s43_s26 = sshll.u32 %s6760_s25, 4  ;;  %p6551_p0 = scmp.ne.s32.totalorder %s7350_s2, %s6550_s29  ;;  %s44_s26 = int_to_ptr.vmem [resolvable:$true] %s43_s26 }
   0x7   :  { %p6554_p1 = scmp.lt.u32.totalorder %s6550_s29, %s7350_s2 }
   0x9   :  { %p6556_p2 = pnand %p6554_p1, %p6551_p0 }
   0xb   :  { %6559 = shalt.err (!%p6556_p2)
}
   0xc   :  { %s6560_s17 = scalar_lea.vmem %s44_s26, 256  ;;  %p6565_p4 = scmp.lt.s32.totalorder %s44_s26, %s44_s26 }
   0xd   :  { %p6561_p3 = scmp.ne.s32.totalorder %s44_s26, %s6560_s17  ;;  %p6566_p5 = scmp.lt.s32.totalorder %s6560_s17, %s6560_s17 }
   0xf   :  { %p6567_p6 = por %p6566_p5, %p6565_p4 }
  0x11   :  { %p6568_p7 = pnand %p6567_p6, %p6561_p3 }
  0x13   :  { %6571 = shalt.err (!%p6568_p7)
}
  0x14   :  { %s6761_s18 = smov 128   ;;  %s6762_s19 = smov 8  }
  0x15   :  { %49 = dma.hbm_to_vmem [thread:$0]  %s7350_s2, 256, %s44_s26, [#allocation8], %s6761_s18, %s6761_s18, %s6762_s19  }
  0x16   :  { %s6763_s22 = smov [#allocation10]   ;;  %s6764_s24 = smov [#allocation4]  }
  0x17   :  { %s69_s23 = sshll.u32 %s6763_s22, 4  ;;  %s31_s25 = sshll.u32 %s6764_s24, 4  ;;  %s70_s23 = int_to_ptr.vmem [resolvable:$true] %s69_s23  ;;  %s32_s25 = int_to_ptr.vmem [resolvable:$true] %s31_s25 }
  0x18   :  { %s6572_s29 = scalar_lea.hbm %s7353_s5, 8192 }
  0x19   :  { %p6573_p8 = scmp.ne.s32.totalorder %s7353_s5, %s6572_s29  ;;  %p6576_p9 = scmp.lt.u32.totalorder %s6572_s29, %s7353_s5 }
  0x1b   :  { %p6578_p10 = pnand %p6576_p9, %p6573_p8 }
  0x1d   :  { %6581 = shalt.err (!%p6578_p10)
}
  0x1e   :  { %s6582_s2 = scalar_lea.vmem %s70_s23, 8192  ;;  %p6587_p12 = scmp.lt.s32.totalorder %s70_s23, %s70_s23 }
  0x1f   :  { %p6583_p11 = scmp.ne.s32.totalorder %s70_s23, %s6582_s2  ;;  %p6588_p13 = scmp.lt.s32.totalorder %s6582_s2, %s6582_s2 }
  0x21   :  { %p6589_p0 = por %p6588_p13, %p6587_p12 }
  0x23   :  { %p6590_p1 = pnand %p6589_p0, %p6583_p11 }
  0x25   :  { %6593 = shalt.err (!%p6590_p1)
}
  0x26   :  { %75 = dma.hbm_to_vmem [thread:$0]  %s7353_s5, 8192, %s70_s23, [#allocation11], %s6761_s18, %s6761_s18, %s6762_s19  }
  0x27   :  { %s6594_s22 = scalar_lea.hbm %s7349_s1, 1792 }
  0x28   :  { %p6595_p2 = scmp.ne.s32.totalorder %s7349_s1, %s6594_s22  ;;  %p6598_p3 = scmp.lt.u32.totalorder %s6594_s22, %s7349_s1 }
  0x2a   :  { %p6600_p4 = pnand %p6598_p3, %p6595_p2 }
  0x2c   :  { %6603 = shalt.err (!%p6600_p4)
}
  0x2d   :  { %s6604_s30 = scalar_lea.vmem %s32_s25, 1792  ;;  %p6609_p6 = scmp.lt.s32.totalorder %s32_s25, %s32_s25 }
  0x2e   :  { %p6605_p5 = scmp.ne.s32.totalorder %s32_s25, %s6604_s30  ;;  %p6610_p7 = scmp.lt.s32.totalorder %s6604_s30, %s6604_s30 }
  0x30   :  { %p6611_p8 = por %p6610_p7, %p6609_p6 }
  0x32   :  { %p6612_p9 = pnand %p6611_p8, %p6605_p5 }
  0x34   :  { %6615 = shalt.err (!%p6612_p9)
}
  0x35   :  { %s6765_s5 = smov 896   ;;  %s6766_s23 = smov 56  }
  0x36   :  { %37 = dma.hbm_to_vmem [thread:$0]  %s7349_s1, 1792, %s32_s25, [#allocation5], %s6765_s5, %s6765_s5, %s6766_s23  }
  0x37   :  { %s6767_s16 = smov [#allocation9]   ;;  %s6616_s20 = scalar_lea.hbm %s7351_s3, 28672 }
  0x38   :  { %s55_s2 = sshll.u32 %s6767_s16, 4  ;;  %p6617_p10 = scmp.ne.s32.totalorder %s7351_s3, %s6616_s20  ;;  %s56_s2 = int_to_ptr.vmem [resolvable:$true] %s55_s2 }
  0x39   :  { %p6620_p11 = scmp.lt.u32.totalorder %s6616_s20, %s7351_s3 }
  0x3b   :  { %p6622_p12 = pnand %p6620_p11, %p6617_p10 }
  0x3d   :  { %6625 = shalt.err (!%p6622_p12)
}
  0x3e   :  { %s6626_s28 = scalar_lea.vmem %s56_s2, 28672  ;;  %p6631_p0 = scmp.lt.s32.totalorder %s56_s2, %s56_s2 }
  0x3f   :  { %p6627_p13 = scmp.ne.s32.totalorder %s56_s2, %s6626_s28  ;;  %p6632_p1 = scmp.lt.s32.totalorder %s6626_s28, %s6626_s28 }
  0x41   :  { %p6633_p2 = por %p6632_p1, %p6631_p0 }
  0x43   :  { %p6634_p3 = pnand %p6633_p2, %p6627_p13 }
  0x45   :  { %6637 = shalt.err (!%p6634_p3)
}
  0x46   :  { %s6768_s1 = smov 256   ;;  %s6769_s25 = smov 16  }
  0x47   :  { %61 = dma.hbm_to_vmem [thread:$0]  %s7351_s3, 28672, %s56_s2, [#allocation8], %s6768_s1, %s6768_s1, %s6769_s25  }
  0x48   :  { %s6770_s14 = smov [#allocation12]   ;;  %s6771_s16 = smov [#allocation13]  }
  0x49   :  { %s83_s15 = sshll.u32 %s6770_s14, 4  ;;  %s97_s26 = sshll.u32 %s6771_s16, 4  ;;  %s84_s15 = int_to_ptr.vmem [resolvable:$true] %s83_s15  ;;  %s6906_s26 = int_to_ptr.vmem [resolvable:$true] %s97_s26 }
  0x4a   :  { %s6638_s21 = scalar_lea.hbm %s7355_s7, 4096 }
  0x4b   :  { %p6639_p4 = scmp.ne.s32.totalorder %s7355_s7, %s6638_s21  ;;  %p6642_p5 = scmp.lt.u32.totalorder %s6638_s21, %s7355_s7 }
  0x4d   :  { %p6644_p6 = pnand %p6642_p5, %p6639_p4 }
  0x4f   :  { %6647 = shalt.err (!%p6644_p6)
}
  0x50   :  { %s6648_s3 = scalar_lea.vmem %s84_s15, 4096  ;;  %p6653_p8 = scmp.lt.s32.totalorder %s84_s15, %s84_s15 }
  0x51   :  { %p6649_p7 = scmp.ne.s32.totalorder %s84_s15, %s6648_s3  ;;  %p6654_p9 = scmp.lt.s32.totalorder %s6648_s3, %s6648_s3 }
  0x53   :  { %p6655_p10 = por %p6654_p9, %p6653_p8 }
  0x55   :  { %p6656_p11 = pnand %p6655_p10, %p6649_p7 }
  0x57   :  { %6659 = shalt.err (!%p6656_p11)
}
  0x58   :  { %89 = dma.hbm_to_vmem [thread:$0]  %s7355_s7, 4096, %s84_s15, [#allocation11], %s6768_s1, %s6768_s1, %s6769_s25  }
  0x59   :  { %s6660_s16 = scalar_lea.hbm %s7357_s9, 28672 }
  0x5a   :  { %p6661_p12 = scmp.ne.s32.totalorder %s7357_s9, %s6660_s16  ;;  %p6664_p13 = scmp.lt.u32.totalorder %s6660_s16, %s7357_s9 }
  0x5c   :  { %p6666_p0 = pnand %p6664_p13, %p6661_p12 }
  0x5e   :  { %6669 = shalt.err (!%p6666_p0)
}
  0x5f   :  { %s6670_s24 = scalar_lea.vmem %s6906_s26, 28672  ;;  %p6675_p2 = scmp.lt.s32.totalorder %s6906_s26, %s6906_s26 }
  0x60   :  { %p6671_p1 = scmp.ne.s32.totalorder %s6906_s26, %s6670_s24  ;;  %p6676_p3 = scmp.lt.s32.totalorder %s6670_s24, %s6670_s24 }
  0x62   :  { %p6677_p4 = por %p6676_p3, %p6675_p2 }
  0x64   :  { %p6678_p5 = pnand %p6677_p4, %p6671_p1 }
  0x66   :  { %6681 = shalt.err (!%p6678_p5)
}
  0x67   :  { %s6772_s7 = smov 448   ;;  %s6773_s1 = smov 28  }
  0x68   :  { %103 = dma.hbm_to_vmem [thread:$0]  %s7357_s9, 28672, %s6906_s26, [#allocation14], %s6772_s7, %s6772_s7, %s6773_s1  }
  0x69   :  { %6748 = dma.done.wait [#allocation5], 1792  }
  0x6a   :  { %6749 = vsyncadd [#allocation5], 4294965504 }
  0x6b   :  { %6750 = dma.done.wait [#allocation8], 28928  }
  0x6c   :  { %6751 = vsyncadd [#allocation8], 4294938368 }
  0x6d   :  { %6752 = dma.done.wait [#allocation11], 12288  }
  0x6e   :  { %6753 = vsyncadd [#allocation11], 4294955008 }
  0x6f   :  { %6754 = dma.done.wait [#allocation14], 28672  }
  0x70   :  { %6755 = vsyncadd [#allocation14], 4294938624  ;;  %v5648_v0 = vld [vmem:[#allocation9 + $0x4] ss:$16 sps:$4 sm:$0xff]   ;;  %v5650_v1 = vld [vmem:[#allocation9 + $0xc] ss:$16 sps:$4 sm:$0xff]  }
  0x71   :  { %1514 = vmatprep.subr.bf16.mxu0 %v5648_v0  ;;  %v5652_v2 = vld [vmem:[#allocation9] ss:$16 sps:$4 sm:$0xff]   ;;  %v5653_v3 = vld [vmem:[#allocation9 + $0x8] ss:$16 sps:$4 sm:$0xff]   ;;  %1686 = vmatprep.subr.bf16.mxu1 %v5650_v1  ;;  %v5654_v4 = vld [vmem:[#allocation9 + $0x24] ss:$16 sps:$4 sm:$0xff]  }
  0x72   :  { %1515 = vmatpush1.bf16.msra.mxu0 %v5652_v2  ;;  %1687 = vmatpush1.bf16.msra.mxu1 %v5653_v3  ;;  %v5656_v5 = vld [vmem:[#allocation9 + $0x2c] ss:$16 sps:$4 sm:$0xff]   ;;  %v5658_v6 = vld [vmem:[#allocation9 + $0x20] ss:$16 sps:$4 sm:$0xff]   ;;  %v5659_v7 = vld [vmem:[#allocation9 + $0x28] ss:$16 sps:$4 sm:$0xff]  }
  0x73   :  { %1516 = vmatprep.subr.bf16.mxu0 %v5654_v4  ;;  %1688 = vmatprep.subr.bf16.mxu1 %v5656_v5  ;;  %v5660_v8 = vld [vmem:[#allocation9 + $0x44] ss:$16 sps:$4 sm:$0xff]   ;;  %v5662_v9 = vld [vmem:[#allocation9 + $0x4c] ss:$16 sps:$4 sm:$0xff]   ;;  %v5664_v10 = vld [vmem:[#allocation9 + $0x40] ss:$16 sps:$4 sm:$0xff]  }
  0x74   :  { %v5665_v11 = vld [vmem:[#allocation9 + $0x48] ss:$16 sps:$4 sm:$0xff]   ;;  %v5666_v12 = vld [vmem:[#allocation9 + $0x64] ss:$16 sps:$4 sm:$0xff]   ;;  %v5668_v13 = vld [vmem:[#allocation9 + $0x6c] ss:$16 sps:$4 sm:$0xff]  }
  0x75   :  { %v5670_v14 = vld [vmem:[#allocation9 + $0x60] ss:$16 sps:$4 sm:$0xff]   ;;  %v5671_v15 = vld [vmem:[#allocation9 + $0x68] ss:$16 sps:$4 sm:$0xff]   ;;  %v5672_v16 = vld [vmem:[#allocation9 + $0x84] ss:$16 sps:$4 sm:$0xff]  }
  0x76   :  { %1517 = vmatpush1.bf16.msra.mxu0 %v5658_v6  ;;  %1689 = vmatpush1.bf16.msra.mxu1 %v5659_v7  ;;  %v5674_v17 = vld [vmem:[#allocation9 + $0x8c] ss:$16 sps:$4 sm:$0xff]   ;;  %v5676_v18 = vld [vmem:[#allocation9 + $0x80] ss:$16 sps:$4 sm:$0xff]   ;;  %v5677_v19 = vld [vmem:[#allocation9 + $0x88] ss:$16 sps:$4 sm:$0xff]  }
  0x77   :  { %1518 = vmatprep.subr.bf16.mxu0 %v5660_v8  ;;  %1690 = vmatprep.subr.bf16.mxu1 %v5662_v9  ;;  %v5678_v20 = vld [vmem:[#allocation9 + $0xa4] ss:$16 sps:$4 sm:$0xff]   ;;  %v5680_v21 = vld [vmem:[#allocation9 + $0xac] ss:$16 sps:$4 sm:$0xff]   ;;  %v5682_v22 = vld [vmem:[#allocation9 + $0xa0] ss:$16 sps:$4 sm:$0xff]  }
  0x78   :  { %v5683_v23 = vld [vmem:[#allocation9 + $0xa8] ss:$16 sps:$4 sm:$0xff]   ;;  %v5684_v24 = vld [vmem:[#allocation9 + $0xc4] ss:$16 sps:$4 sm:$0xff]   ;;  %v5686_v25 = vld [vmem:[#allocation9 + $0xcc] ss:$16 sps:$4 sm:$0xff]  }
  0x79   :  { %v5688_v26 = vld [vmem:[#allocation9 + $0xc0] ss:$16 sps:$4 sm:$0xff]   ;;  %v5689_v27 = vld [vmem:[#allocation9 + $0xc8] ss:$16 sps:$4 sm:$0xff]   ;;  %v5690_v28 = vld [vmem:[#allocation9 + $0xe4] ss:$16 sps:$4 sm:$0xff]  }
  0x7a   :  { %1519 = vmatpush1.bf16.msra.mxu0 %v5664_v10  ;;  %1691 = vmatpush1.bf16.msra.mxu1 %v5665_v11  ;;  %v5692_v29 = vld [vmem:[#allocation9 + $0xec] ss:$16 sps:$4 sm:$0xff]   ;;  %v5694_v30 = vld [vmem:[#allocation9 + $0xe0] ss:$16 sps:$4 sm:$0xff]   ;;  %v5695_v31 = vld [vmem:[#allocation9 + $0xe8] ss:$16 sps:$4 sm:$0xff]  }
  0x7b   :  { %1520 = vmatprep.subr.bf16.mxu0 %v5666_v12  ;;  %1692 = vmatprep.subr.bf16.mxu1 %v5668_v13  ;;  %v5696_v32 = vld [vmem:[#allocation9 + $0x104] ss:$16 sps:$4 sm:$0xff]   ;;  %v5698_v33 = vld [vmem:[#allocation9 + $0x10c] ss:$16 sps:$4 sm:$0xff]   ;;  %v5700_v34 = vld [vmem:[#allocation9 + $0x100] ss:$16 sps:$4 sm:$0xff]  }
  0x7c   :  { %v5701_v35 = vld [vmem:[#allocation9 + $0x108] ss:$16 sps:$4 sm:$0xff]   ;;  %v5702_v36 = vld [vmem:[#allocation9 + $0x124] ss:$16 sps:$4 sm:$0xff]   ;;  %v5704_v37 = vld [vmem:[#allocation9 + $0x12c] ss:$16 sps:$4 sm:$0xff]  }
  0x7d   :  { %v5706_v38 = vld [vmem:[#allocation9 + $0x120] ss:$16 sps:$4 sm:$0xff]   ;;  %v5707_v39 = vld [vmem:[#allocation9 + $0x128] ss:$16 sps:$4 sm:$0xff]   ;;  %v5708_v40 = vld [vmem:[#allocation9 + $0x144] ss:$16 sps:$4 sm:$0xff]  }
  0x7e   :  { %1521 = vmatpush1.bf16.msra.mxu0 %v5670_v14  ;;  %1693 = vmatpush1.bf16.msra.mxu1 %v5671_v15  ;;  %v5710_v41 = vld [vmem:[#allocation9 + $0x14c] ss:$16 sps:$4 sm:$0xff]   ;;  %v5712_v42 = vld [vmem:[#allocation9 + $0x140] ss:$16 sps:$4 sm:$0xff]   ;;  %v5713_v43 = vld [vmem:[#allocation9 + $0x148] ss:$16 sps:$4 sm:$0xff]  }
  0x7f   :  { %1522 = vmatprep.subr.bf16.mxu0 %v5672_v16  ;;  %1694 = vmatprep.subr.bf16.mxu1 %v5674_v17  ;;  %v5714_v44 = vld [vmem:[#allocation9 + $0x164] ss:$16 sps:$4 sm:$0xff]   ;;  %v5716_v45 = vld [vmem:[#allocation9 + $0x16c] ss:$16 sps:$4 sm:$0xff]   ;;  %v5718_v48 = vld [vmem:[#allocation9 + $0x160] ss:$16 sps:$4 sm:$0xff]  }
  0x80   :  { %v126_v46 = vld [vmem:[#allocation4 + $0x8] sm:$0xff]  ;;  %v133_v47 = vld [vmem:[#allocation4 + $0x40] sm:$0xff]  ;;  %v132_v5 = vld [vmem:[#allocation4 + $0x38] sm:$0xff] }
  0x81   :  { %v5719_v49 = vld [vmem:[#allocation9 + $0x168] ss:$16 sps:$4 sm:$0xff]   ;;  %v142_v50 = vpack.c.bf16 %v133_v47, %v126_v46  ;;  %v5720_v51 = vld [vmem:[#allocation9 + $0x184] ss:$16 sps:$4 sm:$0xff]   ;;  %v5722_v52 = vld [vmem:[#allocation9 + $0x18c] ss:$16 sps:$4 sm:$0xff]  }
  0x82   :  { %1523 = vmatpush1.bf16.msra.mxu0 %v5676_v18  ;;  %1695 = vmatpush1.bf16.msra.mxu1 %v5677_v19  ;;  %v5724_v53 = vld [vmem:[#allocation9 + $0x180] ss:$16 sps:$4 sm:$0xff]   ;;  %v5725_v54 = vld [vmem:[#allocation9 + $0x188] ss:$16 sps:$4 sm:$0xff]   ;;  %v5726_v55 = vld [vmem:[#allocation9 + $0x1a4] ss:$16 sps:$4 sm:$0xff]  }
  0x83   :  { %1524 = vmatprep.subr.bf16.mxu0 %v5678_v20  ;;  %1696 = vmatprep.subr.bf16.mxu1 %v5680_v21  ;;  %v5728_v56 = vld [vmem:[#allocation9 + $0x1ac] ss:$16 sps:$4 sm:$0xff]   ;;  %v5730_v57 = vld [vmem:[#allocation9 + $0x1a0] ss:$16 sps:$4 sm:$0xff]   ;;  %v5731_v58 = vld [vmem:[#allocation9 + $0x1a8] ss:$16 sps:$4 sm:$0xff]  }
  0x84   :  { %1546 = vmatprep.mubr.bf16.mxu0 %v142_v50  ;;  %1718 = vmatprep.mubr.bf16.mxu1 %v142_v50  ;;  %v5732_v59 = vld [vmem:[#allocation9 + $0x1c4] ss:$16 sps:$4 sm:$0xff]   ;;  %v5734_v60 = vld [vmem:[#allocation9 + $0x1cc] ss:$16 sps:$4 sm:$0xff]   ;;  %v5736_v61 = vld [vmem:[#allocation9 + $0x1c0] ss:$16 sps:$4 sm:$0xff]  }
  0x85   :  { %v5737_v62 = vld [vmem:[#allocation9 + $0x1c8] ss:$16 sps:$4 sm:$0xff]   ;;  %v5738_v63 = vld [vmem:[#allocation9 + $0x1e4] ss:$16 sps:$4 sm:$0xff]   ;;  %v5740_v0 = vld [vmem:[#allocation9 + $0x1ec] ss:$16 sps:$4 sm:$0xff]  }
  0x86   :  { %1525 = vmatpush1.bf16.msra.mxu0 %v5682_v22  ;;  %1697 = vmatpush1.bf16.msra.mxu1 %v5683_v23  ;;  %v5742_v1 = vld [vmem:[#allocation9 + $0x1e0] ss:$16 sps:$4 sm:$0xff]   ;;  %v5743_v2 = vld [vmem:[#allocation9 + $0x1e8] ss:$16 sps:$4 sm:$0xff]   ;;  %v5746_v3 = vld [vmem:[#allocation9 + $0x204] ss:$16 sps:$4 sm:$0xff]  }
  0x87   :  { %1526 = vmatprep.subr.bf16.mxu0 %v5684_v24  ;;  %1698 = vmatprep.subr.bf16.mxu1 %v5686_v25  ;;  %v125_v4 = vld [vmem:[#allocation4] sm:$0xff]  ;;  %v5749_v6 = vld [vmem:[#allocation9 + $0x20c] ss:$16 sps:$4 sm:$0xff]   ;;  %v5747_v8 = vld [vmem:[#allocation9 + $0x208] ss:$16 sps:$4 sm:$0xff]  }
  0x88   :  { %v5744_v7 = vld [vmem:[#allocation9 + $0x200] ss:$16 sps:$4 sm:$0xff]   ;;  %v141_v9 = vpack.c.bf16 %v132_v5, %v125_v4  ;;  %v5752_v10 = vld [vmem:[#allocation9 + $0x224] ss:$16 sps:$4 sm:$0xff]   ;;  %v5755_v11 = vld [vmem:[#allocation9 + $0x22c] ss:$16 sps:$4 sm:$0xff]  }
  0x89   :  { %v5750_v12 = vld [vmem:[#allocation9 + $0x220] ss:$16 sps:$4 sm:$0xff]   ;;  %v5753_v13 = vld [vmem:[#allocation9 + $0x228] ss:$16 sps:$4 sm:$0xff]   ;;  %v5758_v14 = vld [vmem:[#allocation9 + $0x244] ss:$16 sps:$4 sm:$0xff]  }
  0x8a   :  { %1527 = vmatpush1.bf16.msra.mxu0 %v5688_v26  ;;  %1699 = vmatpush1.bf16.msra.mxu1 %v5689_v27  ;;  %v5761_v15 = vld [vmem:[#allocation9 + $0x24c] ss:$16 sps:$4 sm:$0xff]   ;;  %v5756_v16 = vld [vmem:[#allocation9 + $0x240] ss:$16 sps:$4 sm:$0xff]   ;;  %v5759_v17 = vld [vmem:[#allocation9 + $0x248] ss:$16 sps:$4 sm:$0xff]  }
  0x8b   :  { %1528 = vmatprep.subr.bf16.mxu0 %v5690_v28  ;;  %1700 = vmatprep.subr.bf16.mxu1 %v5692_v29  ;;  %v5764_v18 = vld [vmem:[#allocation9 + $0x264] ss:$16 sps:$4 sm:$0xff]   ;;  %v5767_v19 = vld [vmem:[#allocation9 + $0x26c] ss:$16 sps:$4 sm:$0xff]   ;;  %v5762_v20 = vld [vmem:[#allocation9 + $0x260] ss:$16 sps:$4 sm:$0xff]  }
  0x8c   :  { %v5765_v21 = vld [vmem:[#allocation9 + $0x268] ss:$16 sps:$4 sm:$0xff]   ;;  %v5770_v22 = vld [vmem:[#allocation9 + $0x284] ss:$16 sps:$4 sm:$0xff]   ;;  %v5773_v23 = vld [vmem:[#allocation9 + $0x28c] ss:$16 sps:$4 sm:$0xff]  }
  0x8d   :  { %v5768_v24 = vld [vmem:[#allocation9 + $0x280] ss:$16 sps:$4 sm:$0xff]   ;;  %v5771_v25 = vld [vmem:[#allocation9 + $0x288] ss:$16 sps:$4 sm:$0xff]   ;;  %v5776_v26 = vld [vmem:[#allocation9 + $0x2a4] ss:$16 sps:$4 sm:$0xff]  }
  0x8e   :  { %1529 = vmatpush1.bf16.msra.mxu0 %v5694_v30  ;;  %1701 = vmatpush1.bf16.msra.mxu1 %v5695_v31  ;;  %v5779_v27 = vld [vmem:[#allocation9 + $0x2ac] ss:$16 sps:$4 sm:$0xff]   ;;  %v5774_v28 = vld [vmem:[#allocation9 + $0x2a0] ss:$16 sps:$4 sm:$0xff]   ;;  %v5777_v29 = vld [vmem:[#allocation9 + $0x2a8] ss:$16 sps:$4 sm:$0xff]  }
  0x8f   :  { %1530 = vmatprep.subr.bf16.mxu0 %v5696_v32  ;;  %1702 = vmatprep.subr.bf16.mxu1 %v5698_v33  ;;  %v5782_v30 = vld [vmem:[#allocation9 + $0x2c4] ss:$16 sps:$4 sm:$0xff]   ;;  %v5785_v31 = vld [vmem:[#allocation9 + $0x2cc] ss:$16 sps:$4 sm:$0xff]   ;;  %v5798_v47 = vld [vmem:[#allocation9 + $0x320] ss:$16 sps:$4 sm:$0xff]  }
  0x90   :  { %v128_v32 = vld [vmem:[#allocation4 + $0x18] sm:$0xff]  ;;  %v135_v33 = vld [vmem:[#allocation4 + $0x50] sm:$0xff] }
  0x91   :  { %v5803_v46 = vld [vmem:[#allocation9 + $0x32c] ss:$16 sps:$4 sm:$0xff]   ;;  %v5831_v4 = vld [vmem:[#allocation9 + $0x3c8] ss:$16 sps:$4 sm:$0xff]   ;;  %v5836_v5 = vld [vmem:[#allocation9 + $0x3e4] ss:$16 sps:$4 sm:$0xff]  }
  0x92   :  { %1531 = vmatpush1.bf16.msra.mxu0 %v5700_v34  ;;  %1703 = vmatpush1.bf16.msra.mxu1 %v5701_v35  ;;  %v5780_v34 = vld [vmem:[#allocation9 + $0x2c0] ss:$16 sps:$4 sm:$0xff]   ;;  %v5783_v35 = vld [vmem:[#allocation9 + $0x2c8] ss:$16 sps:$4 sm:$0xff]   ;;  %v5809_v50 = vld [vmem:[#allocation9 + $0x34c] ss:$16 sps:$4 sm:$0xff]  }
  0x93   :  { %1532 = vmatprep.subr.bf16.mxu0 %v5702_v36  ;;  %1704 = vmatprep.subr.bf16.mxu1 %v5704_v37  ;;  %v144_v36 = vpack.c.bf16 %v135_v33, %v128_v32  ;;  %v5788_v37 = vld [vmem:[#allocation9 + $0x2e4] ss:$16 sps:$4 sm:$0xff]   ;;  %v5869_v32 = vld [vmem:[#allocation9 + $0x48c] ss:$16 sps:$4 sm:$0xff]   ;;  %v5864_v33 = vld [vmem:[#allocation9 + $0x480] ss:$16 sps:$4 sm:$0xff]  }
  0x96   :  { %1533 = vmatpush1.bf16.msra.mxu0 %v5706_v38  ;;  %1705 = vmatpush1.bf16.msra.mxu1 %v5707_v39  ;;  %v5791_v38 = vld [vmem:[#allocation9 + $0x2ec] ss:$16 sps:$4 sm:$0xff]   ;;  %v5786_v39 = vld [vmem:[#allocation9 + $0x2e0] ss:$16 sps:$4 sm:$0xff]  }
  0x97   :  { %1534 = vmatprep.subr.bf16.mxu0 %v5708_v40  ;;  %1706 = vmatprep.subr.bf16.mxu1 %v5710_v41  ;;  %v5789_v40 = vld [vmem:[#allocation9 + $0x2e8] ss:$16 sps:$4 sm:$0xff]   ;;  %v5794_v41 = vld [vmem:[#allocation9 + $0x304] ss:$16 sps:$4 sm:$0xff]  }
  0x9a   :  { %1535 = vmatpush1.bf16.msra.mxu0 %v5712_v42  ;;  %1707 = vmatpush1.bf16.msra.mxu1 %v5713_v43  ;;  %v5797_v42 = vld [vmem:[#allocation9 + $0x30c] ss:$16 sps:$4 sm:$0xff]   ;;  %v5792_v43 = vld [vmem:[#allocation9 + $0x300] ss:$16 sps:$4 sm:$0xff]  }
  0x9b   :  { %1536 = vmatprep.subr.bf16.mxu0 %v5714_v44  ;;  %1708 = vmatprep.subr.bf16.mxu1 %v5716_v45  ;;  %v5795_v44 = vld [vmem:[#allocation9 + $0x308] ss:$16 sps:$4 sm:$0xff]   ;;  %v5800_v45 = vld [vmem:[#allocation9 + $0x324] ss:$16 sps:$4 sm:$0xff]  }
  0x9e   :  { %1537 = vmatpush1.bf16.msra.mxu0 %v5718_v48  ;;  %1709 = vmatpush1.bf16.msra.mxu1 %v5719_v49  ;;  %v5801_v48 = vld [vmem:[#allocation9 + $0x328] ss:$16 sps:$4 sm:$0xff]   ;;  %v5806_v49 = vld [vmem:[#allocation9 + $0x344] ss:$16 sps:$4 sm:$0xff]  }
  0x9f   :  { %1538 = vmatprep.subr.bf16.mxu0 %v5720_v51  ;;  %1710 = vmatprep.subr.bf16.mxu1 %v5722_v52  ;;  %v5804_v51 = vld [vmem:[#allocation9 + $0x340] ss:$16 sps:$4 sm:$0xff]   ;;  %v5807_v52 = vld [vmem:[#allocation9 + $0x348] ss:$16 sps:$4 sm:$0xff]  }
  0xa2   :  { %1539 = vmatpush1.bf16.msra.mxu0 %v5724_v53  ;;  %1711 = vmatpush1.bf16.msra.mxu1 %v5725_v54  ;;  %v5812_v53 = vld [vmem:[#allocation9 + $0x364] ss:$16 sps:$4 sm:$0xff]   ;;  %v5815_v54 = vld [vmem:[#allocation9 + $0x36c] ss:$16 sps:$4 sm:$0xff]  }
  0xa3   :  { %1540 = vmatprep.subr.bf16.mxu0 %v5726_v55  ;;  %1712 = vmatprep.subr.bf16.mxu1 %v5728_v56  ;;  %v5810_v55 = vld [vmem:[#allocation9 + $0x360] ss:$16 sps:$4 sm:$0xff]   ;;  %v5813_v56 = vld [vmem:[#allocation9 + $0x368] ss:$16 sps:$4 sm:$0xff]  }
  0xa6   :  { %1541 = vmatpush1.bf16.msra.mxu0 %v5730_v57  ;;  %1713 = vmatpush1.bf16.msra.mxu1 %v5731_v58  ;;  %v5818_v57 = vld [vmem:[#allocation9 + $0x384] ss:$16 sps:$4 sm:$0xff]   ;;  %v5821_v58 = vld [vmem:[#allocation9 + $0x38c] ss:$16 sps:$4 sm:$0xff]  }
  0xa7   :  { %1542 = vmatprep.subr.bf16.mxu0 %v5732_v59  ;;  %1714 = vmatprep.subr.bf16.mxu1 %v5734_v60  ;;  %v5816_v59 = vld [vmem:[#allocation9 + $0x380] ss:$16 sps:$4 sm:$0xff]   ;;  %v5819_v60 = vld [vmem:[#allocation9 + $0x388] ss:$16 sps:$4 sm:$0xff]  }
  0xaa   :  { %1543 = vmatpush1.bf16.msra.mxu0 %v5736_v61  ;;  %1715 = vmatpush1.bf16.msra.mxu1 %v5737_v62  ;;  %v5824_v61 = vld [vmem:[#allocation9 + $0x3a4] ss:$16 sps:$4 sm:$0xff]   ;;  %v5827_v62 = vld [vmem:[#allocation9 + $0x3ac] ss:$16 sps:$4 sm:$0xff]  }
  0xab   :  { %1544 = vmatprep.subr.bf16.mxu0 %v5738_v63  ;;  %1716 = vmatprep.subr.bf16.mxu1 %v5740_v0  ;;  %v5822_v63 = vld [vmem:[#allocation9 + $0x3a0] ss:$16 sps:$4 sm:$0xff]   ;;  %v5825_v0 = vld [vmem:[#allocation9 + $0x3a8] ss:$16 sps:$4 sm:$0xff]  }
  0xae   :  { %1545 = vmatpush1.bf16.msra.mxu0 %v5742_v1  ;;  %1717 = vmatpush1.bf16.msra.mxu1 %v5743_v2  ;;  %v5830_v1 = vld [vmem:[#allocation9 + $0x3c4] ss:$16 sps:$4 sm:$0xff]   ;;  %v5833_v2 = vld [vmem:[#allocation9 + $0x3cc] ss:$16 sps:$4 sm:$0xff]  }
  0xaf   :  { %1557 = vmatprep.subr.bf16.mxu0 %v5746_v3  ;;  %1729 = vmatprep.subr.bf16.mxu1 %v5749_v6  ;;  %v5828_v3 = vld [vmem:[#allocation9 + $0x3c0] ss:$16 sps:$4 sm:$0xff]   ;;  %v5839_v6 = vld [vmem:[#allocation9 + $0x3ec] ss:$16 sps:$4 sm:$0xff]  }
  0xb1   :  { %1547 = vmatmul.mubr.bf16.vlgmr.msra.gmra.mrb[0].mxu0 %v141_v9  ;;  %1719 = vmatmul.mubr.bf16.vlgmr.msra.gmra.mrb[0].mxu1 %v141_v9  ;;  %v5842_v9 = vld [vmem:[#allocation9 + $0x404] ss:$16 sps:$4 sm:$0xff]  }
  0xb2   :  { %1558 = vmatpush1.bf16.msra.mxu0 %v5744_v7  ;;  %1730 = vmatpush1.bf16.msra.mxu1 %v5747_v8  ;;  %v5834_v7 = vld [vmem:[#allocation9 + $0x3e0] ss:$16 sps:$4 sm:$0xff]   ;;  %v5837_v8 = vld [vmem:[#allocation9 + $0x3e8] ss:$16 sps:$4 sm:$0xff]  }
  0xb3   :  { %1559 = vmatprep.subr.bf16.mxu0 %v5752_v10  ;;  %1731 = vmatprep.subr.bf16.mxu1 %v5755_v11  ;;  %v127_v10 = vld [vmem:[#allocation4 + $0x10] sm:$0xff]  ;;  %v134_v11 = vld [vmem:[#allocation4 + $0x48] sm:$0xff] }
  0xb4   :  { %1589 = vmatprep.mubr.bf16.mxu0 %v144_v36  ;;  %1761 = vmatprep.mubr.bf16.mxu1 %v144_v36  ;;  %v5875_v36 = vld [vmem:[#allocation9 + $0x4ac] ss:$16 sps:$4 sm:$0xff]  }
  0xb6   :  { %1560 = vmatpush1.bf16.msra.mxu0 %v5750_v12  ;;  %1732 = vmatpush1.bf16.msra.mxu1 %v5753_v13  ;;  %v5845_v12 = vld [vmem:[#allocation9 + $0x40c] ss:$16 sps:$4 sm:$0xff]   ;;  %v5840_v13 = vld [vmem:[#allocation9 + $0x400] ss:$16 sps:$4 sm:$0xff]  }
  0xb7   :  { %1561 = vmatprep.subr.bf16.mxu0 %v5758_v14  ;;  %1733 = vmatprep.subr.bf16.mxu1 %v5761_v15  ;;  %v5843_v14 = vld [vmem:[#allocation9 + $0x408] ss:$16 sps:$4 sm:$0xff]   ;;  %v143_v15 = vpack.c.bf16 %v134_v11, %v127_v10  ;;  %v5932_v11 = vld [vmem:[#allocation9 + $0x5e4] ss:$16 sps:$4 sm:$0xff]  }
  0xb8   :  { %v5927_v10 = vld [vmem:[#allocation9 + $0x5c8] ss:$16 sps:$4 sm:$0xff]  }
  0xba   :  { %1562 = vmatpush1.bf16.msra.mxu0 %v5756_v16  ;;  %1734 = vmatpush1.bf16.msra.mxu1 %v5759_v17  ;;  %v5848_v16 = vld [vmem:[#allocation9 + $0x424] ss:$16 sps:$4 sm:$0xff]   ;;  %v5851_v17 = vld [vmem:[#allocation9 + $0x42c] ss:$16 sps:$4 sm:$0xff]  }
  0xbb   :  { %1563 = vmatprep.subr.bf16.mxu0 %v5764_v18  ;;  %1735 = vmatprep.subr.bf16.mxu1 %v5767_v19  ;;  %v130_v18 = vld [vmem:[#allocation4 + $0x28] sm:$0xff]  ;;  %v137_v19 = vld [vmem:[#allocation4 + $0x60] sm:$0xff] }
  0xbe   :  { %1564 = vmatpush1.bf16.msra.mxu0 %v5762_v20  ;;  %1736 = vmatpush1.bf16.msra.mxu1 %v5765_v21  ;;  %v5846_v20 = vld [vmem:[#allocation9 + $0x420] ss:$16 sps:$4 sm:$0xff]   ;;  %v5849_v21 = vld [vmem:[#allocation9 + $0x428] ss:$16 sps:$4 sm:$0xff]  }
  0xbf   :  { %1565 = vmatprep.subr.bf16.mxu0 %v5770_v22  ;;  %1737 = vmatprep.subr.bf16.mxu1 %v5773_v23  ;;  %v146_v22 = vpack.c.bf16 %v137_v19, %v130_v18  ;;  %v5854_v23 = vld [vmem:[#allocation9 + $0x444] ss:$16 sps:$4 sm:$0xff]   ;;  %v5941_v18 = vld [vmem:[#allocation9 + $0x60c] ss:$16 sps:$4 sm:$0xff]   ;;  %v5936_v19 = vld [vmem:[#allocation9 + $0x600] ss:$16 sps:$4 sm:$0xff]  }
  0xc2   :  { %1566 = vmatpush1.bf16.msra.mxu0 %v5768_v24  ;;  %1738 = vmatpush1.bf16.msra.mxu1 %v5771_v25  ;;  %v5857_v24 = vld [vmem:[#allocation9 + $0x44c] ss:$16 sps:$4 sm:$0xff]   ;;  %v5852_v25 = vld [vmem:[#allocation9 + $0x440] ss:$16 sps:$4 sm:$0xff]  }
  0xc3   :  { %1567 = vmatprep.subr.bf16.mxu0 %v5776_v26  ;;  %1739 = vmatprep.subr.bf16.mxu1 %v5779_v27  ;;  %v5855_v26 = vld [vmem:[#allocation9 + $0x448] ss:$16 sps:$4 sm:$0xff]   ;;  %v5860_v27 = vld [vmem:[#allocation9 + $0x464] ss:$16 sps:$4 sm:$0xff]  }
  0xc6   :  { %1568 = vmatpush1.bf16.msra.mxu0 %v5774_v28  ;;  %1740 = vmatpush1.bf16.msra.mxu1 %v5777_v29  ;;  %v5863_v28 = vld [vmem:[#allocation9 + $0x46c] ss:$16 sps:$4 sm:$0xff]   ;;  %v5858_v29 = vld [vmem:[#allocation9 + $0x460] ss:$16 sps:$4 sm:$0xff]  }
  0xc7   :  { %1569 = vmatprep.subr.bf16.mxu0 %v5782_v30  ;;  %1741 = vmatprep.subr.bf16.mxu1 %v5785_v31  ;;  %v5861_v30 = vld [vmem:[#allocation9 + $0x468] ss:$16 sps:$4 sm:$0xff]   ;;  %v5866_v31 = vld [vmem:[#allocation9 + $0x484] ss:$16 sps:$4 sm:$0xff]  }
  0xca   :  { %1570 = vmatpush1.bf16.msra.mxu0 %v5780_v34  ;;  %1742 = vmatpush1.bf16.msra.mxu1 %v5783_v35  ;;  %v5867_v34 = vld [vmem:[#allocation9 + $0x488] ss:$16 sps:$4 sm:$0xff]   ;;  %v5872_v35 = vld [vmem:[#allocation9 + $0x4a4] ss:$16 sps:$4 sm:$0xff]  }
  0xcb   :  { %1571 = vmatprep.subr.bf16.mxu0 %v5788_v37  ;;  %1743 = vmatprep.subr.bf16.mxu1 %v5791_v38  ;;  %v5870_v37 = vld [vmem:[#allocation9 + $0x4a0] ss:$16 sps:$4 sm:$0xff]   ;;  %v5873_v38 = vld [vmem:[#allocation9 + $0x4a8] ss:$16 sps:$4 sm:$0xff]  }
  0xce   :  { %1572 = vmatpush1.bf16.msra.mxu0 %v5786_v39  ;;  %1744 = vmatpush1.bf16.msra.mxu1 %v5789_v40  ;;  %v5878_v39 = vld [vmem:[#allocation9 + $0x4c4] ss:$16 sps:$4 sm:$0xff]   ;;  %v5881_v40 = vld [vmem:[#allocation9 + $0x4cc] ss:$16 sps:$4 sm:$0xff]  }
  0xcf   :  { %1573 = vmatprep.subr.bf16.mxu0 %v5794_v41  ;;  %1745 = vmatprep.subr.bf16.mxu1 %v5797_v42  ;;  %v5876_v41 = vld [vmem:[#allocation9 + $0x4c0] ss:$16 sps:$4 sm:$0xff]   ;;  %v5879_v42 = vld [vmem:[#allocation9 + $0x4c8] ss:$16 sps:$4 sm:$0xff]  }
  0xd2   :  { %1574 = vmatpush1.bf16.msra.mxu0 %v5792_v43  ;;  %1746 = vmatpush1.bf16.msra.mxu1 %v5795_v44  ;;  %v5884_v43 = vld [vmem:[#allocation9 + $0x4e4] ss:$16 sps:$4 sm:$0xff]   ;;  %v5887_v44 = vld [vmem:[#allocation9 + $0x4ec] ss:$16 sps:$4 sm:$0xff]  }
  0xd3   :  { %1575 = vmatprep.subr.bf16.mxu0 %v5800_v45  ;;  %1747 = vmatprep.subr.bf16.mxu1 %v5803_v46  ;;  %v5882_v45 = vld [vmem:[#allocation9 + $0x4e0] ss:$16 sps:$4 sm:$0xff]   ;;  %v5885_v46 = vld [vmem:[#allocation9 + $0x4e8] ss:$16 sps:$4 sm:$0xff]  }
  0xd6   :  { %1576 = vmatpush1.bf16.msra.mxu0 %v5798_v47  ;;  %1748 = vmatpush1.bf16.msra.mxu1 %v5801_v48  ;;  %v5890_v47 = vld [vmem:[#allocation9 + $0x504] ss:$16 sps:$4 sm:$0xff]   ;;  %v5893_v48 = vld [vmem:[#allocation9 + $0x50c] ss:$16 sps:$4 sm:$0xff]  }
  0xd7   :  { %1577 = vmatprep.subr.bf16.mxu0 %v5806_v49  ;;  %1749 = vmatprep.subr.bf16.mxu1 %v5809_v50  ;;  %v5888_v49 = vld [vmem:[#allocation9 + $0x500] ss:$16 sps:$4 sm:$0xff]   ;;  %v5891_v50 = vld [vmem:[#allocation9 + $0x508] ss:$16 sps:$4 sm:$0xff]  }
  0xda   :  { %1578 = vmatpush1.bf16.msra.mxu0 %v5804_v51  ;;  %1750 = vmatpush1.bf16.msra.mxu1 %v5807_v52  ;;  %v5896_v51 = vld [vmem:[#allocation9 + $0x524] ss:$16 sps:$4 sm:$0xff]   ;;  %v5899_v52 = vld [vmem:[#allocation9 + $0x52c] ss:$16 sps:$4 sm:$0xff]  }
  0xdb   :  { %1579 = vmatprep.subr.bf16.mxu0 %v5812_v53  ;;  %1751 = vmatprep.subr.bf16.mxu1 %v5815_v54  ;;  %v5894_v53 = vld [vmem:[#allocation9 + $0x520] ss:$16 sps:$4 sm:$0xff]   ;;  %v5897_v54 = vld [vmem:[#allocation9 + $0x528] ss:$16 sps:$4 sm:$0xff]  }
  0xde   :  { %1580 = vmatpush1.bf16.msra.mxu0 %v5810_v55  ;;  %1752 = vmatpush1.bf16.msra.mxu1 %v5813_v56  ;;  %v5902_v55 = vld [vmem:[#allocation9 + $0x544] ss:$16 sps:$4 sm:$0xff]   ;;  %v5905_v56 = vld [vmem:[#allocation9 + $0x54c] ss:$16 sps:$4 sm:$0xff]  }
  0xdf   :  { %1581 = vmatprep.subr.bf16.mxu0 %v5818_v57  ;;  %1753 = vmatprep.subr.bf16.mxu1 %v5821_v58  ;;  %v5900_v57 = vld [vmem:[#allocation9 + $0x540] ss:$16 sps:$4 sm:$0xff]   ;;  %v5903_v58 = vld [vmem:[#allocation9 + $0x548] ss:$16 sps:$4 sm:$0xff]  }
  0xe2   :  { %1582 = vmatpush1.bf16.msra.mxu0 %v5816_v59  ;;  %1754 = vmatpush1.bf16.msra.mxu1 %v5819_v60  ;;  %v5908_v59 = vld [vmem:[#allocation9 + $0x564] ss:$16 sps:$4 sm:$0xff]   ;;  %v5911_v60 = vld [vmem:[#allocation9 + $0x56c] ss:$16 sps:$4 sm:$0xff]  }
  0xe3   :  { %1583 = vmatprep.subr.bf16.mxu0 %v5824_v61  ;;  %1755 = vmatprep.subr.bf16.mxu1 %v5827_v62  ;;  %v5906_v61 = vld [vmem:[#allocation9 + $0x560] ss:$16 sps:$4 sm:$0xff]   ;;  %v5909_v62 = vld [vmem:[#allocation9 + $0x568] ss:$16 sps:$4 sm:$0xff]  }
  0xe6   :  { %1584 = vmatpush1.bf16.msra.mxu0 %v5822_v63  ;;  %1756 = vmatpush1.bf16.msra.mxu1 %v5825_v0  ;;  %v5914_v63 = vld [vmem:[#allocation9 + $0x584] ss:$16 sps:$4 sm:$0xff]   ;;  %v5917_v0 = vld [vmem:[#allocation9 + $0x58c] ss:$16 sps:$4 sm:$0xff]  }
  0xe7   :  { %1585 = vmatprep.subr.bf16.mxu0 %v5830_v1  ;;  %1757 = vmatprep.subr.bf16.mxu1 %v5833_v2  ;;  %v5912_v1 = vld [vmem:[#allocation9 + $0x580] ss:$16 sps:$4 sm:$0xff]   ;;  %v5915_v2 = vld [vmem:[#allocation9 + $0x588] ss:$16 sps:$4 sm:$0xff]  }
  0xea   :  { %1586 = vmatpush1.bf16.msra.mxu0 %v5828_v3  ;;  %1758 = vmatpush1.bf16.msra.mxu1 %v5831_v4  ;;  %v5920_v3 = vld [vmem:[#allocation9 + $0x5a4] ss:$16 sps:$4 sm:$0xff]   ;;  %v5923_v4 = vld [vmem:[#allocation9 + $0x5ac] ss:$16 sps:$4 sm:$0xff]  }
  0xeb   :  { %1587 = vmatprep.subr.bf16.mxu0 %v5836_v5  ;;  %1759 = vmatprep.subr.bf16.mxu1 %v5839_v6  ;;  %v5918_v5 = vld [vmem:[#allocation9 + $0x5a0] ss:$16 sps:$4 sm:$0xff]   ;;  %v5921_v6 = vld [vmem:[#allocation9 + $0x5a8] ss:$16 sps:$4 sm:$0xff]  }
  0xee   :  { %1588 = vmatpush1.bf16.msra.mxu0 %v5834_v7  ;;  %1760 = vmatpush1.bf16.msra.mxu1 %v5837_v8  ;;  %v5926_v7 = vld [vmem:[#allocation9 + $0x5c4] ss:$16 sps:$4 sm:$0xff]   ;;  %v5929_v8 = vld [vmem:[#allocation9 + $0x5cc] ss:$16 sps:$4 sm:$0xff]  }
  0xef   :  { %1600 = vmatprep.subr.bf16.mxu0 %v5842_v9  ;;  %1772 = vmatprep.subr.bf16.mxu1 %v5845_v12  ;;  %v5924_v9 = vld [vmem:[#allocation9 + $0x5c0] ss:$16 sps:$4 sm:$0xff]   ;;  %v5935_v12 = vld [vmem:[#allocation9 + $0x5ec] ss:$16 sps:$4 sm:$0xff]  }
  0xf1   :  { %1590 = vmatmul.mubr.bf16.vlgmr.msra.gmra.mrb[0].mxu0 %v143_v15  ;;  %1762 = vmatmul.mubr.bf16.vlgmr.msra.gmra.mrb[0].mxu1 %v143_v15  ;;  %v129_v15 = vld [vmem:[#allocation4 + $0x20] sm:$0xff] }
  0xf2   :  { %1601 = vmatpush1.bf16.msra.mxu0 %v5840_v13  ;;  %1773 = vmatpush1.bf16.msra.mxu1 %v5843_v14  ;;  %v5930_v13 = vld [vmem:[#allocation9 + $0x5e0] ss:$16 sps:$4 sm:$0xff]   ;;  %v5933_v14 = vld [vmem:[#allocation9 + $0x5e8] ss:$16 sps:$4 sm:$0xff]  }
  0xf3   :  { %1602 = vmatprep.subr.bf16.mxu0 %v5848_v16  ;;  %1774 = vmatprep.subr.bf16.mxu1 %v5851_v17  ;;  %v136_v16 = vld [vmem:[#allocation4 + $0x58] sm:$0xff]  ;;  %v5938_v17 = vld [vmem:[#allocation9 + $0x604] ss:$16 sps:$4 sm:$0xff]  }
  0xf4   :  { %1632 = vmatprep.mubr.bf16.mxu0 %v146_v22  ;;  %1804 = vmatprep.mubr.bf16.mxu1 %v146_v22  ;;  %v5944_v22 = vld [vmem:[#allocation9 + $0x624] ss:$16 sps:$4 sm:$0xff]  }
  0xf6   :  { %1603 = vmatpush1.bf16.msra.mxu0 %v5846_v20  ;;  %1775 = vmatpush1.bf16.msra.mxu1 %v5849_v21  ;;  %v5939_v20 = vld [vmem:[#allocation9 + $0x608] ss:$16 sps:$4 sm:$0xff]   ;;  %v145_v21 = vpack.c.bf16 %v136_v16, %v129_v15  ;;  %v6025_v16 = vld [vmem:[#allocation10 + $0xd4] ss:$8 sps:$4 sm:$0xff]  }
  0xf7   :  { %1604 = vmatprep.subr.bf16.mxu0 %v5854_v23  ;;  %1776 = vmatprep.subr.bf16.mxu1 %v5857_v24  ;;  %v5947_v23 = vld [vmem:[#allocation9 + $0x62c] ss:$16 sps:$4 sm:$0xff]   ;;  %v5942_v24 = vld [vmem:[#allocation9 + $0x620] ss:$16 sps:$4 sm:$0xff]  }
  0xf8   :  { %v6020_v15 = vld [vmem:[#allocation10 + $0xc0] ss:$8 sps:$4 sm:$0xff]  }
  0xfa   :  { %1605 = vmatpush1.bf16.msra.mxu0 %v5852_v25  ;;  %1777 = vmatpush1.bf16.msra.mxu1 %v5855_v26  ;;  %v5945_v25 = vld [vmem:[#allocation9 + $0x628] ss:$16 sps:$4 sm:$0xff]   ;;  %v5950_v26 = vld [vmem:[#allocation9 + $0x644] ss:$16 sps:$4 sm:$0xff]  }
  0xfb   :  { %1606 = vmatprep.subr.bf16.mxu0 %v5860_v27  ;;  %1778 = vmatprep.subr.bf16.mxu1 %v5863_v28  ;;  %v5953_v27 = vld [vmem:[#allocation9 + $0x64c] ss:$16 sps:$4 sm:$0xff]   ;;  %v5948_v28 = vld [vmem:[#allocation9 + $0x640] ss:$16 sps:$4 sm:$0xff]  }
  0xfe   :  { %1607 = vmatpush1.bf16.msra.mxu0 %v5858_v29  ;;  %1779 = vmatpush1.bf16.msra.mxu1 %v5861_v30  ;;  %v5951_v29 = vld [vmem:[#allocation9 + $0x648] ss:$16 sps:$4 sm:$0xff]   ;;  %v6774_v30 = vmov 0  }
  0xff   :  { %1608 = vmatprep.subr.bf16.mxu0 %v5866_v31  ;;  %1780 = vmatprep.subr.bf16.mxu1 %v5869_v32  ;;  %v5956_v31 = vld [vmem:[#allocation9 + $0x664] ss:$16 sps:$4 sm:$0xff]   ;;  %v5959_v32 = vld [vmem:[#allocation9 + $0x66c] ss:$16 sps:$4 sm:$0xff]  }
 0x102   :  { %1609 = vmatpush1.bf16.msra.mxu0 %v5864_v33  ;;  %1781 = vmatpush1.bf16.msra.mxu1 %v5867_v34  ;;  %v5954_v33 = vld [vmem:[#allocation9 + $0x660] ss:$16 sps:$4 sm:$0xff]   ;;  %v5957_v34 = vld [vmem:[#allocation9 + $0x668] ss:$16 sps:$4 sm:$0xff]  }
 0x103   :  { %1610 = vmatprep.subr.bf16.mxu0 %v5872_v35  ;;  %1782 = vmatprep.subr.bf16.mxu1 %v5875_v36  ;;  %v5962_v35 = vld [vmem:[#allocation9 + $0x684] ss:$16 sps:$4 sm:$0xff]   ;;  %v5965_v36 = vld [vmem:[#allocation9 + $0x68c] ss:$16 sps:$4 sm:$0xff]  }
 0x106   :  { %1611 = vmatpush1.bf16.msra.mxu0 %v5870_v37  ;;  %1783 = vmatpush1.bf16.msra.mxu1 %v5873_v38  ;;  %v5960_v37 = vld [vmem:[#allocation9 + $0x680] ss:$16 sps:$4 sm:$0xff]   ;;  %v5963_v38 = vld [vmem:[#allocation9 + $0x688] ss:$16 sps:$4 sm:$0xff]  }
 0x107   :  { %1612 = vmatprep.subr.bf16.mxu0 %v5878_v39  ;;  %1784 = vmatprep.subr.bf16.mxu1 %v5881_v40  ;;  %v5968_v39 = vld [vmem:[#allocation9 + $0x6a4] ss:$16 sps:$4 sm:$0xff]   ;;  %v5971_v40 = vld [vmem:[#allocation9 + $0x6ac] ss:$16 sps:$4 sm:$0xff]  }
 0x10a   :  { %1613 = vmatpush1.bf16.msra.mxu0 %v5876_v41  ;;  %1785 = vmatpush1.bf16.msra.mxu1 %v5879_v42  ;;  %v5966_v41 = vld [vmem:[#allocation9 + $0x6a0] ss:$16 sps:$4 sm:$0xff]   ;;  %v5969_v42 = vld [vmem:[#allocation9 + $0x6a8] ss:$16 sps:$4 sm:$0xff]  }
 0x10b   :  { %1614 = vmatprep.subr.bf16.mxu0 %v5884_v43  ;;  %1786 = vmatprep.subr.bf16.mxu1 %v5887_v44  ;;  %v5974_v43 = vld [vmem:[#allocation9 + $0x6c4] ss:$16 sps:$4 sm:$0xff]   ;;  %v5977_v44 = vld [vmem:[#allocation9 + $0x6cc] ss:$16 sps:$4 sm:$0xff]  }
 0x10e   :  { %1615 = vmatpush1.bf16.msra.mxu0 %v5882_v45  ;;  %1787 = vmatpush1.bf16.msra.mxu1 %v5885_v46  ;;  %v5972_v45 = vld [vmem:[#allocation9 + $0x6c0] ss:$16 sps:$4 sm:$0xff]   ;;  %v5975_v46 = vld [vmem:[#allocation9 + $0x6c8] ss:$16 sps:$4 sm:$0xff]  }
 0x10f   :  { %1616 = vmatprep.subr.bf16.mxu0 %v5890_v47  ;;  %1788 = vmatprep.subr.bf16.mxu1 %v5893_v48  ;;  %v5980_v47 = vld [vmem:[#allocation9 + $0x6e4] ss:$16 sps:$4 sm:$0xff]   ;;  %v5983_v48 = vld [vmem:[#allocation9 + $0x6ec] ss:$16 sps:$4 sm:$0xff]  }
 0x112   :  { %1617 = vmatpush1.bf16.msra.mxu0 %v5888_v49  ;;  %1789 = vmatpush1.bf16.msra.mxu1 %v5891_v50  ;;  %v5978_v49 = vld [vmem:[#allocation9 + $0x6e0] ss:$16 sps:$4 sm:$0xff]   ;;  %v5981_v50 = vld [vmem:[#allocation9 + $0x6e8] ss:$16 sps:$4 sm:$0xff]  }
 0x113   :  { %1618 = vmatprep.subr.bf16.mxu0 %v5896_v51  ;;  %1790 = vmatprep.subr.bf16.mxu1 %v5899_v52  ;;  %v131_v51 = vld [vmem:[#allocation4 + $0x30] sm:$0xff]  ;;  %v138_v52 = vld [vmem:[#allocation4 + $0x68] sm:$0xff] }
 0x116   :  { %1619 = vmatpush1.bf16.msra.mxu0 %v5894_v53  ;;  %1791 = vmatpush1.bf16.msra.mxu1 %v5897_v54  ;;  %v5986_v53 = vld [vmem:[#allocation10 + $0x4] ss:$8 sps:$4 sm:$0xff]   ;;  %v5984_v54 = vld [vmem:[#allocation10] ss:$8 sps:$4 sm:$0xff]  }
 0x117   :  { %1620 = vmatprep.subr.bf16.mxu0 %v5902_v55  ;;  %1792 = vmatprep.subr.bf16.mxu1 %v5905_v56  ;;  %v147_v55 = vpack.c.bf16 %v138_v52, %v131_v51  ;;  %v5989_v56 = vld [vmem:[#allocation10 + $0x14] ss:$8 sps:$4 sm:$0xff]  }
 0x11a   :  { %1621 = vmatpush1.bf16.msra.mxu0 %v5900_v57  ;;  %1793 = vmatpush1.bf16.msra.mxu1 %v5903_v58  ;;  %v5987_v57 = vld [vmem:[#allocation10 + $0x10] ss:$8 sps:$4 sm:$0xff]   ;;  %v5992_v58 = vld [vmem:[#allocation10 + $0x24] ss:$8 sps:$4 sm:$0xff]  }
 0x11b   :  { %1622 = vmatprep.subr.bf16.mxu0 %v5908_v59  ;;  %1794 = vmatprep.subr.bf16.mxu1 %v5911_v60  ;;  %v5990_v59 = vld [vmem:[#allocation10 + $0x20] ss:$8 sps:$4 sm:$0xff]   ;;  %v5995_v60 = vld [vmem:[#allocation10 + $0x34] ss:$8 sps:$4 sm:$0xff]  }
 0x11e   :  { %1623 = vmatpush1.bf16.msra.mxu0 %v5906_v61  ;;  %1795 = vmatpush1.bf16.msra.mxu1 %v5909_v62  ;;  %v5993_v61 = vld [vmem:[#allocation10 + $0x30] ss:$8 sps:$4 sm:$0xff]   ;;  %v5998_v62 = vld [vmem:[#allocation10 + $0x44] ss:$8 sps:$4 sm:$0xff]  }
 0x11f   :  { %1624 = vmatprep.subr.bf16.mxu0 %v5914_v63  ;;  %1796 = vmatprep.subr.bf16.mxu1 %v5917_v0  ;;  %v5996_v63 = vld [vmem:[#allocation10 + $0x40] ss:$8 sps:$4 sm:$0xff]   ;;  %v6001_v0 = vld [vmem:[#allocation10 + $0x54] ss:$8 sps:$4 sm:$0xff]  }
 0x122   :  { %1625 = vmatpush1.bf16.msra.mxu0 %v5912_v1  ;;  %1797 = vmatpush1.bf16.msra.mxu1 %v5915_v2  ;;  %v5999_v1 = vld [vmem:[#allocation10 + $0x50] ss:$8 sps:$4 sm:$0xff]   ;;  %v6004_v2 = vld [vmem:[#allocation10 + $0x64] ss:$8 sps:$4 sm:$0xff]  }
 0x123   :  { %1626 = vmatprep.subr.bf16.mxu0 %v5920_v3  ;;  %1798 = vmatprep.subr.bf16.mxu1 %v5923_v4  ;;  %v6002_v3 = vld [vmem:[#allocation10 + $0x60] ss:$8 sps:$4 sm:$0xff]   ;;  %v6007_v4 = vld [vmem:[#allocation10 + $0x74] ss:$8 sps:$4 sm:$0xff]  }
 0x126   :  { %1627 = vmatpush1.bf16.msra.mxu0 %v5918_v5  ;;  %1799 = vmatpush1.bf16.msra.mxu1 %v5921_v6  ;;  %v6005_v5 = vld [vmem:[#allocation10 + $0x70] ss:$8 sps:$4 sm:$0xff]   ;;  %v6010_v6 = vld [vmem:[#allocation10 + $0x84] ss:$8 sps:$4 sm:$0xff]  }
 0x127   :  { %1628 = vmatprep.subr.bf16.mxu0 %v5926_v7  ;;  %1800 = vmatprep.subr.bf16.mxu1 %v5929_v8  ;;  %v6008_v7 = vld [vmem:[#allocation10 + $0x80] ss:$8 sps:$4 sm:$0xff]   ;;  %v6013_v8 = vld [vmem:[#allocation10 + $0x94] ss:$8 sps:$4 sm:$0xff]  }
 0x12a   :  { %1629 = vmatpush1.bf16.msra.mxu0 %v5924_v9  ;;  %1801 = vmatpush1.bf16.msra.mxu1 %v5927_v10  ;;  %v6011_v9 = vld [vmem:[#allocation10 + $0x90] ss:$8 sps:$4 sm:$0xff]   ;;  %v6016_v10 = vld [vmem:[#allocation10 + $0xa4] ss:$8 sps:$4 sm:$0xff]  }
 0x12b   :  { %1630 = vmatprep.subr.bf16.mxu0 %v5932_v11  ;;  %1802 = vmatprep.subr.bf16.mxu1 %v5935_v12  ;;  %v6014_v11 = vld [vmem:[#allocation10 + $0xa0] ss:$8 sps:$4 sm:$0xff]   ;;  %v6019_v12 = vld [vmem:[#allocation10 + $0xb4] ss:$8 sps:$4 sm:$0xff]  }
 0x12e   :  { %1631 = vmatpush1.bf16.msra.mxu0 %v5930_v13  ;;  %1803 = vmatpush1.bf16.msra.mxu1 %v5933_v14  ;;  %v6017_v13 = vld [vmem:[#allocation10 + $0xb0] ss:$8 sps:$4 sm:$0xff]   ;;  %v6022_v14 = vld [vmem:[#allocation10 + $0xc4] ss:$8 sps:$4 sm:$0xff]  }
 0x12f   :  { %1643 = vmatprep.subr.bf16.mxu0 %v5938_v17  ;;  %1815 = vmatprep.subr.bf16.mxu1 %v5941_v18  ;;  %v6023_v17 = vld [vmem:[#allocation10 + $0xd0] ss:$8 sps:$4 sm:$0xff]   ;;  %v6028_v18 = vld [vmem:[#allocation10 + $0xe4] ss:$8 sps:$4 sm:$0xff]  }
 0x131   :  { %1633 = vmatmul.mubr.bf16.vlgmr.msra.gmra.mrb[0].mxu0 %v145_v21  ;;  %1805 = vmatmul.mubr.bf16.vlgmr.msra.gmra.mrb[0].mxu1 %v145_v21  ;;  %v6029_v21 = vld [vmem:[#allocation10 + $0xf0] ss:$8 sps:$4 sm:$0xff]  }
 0x132   :  { %1644 = vmatpush1.bf16.msra.mxu0 %v5936_v19  ;;  %1816 = vmatpush1.bf16.msra.mxu1 %v5939_v20  ;;  %v6026_v19 = vld [vmem:[#allocation10 + $0xe0] ss:$8 sps:$4 sm:$0xff]   ;;  %v6031_v20 = vld [vmem:[#allocation10 + $0xf4] ss:$8 sps:$4 sm:$0xff]  }
 0x133   :  { %1645 = vmatprep.subr.bf16.mxu0 %v5944_v22  ;;  %1817 = vmatprep.subr.bf16.mxu1 %v5947_v23  ;;  %v6034_v22 = vld [vmem:[#allocation10 + $0x104] ss:$8 sps:$4 sm:$0xff]   ;;  %v6080_v23 = vld [vmem:[#allocation12] ss:$16 sps:$4 sm:$0xff]  }
 0x134   :  { %1675 = vmatprep.mubr.bf16.mxu0 %v6774_v30  ;;  %1847 = vmatprep.mubr.bf16.mxu1 %v6774_v30 }
 0x136   :  { %1646 = vmatpush1.bf16.msra.mxu0 %v5942_v24  ;;  %1818 = vmatpush1.bf16.msra.mxu1 %v5945_v25  ;;  %v6082_v24 = vld [vmem:[#allocation12 + $0x4] ss:$16 sps:$4 sm:$0xff]  }
 0x137   :  { %1647 = vmatprep.subr.bf16.mxu0 %v5950_v26  ;;  %1819 = vmatprep.subr.bf16.mxu1 %v5953_v27  ;;  %v6085_v25 = vld [vmem:[#allocation12 + $0x24] ss:$16 sps:$4 sm:$0xff]   ;;  %v6083_v26 = vld [vmem:[#allocation12 + $0x20] ss:$16 sps:$4 sm:$0xff]   ;;  %v374_v27 = vlaneseq }
 0x13a   :  { %1648 = vmatpush1.bf16.msra.mxu0 %v5948_v28  ;;  %1820 = vmatpush1.bf16.msra.mxu1 %v5951_v29  ;;  %v6941_v28 = vshrl.u32 %v374_v27, 7 }
 0x13b   :  { %1649 = vmatprep.subr.bf16.mxu0 %v5956_v31  ;;  %1821 = vmatprep.subr.bf16.mxu1 %v5959_v32  ;;  %v372_v32 = vld [vmem:[%s7352_s4] sm:$0xf] }
 0x13c   :  { %v6944_v29 = vsub.s32 0, %v6941_v28  ;;  %v6947_v31 = vsub.s32 2, %v6941_v28 }
 0x13e   :  { %1650 = vmatpush1.bf16.msra.mxu0 %v5954_v33  ;;  %1822 = vmatpush1.bf16.msra.mxu1 %v5957_v34  ;;  %v6953_v33 = vsub.s32 1, %v6941_v28  ;;  %v6956_v34 = vsub.s32 3, %v6941_v28 }
 0x13f   :  { %1651 = vmatprep.subr.bf16.mxu0 %v5962_v35  ;;  %1823 = vmatprep.subr.bf16.mxu1 %v5965_v36  ;;  %v377_v35 = vrot.slane %v372_v32, %v6944_v29  ;;  %v385_v36 = vrot.slane %v372_v32, %v6947_v31 }
 0x142   :  { %1652 = vmatpush1.bf16.msra.mxu0 %v5960_v37  ;;  %1824 = vmatpush1.bf16.msra.mxu1 %v5963_v38  ;;  %v381_v37 = vrot.slane %v372_v32, %v6953_v33  ;;  %v389_v38 = vrot.slane %v372_v32, %v6956_v34  ;;  %v6068_v32 = vld [vmem:[#allocation10 + $0x1c0] ss:$8 sps:$4 sm:$0xff]  }
 0x143   :  { %1653 = vmatprep.subr.bf16.mxu0 %v5968_v39  ;;  %1825 = vmatprep.subr.bf16.mxu1 %v5971_v40 }
 0x146   :  { %1654 = vmatpush1.bf16.msra.mxu0 %v5966_v41  ;;  %1826 = vmatpush1.bf16.msra.mxu1 %v5969_v42 }
 0x147   :  { %1655 = vmatprep.subr.bf16.mxu0 %v5974_v43  ;;  %1827 = vmatprep.subr.bf16.mxu1 %v5977_v44 }
 0x14a   :  { %1656 = vmatpush1.bf16.msra.mxu0 %v5972_v45  ;;  %1828 = vmatpush1.bf16.msra.mxu1 %v5975_v46 }
 0x14b   :  { %1657 = vmatprep.subr.bf16.mxu0 %v5980_v47  ;;  %1829 = vmatprep.subr.bf16.mxu1 %v5983_v48 }
 0x14e   :  { %1658 = vmatpush1.bf16.msra.mxu0 %v5978_v49  ;;  %1830 = vmatpush1.bf16.msra.mxu1 %v5981_v50 }
 0x14f   :  { %2266 = vmatprep.subr.bf16.mxu0 %v5986_v53  ;;  %2577 = vmatprep.subr.bf16.mxu1 %v6082_v24  ;;  %v6067_v24 = vld [vmem:[#allocation10 + $0x1b4] ss:$8 sps:$4 sm:$0xff]  }
 0x151   :  { %1676 = vmatmul.mubr.bf16.vlgmr.msra.gmra.mrb[0].mxu0 %v147_v55  ;;  %1848 = vmatmul.mubr.bf16.vlgmr.msra.gmra.mrb[0].mxu1 %v147_v55 }
 0x152   :  { %2267 = vmatpush1.bf16.msra.mxu0 %v5984_v54  ;;  %2609 = vmatprep.mubr.bf16.mxu1 %v6774_v30 }
 0x153   :  { %2268 = vmatprep.subr.bf16.mxu0 %v5989_v56  ;;  %2578 = vmatpush1.bf16.msra.mxu1 %v6080_v23  ;;  %v6062_v23 = vld [vmem:[#allocation10 + $0x1a0] ss:$8 sps:$4 sm:$0xff]  }
 0x154   :  { %2579 = vmatprep.subr.bf16.mxu1 %v6085_v25  ;;  %v6065_v25 = vld [vmem:[#allocation10 + $0x1b0] ss:$8 sps:$4 sm:$0xff]  }
 0x156   :  { %2269 = vmatpush1.bf16.msra.mxu0 %v5987_v57 }
 0x157   :  { %2270 = vmatprep.subr.bf16.mxu0 %v5992_v58  ;;  %2580 = vmatpush1.bf16.msra.mxu1 %v6083_v26  ;;  %v6070_v26 = vld [vmem:[#allocation10 + $0x1c4] ss:$8 sps:$4 sm:$0xff]  }
 0x15a   :  { %2271 = vmatpush1.bf16.msra.mxu0 %v5990_v59 }
 0x15b   :  { %2272 = vmatprep.subr.bf16.mxu0 %v5995_v60 }
 0x15e   :  { %2273 = vmatpush1.bf16.msra.mxu0 %v5993_v61 }
 0x15f   :  { %2274 = vmatprep.subr.bf16.mxu0 %v5998_v62 }
 0x162   :  { %2275 = vmatpush1.bf16.msra.mxu0 %v5996_v63 }
 0x163   :  { %2276 = vmatprep.subr.bf16.mxu0 %v6001_v0 }
 0x166   :  { %2277 = vmatpush1.bf16.msra.mxu0 %v5999_v1 }
 0x167   :  { %2278 = vmatprep.subr.bf16.mxu0 %v6004_v2 }
 0x16a   :  { %2279 = vmatpush1.bf16.msra.mxu0 %v6002_v3  ;;  %v6032_v3 = vld [vmem:[#allocation10 + $0x100] ss:$8 sps:$4 sm:$0xff]  }
 0x16b   :  { %2280 = vmatprep.subr.bf16.mxu0 %v6007_v4  ;;  %v6037_v4 = vld [vmem:[#allocation10 + $0x114] ss:$8 sps:$4 sm:$0xff]  }
 0x16e   :  { %2281 = vmatpush1.bf16.msra.mxu0 %v6005_v5  ;;  %v6035_v5 = vld [vmem:[#allocation10 + $0x110] ss:$8 sps:$4 sm:$0xff]  }
 0x16f   :  { %2282 = vmatprep.subr.bf16.mxu0 %v6010_v6  ;;  %v6040_v6 = vld [vmem:[#allocation10 + $0x124] ss:$8 sps:$4 sm:$0xff]  }
 0x172   :  { %2283 = vmatpush1.bf16.msra.mxu0 %v6008_v7  ;;  %v6038_v7 = vld [vmem:[#allocation10 + $0x120] ss:$8 sps:$4 sm:$0xff]  }
 0x173   :  { %2284 = vmatprep.subr.bf16.mxu0 %v6013_v8  ;;  %v6043_v8 = vld [vmem:[#allocation10 + $0x134] ss:$8 sps:$4 sm:$0xff]  }
 0x176   :  { %2285 = vmatpush1.bf16.msra.mxu0 %v6011_v9  ;;  %v6041_v9 = vld [vmem:[#allocation10 + $0x130] ss:$8 sps:$4 sm:$0xff]  }
 0x177   :  { %2286 = vmatprep.subr.bf16.mxu0 %v6016_v10  ;;  %v6046_v10 = vld [vmem:[#allocation10 + $0x144] ss:$8 sps:$4 sm:$0xff]  }
 0x17a   :  { %2287 = vmatpush1.bf16.msra.mxu0 %v6014_v11  ;;  %v6044_v11 = vld [vmem:[#allocation10 + $0x140] ss:$8 sps:$4 sm:$0xff]  }
 0x17b   :  { %2288 = vmatprep.subr.bf16.mxu0 %v6019_v12  ;;  %v6049_v12 = vld [vmem:[#allocation10 + $0x154] ss:$8 sps:$4 sm:$0xff]  }
 0x17e   :  { %2289 = vmatpush1.bf16.msra.mxu0 %v6017_v13  ;;  %v6047_v13 = vld [vmem:[#allocation10 + $0x150] ss:$8 sps:$4 sm:$0xff]  }
 0x17f   :  { %2290 = vmatprep.subr.bf16.mxu0 %v6022_v14  ;;  %v6052_v14 = vld [vmem:[#allocation10 + $0x164] ss:$8 sps:$4 sm:$0xff]  }
 0x182   :  { %2291 = vmatpush1.bf16.msra.mxu0 %v6020_v15  ;;  %v6050_v15 = vld [vmem:[#allocation10 + $0x160] ss:$8 sps:$4 sm:$0xff]  }
 0x183   :  { %2292 = vmatprep.subr.bf16.mxu0 %v6025_v16  ;;  %v6055_v16 = vld [vmem:[#allocation10 + $0x174] ss:$8 sps:$4 sm:$0xff]  }
 0x186   :  { %2293 = vmatpush1.bf16.msra.mxu0 %v6023_v17  ;;  %v6053_v17 = vld [vmem:[#allocation10 + $0x170] ss:$8 sps:$4 sm:$0xff]  }
 0x187   :  { %2294 = vmatprep.subr.bf16.mxu0 %v6028_v18  ;;  %v6058_v18 = vld [vmem:[#allocation10 + $0x184] ss:$8 sps:$4 sm:$0xff]  }
 0x18a   :  { %2295 = vmatpush1.bf16.msra.mxu0 %v6026_v19  ;;  %v6056_v19 = vld [vmem:[#allocation10 + $0x180] ss:$8 sps:$4 sm:$0xff]  }
 0x18b   :  { %2296 = vmatprep.subr.bf16.mxu0 %v6031_v20  ;;  %v6061_v20 = vld [vmem:[#allocation10 + $0x194] ss:$8 sps:$4 sm:$0xff]  }
 0x18e   :  { %2297 = vmatpush1.bf16.msra.mxu0 %v6029_v21  ;;  %v6059_v21 = vld [vmem:[#allocation10 + $0x190] ss:$8 sps:$4 sm:$0xff]  }
 0x18f   :  { %2309 = vmatprep.subr.bf16.mxu0 %v6034_v22  ;;  %v6064_v22 = vld [vmem:[#allocation10 + $0x1a4] ss:$8 sps:$4 sm:$0xff]  }
 0x224   :  { %v1677_v39 = vpop.f32.mrb[0].mxu0  ;;  %v1849_v40 = vpop.f32.mrb[0].mxu1 }
 0x225   :  { %v5563_v41 = vadd.f32 %v1677_v39, %v377_v35  ;;  %v5567_v42 = vadd.f32 %v1849_v40, %v385_v36  ;;  %v1679_v43 = vpop.f32.mrb[1].mxu0  ;;  %v1851_v44 = vpop.f32.mrb[1].mxu1  ;;  %v6079_v39 = vld [vmem:[#allocation10 + $0x1f4] ss:$8 sps:$4 sm:$0xff]   ;;  %v6077_v40 = vld [vmem:[#allocation10 + $0x1f0] ss:$8 sps:$4 sm:$0xff]  }
 0x226   :  { %v5564_v45 = vadd.f32 %v1679_v43, %v381_v37  ;;  %v5568_v46 = vadd.f32 %v1851_v44, %v389_v38  ;;  %v1681_v47 = vpop.f32.mrb[2].mxu0  ;;  %v1853_v48 = vpop.f32.mrb[2].mxu1  ;;  %v6091_v43 = vld [vmem:[#allocation12 + $0x64] ss:$16 sps:$4 sm:$0xff]   ;;  %v6089_v44 = vld [vmem:[#allocation12 + $0x60] ss:$16 sps:$4 sm:$0xff]  }
 0x227   :  { %v5565_v49 = vadd.f32 %v1681_v47, %v377_v35  ;;  %v5569_v50 = vadd.f32 %v1853_v48, %v385_v36  ;;  %v1683_v51 = vpop.f32.mrb[3].mxu0  ;;  %v1855_v52 = vpop.f32.mrb[3].mxu1  ;;  %v1858_v55 = vmax.f32 %v5563_v41, 0.0  ;;  %v1860_v56 = vmax.f32 %v5567_v42, 0.0  ;;  %v6073_v35 = vld [vmem:[#allocation10 + $0x1d4] ss:$8 sps:$4 sm:$0xff]  }
 0x228   :  { %v5566_v53 = vadd.f32 %v1683_v51, %v381_v37  ;;  %v5570_v54 = vadd.f32 %v1855_v52, %v389_v38  ;;  %v1859_v59 = vmax.f32 %v5564_v45, 0.0  ;;  %v1861_v60 = vmax.f32 %v5568_v46, 0.0  ;;  %v6071_v36 = vld [vmem:[#allocation10 + $0x1d0] ss:$8 sps:$4 sm:$0xff]   ;;  %v6076_v37 = vld [vmem:[#allocation10 + $0x1e4] ss:$8 sps:$4 sm:$0xff]  }
 0x229   :  { %v1862_v57 = vmax.f32 %v5565_v49, 0.0  ;;  %v1864_v58 = vmax.f32 %v5569_v50, 0.0  ;;  %v6074_v38 = vld [vmem:[#allocation10 + $0x1e0] ss:$8 sps:$4 sm:$0xff]   ;;  %v6088_v41 = vld [vmem:[#allocation12 + $0x44] ss:$16 sps:$4 sm:$0xff]  }
 0x22a   :  { %v1863_v61 = vmax.f32 %v5566_v53, 0.0  ;;  %v1865_v62 = vmax.f32 %v5570_v54, 0.0  ;;  %v6086_v42 = vld [vmem:[#allocation12 + $0x40] ss:$16 sps:$4 sm:$0xff]   ;;  %2581 = vmatprep.subr.bf16.mxu1 %v6088_v41  ;;  %v6094_v45 = vld [vmem:[#allocation12 + $0x84] ss:$16 sps:$4 sm:$0xff]  }
 0x22b   :  { %v1866_v63 = vpack.c.bf16 %v1862_v57, %v1858_v55  ;;  %v6962_v0 = vpack.c.bf16 %v1864_v58, %v1860_v56  ;;  %2582 = vmatpush1.bf16.msra.mxu1 %v6086_v42  ;;  %v6092_v46 = vld [vmem:[#allocation12 + $0x80] ss:$16 sps:$4 sm:$0xff]   ;;  %v6097_v47 = vld [vmem:[#allocation12 + $0xa4] ss:$16 sps:$4 sm:$0xff]   ;;  %v6106_v53 = vld [vmem:[#allocation12 + $0xc] ss:$16 sps:$4 sm:$0xff]  }
 0x22c   :  { %v1867_v1 = vpack.c.bf16 %v1863_v61, %v1859_v59  ;;  %v1869_v2 = vpack.c.bf16 %v1865_v62, %v1861_v60  ;;  %2583 = vmatprep.subr.bf16.mxu1 %v6091_v43  ;;  %v6095_v48 = vld [vmem:[#allocation12 + $0xa0] ss:$16 sps:$4 sm:$0xff]   ;;  %v6100_v49 = vld [vmem:[#allocation12 + $0xc4] ss:$16 sps:$4 sm:$0xff]   ;;  %v6133_v42 = vld [vmem:[#allocation13 + $0xc] ss:$28 sps:$4 sm:$0xff]  }
 0x22d   :  { %v6098_v50 = vld [vmem:[#allocation12 + $0xc0] ss:$16 sps:$4 sm:$0xff]   ;;  %v6103_v51 = vld [vmem:[#allocation12 + $0xe4] ss:$16 sps:$4 sm:$0xff]  }
 0x22e   :  { %2298 = vmatprep.mubr.bf16.mxu0 %v1867_v1  ;;  %v6101_v52 = vld [vmem:[#allocation12 + $0xe0] ss:$16 sps:$4 sm:$0xff]   ;;  %v6131_v41 = vld [vmem:[#allocation13 + $0x8] ss:$28 sps:$4 sm:$0xff]  }
 0x22f   :  { %2299 = vmatmul.mubr.bf16.vlgmr.msra.gmra.mrb[4].mxu0 %v1866_v63  ;;  %2584 = vmatpush1.bf16.msra.mxu1 %v6089_v44  ;;  %v1934_v54 = vld [vmem:[%s7354_s6] sm:$0x3]  ;;  %v6119_v44 = vld [vmem:[#allocation12 + $0xa8] ss:$16 sps:$4 sm:$0xff]  }
 0x230   :  { %2310 = vmatpush1.bf16.msra.mxu0 %v6032_v3  ;;  %2341 = vmatprep.mubr.bf16.mxu0 %v1869_v2  ;;  %v1939_v55 = vrot.slane %v1934_v54, %v6944_v29  ;;  %v1943_v56 = vrot.slane %v1934_v54, %v6953_v33  ;;  %v6139_v43 = vld [vmem:[#allocation13 + $0x44] ss:$28 sps:$4 sm:$0xff]   ;;  %v6157_v54 = vld [vmem:[#allocation13 + $0xec] ss:$28 sps:$4 sm:$0xff]  }
 0x231   :  { %2311 = vmatprep.subr.bf16.mxu0 %v6037_v4  ;;  %2585 = vmatprep.subr.bf16.mxu1 %v6094_v45  ;;  %v6137_v45 = vld [vmem:[#allocation13 + $0x40] ss:$28 sps:$4 sm:$0xff]  }
 0x233   :  { %2586 = vmatpush1.bf16.msra.mxu1 %v6092_v46  ;;  %v6145_v46 = vld [vmem:[#allocation13 + $0x7c] ss:$28 sps:$4 sm:$0xff]  }
 0x234   :  { %2312 = vmatpush1.bf16.msra.mxu0 %v6035_v5  ;;  %2587 = vmatprep.subr.bf16.mxu1 %v6097_v47  ;;  %v6122_v47 = vld [vmem:[#allocation12 + $0xc8] ss:$16 sps:$4 sm:$0xff]  }
 0x235   :  { %2313 = vmatprep.subr.bf16.mxu0 %v6040_v6 }
 0x237   :  { %2588 = vmatpush1.bf16.msra.mxu1 %v6095_v48  ;;  %v6127_v48 = vld [vmem:[#allocation12 + $0xec] ss:$16 sps:$4 sm:$0xff]  }
 0x238   :  { %2314 = vmatpush1.bf16.msra.mxu0 %v6038_v7  ;;  %2589 = vmatprep.subr.bf16.mxu1 %v6100_v49  ;;  %v6143_v49 = vld [vmem:[#allocation13 + $0x78] ss:$28 sps:$4 sm:$0xff]  }
 0x239   :  { %2315 = vmatprep.subr.bf16.mxu0 %v6043_v8 }
 0x23b   :  { %2590 = vmatpush1.bf16.msra.mxu1 %v6098_v50  ;;  %v6151_v50 = vld [vmem:[#allocation13 + $0xb4] ss:$28 sps:$4 sm:$0xff]  }
 0x23c   :  { %2316 = vmatpush1.bf16.msra.mxu0 %v6041_v9  ;;  %2591 = vmatprep.subr.bf16.mxu1 %v6103_v51  ;;  %v6125_v51 = vld [vmem:[#allocation12 + $0xe8] ss:$16 sps:$4 sm:$0xff]  }
 0x23d   :  { %2317 = vmatprep.subr.bf16.mxu0 %v6046_v10 }
 0x23f   :  { %2592 = vmatpush1.bf16.msra.mxu1 %v6101_v52  ;;  %v6130_v52 = vld [vmem:[#allocation13 + $0x4] ss:$28 sps:$4 sm:$0xff]  }
 0x240   :  { %2318 = vmatpush1.bf16.msra.mxu0 %v6044_v11  ;;  %2620 = vmatprep.subr.bf16.mxu1 %v6106_v53  ;;  %v139_v11 = vld [vmem:[#allocation7] sm:$0xff] }
 0x241   :  { %2319 = vmatprep.subr.bf16.mxu0 %v6049_v12  ;;  %v6149_v53 = vld [vmem:[#allocation13 + $0xb0] ss:$28 sps:$4 sm:$0xff]  }
 0x244   :  { %2320 = vmatpush1.bf16.msra.mxu0 %v6047_v13  ;;  %v140_v13 = vld [vmem:[#allocation7 + $0x8] sm:$0xff] }
 0x245   :  { %2321 = vmatprep.subr.bf16.mxu0 %v6052_v14 }
 0x248   :  { %2322 = vmatpush1.bf16.msra.mxu0 %v6050_v15 }
 0x249   :  { %2323 = vmatprep.subr.bf16.mxu0 %v6055_v16 }
 0x24c   :  { %2324 = vmatpush1.bf16.msra.mxu0 %v6053_v17 }
 0x24d   :  { %2325 = vmatprep.subr.bf16.mxu0 %v6058_v18 }
 0x250   :  { %2326 = vmatpush1.bf16.msra.mxu0 %v6056_v19 }
 0x251   :  { %2327 = vmatprep.subr.bf16.mxu0 %v6061_v20 }
 0x254   :  { %2328 = vmatpush1.bf16.msra.mxu0 %v6059_v21 }
 0x255   :  { %2329 = vmatprep.subr.bf16.mxu0 %v6064_v22 }
 0x258   :  { %2330 = vmatpush1.bf16.msra.mxu0 %v6062_v23  ;;  %v6104_v23 = vld [vmem:[#allocation12 + $0x8] ss:$16 sps:$4 sm:$0xff]  }
 0x259   :  { %2331 = vmatprep.subr.bf16.mxu0 %v6067_v24 }
 0x25c   :  { %2332 = vmatpush1.bf16.msra.mxu0 %v6065_v25  ;;  %v6109_v25 = vld [vmem:[#allocation12 + $0x2c] ss:$16 sps:$4 sm:$0xff]  }
 0x25d   :  { %2333 = vmatprep.subr.bf16.mxu0 %v6070_v26  ;;  %v6107_v26 = vld [vmem:[#allocation12 + $0x28] ss:$16 sps:$4 sm:$0xff]  }
 0x260   :  { %2334 = vmatpush1.bf16.msra.mxu0 %v6068_v32  ;;  %v6112_v32 = vld [vmem:[#allocation12 + $0x4c] ss:$16 sps:$4 sm:$0xff]  }
 0x261   :  { %2335 = vmatprep.subr.bf16.mxu0 %v6073_v35  ;;  %v6110_v35 = vld [vmem:[#allocation12 + $0x48] ss:$16 sps:$4 sm:$0xff]  }
 0x264   :  { %2336 = vmatpush1.bf16.msra.mxu0 %v6071_v36  ;;  %v6115_v36 = vld [vmem:[#allocation12 + $0x6c] ss:$16 sps:$4 sm:$0xff]  }
 0x265   :  { %2337 = vmatprep.subr.bf16.mxu0 %v6076_v37  ;;  %v6113_v37 = vld [vmem:[#allocation12 + $0x68] ss:$16 sps:$4 sm:$0xff]  }
 0x268   :  { %2338 = vmatpush1.bf16.msra.mxu0 %v6074_v38  ;;  %v6118_v38 = vld [vmem:[#allocation12 + $0x8c] ss:$16 sps:$4 sm:$0xff]  }
 0x269   :  { %2339 = vmatprep.subr.bf16.mxu0 %v6079_v39  ;;  %v6116_v39 = vld [vmem:[#allocation12 + $0x88] ss:$16 sps:$4 sm:$0xff]  }
 0x26c   :  { %2340 = vmatpush1.bf16.msra.mxu0 %v6077_v40  ;;  %v6121_v40 = vld [vmem:[#allocation12 + $0xac] ss:$16 sps:$4 sm:$0xff]  }
 0x26d   :  { %4206 = vmatprep.subr.bf16.mxu0 %v6133_v42  ;;  %v6208_v42 = vld [vmem:[#allocation13 + $0x2dc] ss:$28 sps:$4 sm:$0xff]  }
 0x26f   :  { %2342 = vmatmul.mubr.bf16.vlgmr.msra.gmra.mrb[4].mxu0 %v6962_v0 }
 0x270   :  { %4207 = vmatpush1.bf16.msra.mxu0 %v6131_v41  ;;  %v6200_v41 = vld [vmem:[#allocation13 + $0x2a0] ss:$28 sps:$4 sm:$0xff]  }
 0x271   :  { %4208 = vmatprep.subr.bf16.mxu0 %v6139_v43  ;;  %v6206_v43 = vld [vmem:[#allocation13 + $0x2d8] ss:$28 sps:$4 sm:$0xff]  }
 0x274   :  { %4209 = vmatpush1.bf16.msra.mxu0 %v6137_v45  ;;  %v6212_v45 = vld [vmem:[#allocation13 + $0x310] ss:$28 sps:$4 sm:$0xff]  }
 0x275   :  { %4210 = vmatprep.subr.bf16.mxu0 %v6145_v46  ;;  %v6215_v46 = vld [vmem:[#allocation13 + $0x318] ss:$28 sps:$4 sm:$0xff]  }
 0x278   :  { %4211 = vmatpush1.bf16.msra.mxu0 %v6143_v49  ;;  %v6218_v49 = vld [vmem:[#allocation13 + $0x348] ss:$28 sps:$4 sm:$0xff]  }
 0x279   :  { %4212 = vmatprep.subr.bf16.mxu0 %v6151_v50  ;;  %v6221_v50 = vld [vmem:[#allocation13 + $0x350] ss:$28 sps:$4 sm:$0xff]  }
 0x27c   :  { %4213 = vmatpush1.bf16.msra.mxu0 %v6149_v53  ;;  %v6974_v53 = vld [vmem:[%s7356_s8] sm:$0xf] }
 0x27d   :  { %4214 = vmatprep.subr.bf16.mxu0 %v6157_v54  ;;  %v2400_v54 = vrot.slane %v6974_v53, %v6944_v29 }
 0x342   :  { %v2343_v57 = vpop.f32.mrb[4].mxu0 }
 0x343   :  { %v5571_v58 = vadd.f32 %v2343_v57, %v1939_v55  ;;  %v2345_v59 = vpop.f32.mrb[5].mxu0  ;;  %v6155_v57 = vld [vmem:[#allocation13 + $0xe8] ss:$28 sps:$4 sm:$0xff]  }
 0x344   :  { %v5572_v60 = vadd.f32 %v2345_v59, %v1943_v56  ;;  %v2347_v61 = vpop.f32.mrb[6].mxu0  ;;  %v6134_v59 = vld [vmem:[#allocation13 + $0x38] ss:$28 sps:$4 sm:$0xff]   ;;  %4215 = vmatpush1.bf16.msra.mxu0 %v6155_v57 }
 0x345   :  { %v4859_v62 = vmul.f32 %v5571_v58, %v5571_v58  ;;  %v5573_v63 = vadd.f32 %v2347_v61, %v1939_v55  ;;  %v2349_v0 = vpop.f32.mrb[7].mxu0  ;;  %v6128_v55 = vld [vmem:[#allocation13] ss:$28 sps:$4 sm:$0xff]  }
 0x346   :  { %v2352_v1 = vmul.f32 0.5, %v5572_v60  ;;  %v4857_v2 = vadd.f32 1.0, %v5572_v60  ;;  %v5574_v3 = vadd.f32 %v2349_v0, %v1943_v56  ;;  %v6136_v56 = vld [vmem:[#allocation13 + $0x3c] ss:$28 sps:$4 sm:$0xff]   ;;  %v6142_v60 = vld [vmem:[#allocation13 + $0x74] ss:$28 sps:$4 sm:$0xff]  }
 0x347   :  { %v4860_v4 = vmul.f32 %v5573_v63, %v5573_v63  ;;  %v6161_v61 = vld [vmem:[#allocation13 + $0x120] ss:$28 sps:$4 sm:$0xff]   ;;  %v6148_v0 = vld [vmem:[#allocation13 + $0xac] ss:$28 sps:$4 sm:$0xff]  }
 0x348   :  { %v2354_v5 = vmul.f32 1.442695, %v2352_v1  ;;  %v2353_v6 = vmul.f32 0.5, %v5574_v3  ;;  %v4858_v7 = vadd.f32 1.0, %v5574_v3  ;;  %v4861_v8 = vsub.f32 %v4857_v2, %v4859_v62  ;;  %v6169_v62 = vld [vmem:[#allocation13 + $0x15c] ss:$28 sps:$4 sm:$0xff]  }
 0x349   :  { %v6167_v1 = vld [vmem:[#allocation13 + $0x158] ss:$28 sps:$4 sm:$0xff]   ;;  %v6146_v3 = vld [vmem:[#allocation13 + $0xa8] ss:$28 sps:$4 sm:$0xff]  }
 0x34a   :  { %6448 = vpow2.f32 %v2354_v5  ;;  %v2356_v9 = vmul.f32 1.442695, %v2353_v6  ;;  %v4862_v10 = vsub.f32 %v4858_v7, %v4860_v4  ;;  %v6175_v2 = vld [vmem:[#allocation13 + $0x194] ss:$28 sps:$4 sm:$0xff]   ;;  %v6154_v4 = vld [vmem:[#allocation13 + $0xe4] ss:$28 sps:$4 sm:$0xff]  }
 0x34b   :  { %v6173_v5 = vld [vmem:[#allocation13 + $0x190] ss:$28 sps:$4 sm:$0xff]   ;;  %v6152_v7 = vld [vmem:[#allocation13 + $0xe0] ss:$28 sps:$4 sm:$0xff]  }
 0x34c   :  { %6450 = vpow2.f32 %v2356_v9  ;;  %v6181_v6 = vld [vmem:[#allocation13 + $0x1cc] ss:$28 sps:$4 sm:$0xff]  }
 0x34d   :  { %v6179_v9 = vld [vmem:[#allocation13 + $0x1c8] ss:$28 sps:$4 sm:$0xff]  }
 0x354   :  { %v6449_v12 = vpop.eup %6448 }
 0x355   :  { %v4863_v14 = vmul.f32 %v6449_v12, %v6449_v12  ;;  %v2358_v15 = vmul.f32 %v6449_v12, %v139_v11  ;;  %v6158_v11 = vld [vmem:[#allocation13 + $0x118] ss:$28 sps:$4 sm:$0xff]  }
 0x356   :  { %v6451_v16 = vpop.eup %6450  ;;  %v6166_v12 = vld [vmem:[#allocation13 + $0x154] ss:$28 sps:$4 sm:$0xff]  }
 0x357   :  { %v4865_v17 = vsub.f32 %v4861_v8, %v4863_v14  ;;  %v4864_v18 = vmul.f32 %v6451_v16, %v6451_v16  ;;  %v2359_v19 = vmul.f32 %v6451_v16, %v140_v13  ;;  %v2360_v20 = vadd.f32 %v5571_v58, %v2358_v15  ;;  %v6163_v58 = vld [vmem:[#allocation13 + $0x124] ss:$28 sps:$4 sm:$0xff]   ;;  %v6160_v8 = vld [vmem:[#allocation13 + $0x11c] ss:$28 sps:$4 sm:$0xff]   ;;  %v6164_v15 = vld [vmem:[#allocation13 + $0x150] ss:$28 sps:$4 sm:$0xff]  }
 0x358   :  { %4216 = vmatprep.subr.bf16.mxu0 %v6163_v58  ;;  %v6185_v13 = vld [vmem:[#allocation13 + $0x200] ss:$28 sps:$4 sm:$0xff]   ;;  %v6172_v16 = vld [vmem:[#allocation13 + $0x18c] ss:$28 sps:$4 sm:$0xff]  }
 0x359   :  { %4867 = vadd.xlane.f32.xlu1 %v4865_v17  ;;  %v4866_v21 = vsub.f32 %v4862_v10, %v4864_v18  ;;  %v2361_v22 = vadd.f32 %v5573_v63, %v2359_v19  ;;  %4921 = vst [vmem:[#allocation18] sm:$0xff] %v2360_v20  ;;  %v6140_v63 = vld [vmem:[#allocation13 + $0x70] ss:$28 sps:$4 sm:$0xff]   ;;  %4217 = vmatpush1.bf16.msra.mxu0 %v6161_v61  ;;  %v6187_v10 = vld [vmem:[#allocation13 + $0x204] ss:$28 sps:$4 sm:$0xff]  }
 0x35a   :  { %4218 = vmatprep.subr.bf16.mxu0 %v6169_v62  ;;  %v6193_v14 = vld [vmem:[#allocation13 + $0x23c] ss:$28 sps:$4 sm:$0xff]   ;;  %v6199_v18 = vld [vmem:[#allocation13 + $0x274] ss:$28 sps:$4 sm:$0xff]   ;;  %v6170_v19 = vld [vmem:[#allocation13 + $0x188] ss:$28 sps:$4 sm:$0xff]  }
 0x35b   :  { %v2362_v24 = vpack.c.bf16 %v2361_v22, %v2360_v20  ;;  %4922 = vst [vmem:[#allocation18 + $0x8] sm:$0xff] %v2361_v22  ;;  %v6191_v17 = vld [vmem:[#allocation13 + $0x238] ss:$28 sps:$4 sm:$0xff]   ;;  %v6178_v20 = vld [vmem:[#allocation13 + $0x1c4] ss:$28 sps:$4 sm:$0xff]  }
 0x35c   :  { %v6205_v22 = vld [vmem:[#allocation13 + $0x2ac] ss:$28 sps:$4 sm:$0xff]  }
 0x35d   :  { %4869 = vadd.xlane.f32.xlu1 %v4866_v21  ;;  %2610 = vmatmul.mubr.bf16.vlgmr.msra.gmra.mrb[4].mxu1 %v2362_v24  ;;  %v6197_v21 = vld [vmem:[#allocation13 + $0x270] ss:$28 sps:$4 sm:$0xff]  }
 0x35e   :  { %2621 = vmatpush1.bf16.msra.mxu1 %v6104_v23  ;;  %2652 = vmatprep.mubr.bf16.mxu1 %v6774_v30  ;;  %v6124_v30 = vld [vmem:[#allocation12 + $0xcc] ss:$16 sps:$4 sm:$0xff]  }
 0x35f   :  { %2622 = vmatprep.subr.bf16.mxu1 %v6109_v25  ;;  %4219 = vmatpush1.bf16.msra.mxu0 %v6167_v1  ;;  %v6176_v23 = vld [vmem:[#allocation13 + $0x1c0] ss:$28 sps:$4 sm:$0xff]   ;;  %v6203_v25 = vld [vmem:[#allocation13 + $0x2a8] ss:$28 sps:$4 sm:$0xff]  }
 0x360   :  { %4220 = vmatprep.subr.bf16.mxu0 %v6175_v2 }
 0x362   :  { %2623 = vmatpush1.bf16.msra.mxu1 %v6107_v26  ;;  %v6211_v26 = vld [vmem:[#allocation13 + $0x2e4] ss:$28 sps:$4 sm:$0xff]  }
 0x363   :  { %2624 = vmatprep.subr.bf16.mxu1 %v6112_v32  ;;  %4221 = vmatpush1.bf16.msra.mxu0 %v6173_v5  ;;  %v6182_v32 = vld [vmem:[#allocation13 + $0x1f8] ss:$28 sps:$4 sm:$0xff]  }
 0x364   :  { %4222 = vmatprep.subr.bf16.mxu0 %v6181_v6  ;;  %v6224_v6 = vld [vmem:[#allocation13 + $0x380] ss:$28 sps:$4 sm:$0xff]  }
 0x366   :  { %2625 = vmatpush1.bf16.msra.mxu1 %v6110_v35  ;;  %v6190_v35 = vld [vmem:[#allocation13 + $0x234] ss:$28 sps:$4 sm:$0xff]  }
 0x367   :  { %2626 = vmatprep.subr.bf16.mxu1 %v6115_v36  ;;  %4223 = vmatpush1.bf16.msra.mxu0 %v6179_v9  ;;  %v6209_v36 = vld [vmem:[#allocation13 + $0x2e0] ss:$28 sps:$4 sm:$0xff]  }
 0x368   :  { %4224 = vmatprep.subr.bf16.mxu0 %v6187_v10  ;;  %v6235_v9 = vld [vmem:[#allocation13 + $0x3c4] ss:$28 sps:$4 sm:$0xff]   ;;  %v6230_v10 = vld [vmem:[#allocation13 + $0x3b8] ss:$28 sps:$4 sm:$0xff]  }
 0x36a   :  { %2627 = vmatpush1.bf16.msra.mxu1 %v6113_v37  ;;  %v6188_v37 = vld [vmem:[#allocation13 + $0x230] ss:$28 sps:$4 sm:$0xff]  }
 0x36b   :  { %2628 = vmatprep.subr.bf16.mxu1 %v6118_v38  ;;  %4225 = vmatpush1.bf16.msra.mxu0 %v6185_v13  ;;  %v6196_v38 = vld [vmem:[#allocation13 + $0x26c] ss:$28 sps:$4 sm:$0xff]   ;;  %v6241_v13 = vld [vmem:[#allocation13 + $0x3fc] ss:$28 sps:$4 sm:$0xff]  }
 0x36c   :  { %4226 = vmatprep.subr.bf16.mxu0 %v6193_v14  ;;  %v6236_v14 = vld [vmem:[#allocation13 + $0x3f0] ss:$28 sps:$4 sm:$0xff]  }
 0x36e   :  { %2629 = vmatpush1.bf16.msra.mxu1 %v6116_v39  ;;  %v6194_v39 = vld [vmem:[#allocation13 + $0x268] ss:$28 sps:$4 sm:$0xff]  }
 0x36f   :  { %2630 = vmatprep.subr.bf16.mxu1 %v6121_v40  ;;  %4227 = vmatpush1.bf16.msra.mxu0 %v6191_v17  ;;  %v6202_v40 = vld [vmem:[#allocation13 + $0x2a4] ss:$28 sps:$4 sm:$0xff]   ;;  %v6247_v17 = vld [vmem:[#allocation13 + $0x434] ss:$28 sps:$4 sm:$0xff]  }
 0x370   :  { %4228 = vmatprep.subr.bf16.mxu0 %v6199_v18  ;;  %v6242_v18 = vld [vmem:[#allocation13 + $0x428] ss:$28 sps:$4 sm:$0xff]  }
 0x372   :  { %2631 = vmatpush1.bf16.msra.mxu1 %v6119_v44  ;;  %v6214_v44 = vld [vmem:[#allocation13 + $0x314] ss:$28 sps:$4 sm:$0xff]  }
 0x373   :  { %2632 = vmatprep.subr.bf16.mxu1 %v6124_v30  ;;  %4229 = vmatpush1.bf16.msra.mxu0 %v6197_v21  ;;  %v6217_v30 = vld [vmem:[#allocation13 + $0x31c] ss:$28 sps:$4 sm:$0xff]   ;;  %v6253_v21 = vld [vmem:[#allocation13 + $0x46c] ss:$28 sps:$4 sm:$0xff]  }
 0x374   :  { %4230 = vmatprep.subr.bf16.mxu0 %v6205_v22  ;;  %v6248_v22 = vld [vmem:[#allocation13 + $0x460] ss:$28 sps:$4 sm:$0xff]  }
 0x376   :  { %2633 = vmatpush1.bf16.msra.mxu1 %v6122_v47  ;;  %v6220_v47 = vld [vmem:[#allocation13 + $0x34c] ss:$28 sps:$4 sm:$0xff]  }
 0x377   :  { %2634 = vmatprep.subr.bf16.mxu1 %v6127_v48  ;;  %4231 = vmatpush1.bf16.msra.mxu0 %v6203_v25  ;;  %v6223_v48 = vld [vmem:[#allocation13 + $0x354] ss:$28 sps:$4 sm:$0xff]   ;;  %v6259_v25 = vld [vmem:[#allocation13 + $0x4a4] ss:$28 sps:$4 sm:$0xff]  }
 0x378   :  { %4232 = vmatprep.subr.bf16.mxu0 %v6211_v26  ;;  %v6254_v26 = vld [vmem:[#allocation13 + $0x498] ss:$28 sps:$4 sm:$0xff]  }
 0x37a   :  { %2635 = vmatpush1.bf16.msra.mxu1 %v6125_v51  ;;  %v6226_v51 = vld [vmem:[#allocation13 + $0x384] ss:$28 sps:$4 sm:$0xff]  }
 0x37b   :  { %4120 = vmatprep.subr.bf16.mxu1 %v6130_v52  ;;  %4233 = vmatpush1.bf16.msra.mxu0 %v6209_v36  ;;  %v6229_v52 = vld [vmem:[#allocation13 + $0x38c] ss:$28 sps:$4 sm:$0xff]   ;;  %v6262_v36 = vld [vmem:[#allocation13 + $0x4d4] ss:$28 sps:$4 sm:$0xff]  }
 0x37c   :  { %4234 = vmatprep.subr.bf16.mxu0 %v6217_v30  ;;  %v6271_v30 = vld [vmem:[#allocation13 + $0x514] ss:$28 sps:$4 sm:$0xff]  }
 0x37d   :  { %2653 = vmatmul.mubr.bf16.vlgmr.msra.gmra.mrb[8].mxu1 %v2362_v24  ;;  %v6184_v24 = vld [vmem:[#allocation13 + $0x1fc] ss:$28 sps:$4 sm:$0xff]  }
 0x37e   :  { %4121 = vmatpush1.bf16.msra.mxu1 %v6128_v55  ;;  %v2404_v55 = vrot.slane %v6974_v53, %v6953_v33 }
 0x37f   :  { %4122 = vmatprep.subr.bf16.mxu1 %v6136_v56  ;;  %4235 = vmatpush1.bf16.msra.mxu0 %v6215_v46 }
 0x380   :  { %4236 = vmatprep.subr.bf16.mxu0 %v6223_v48 }
 0x382   :  { %4123 = vmatpush1.bf16.msra.mxu1 %v6134_v59 }
 0x383   :  { %4124 = vmatprep.subr.bf16.mxu1 %v6142_v60  ;;  %4237 = vmatpush1.bf16.msra.mxu0 %v6221_v50  ;;  %v6266_v50 = vld [vmem:[#allocation13 + $0x508] ss:$28 sps:$4 sm:$0xff]  }
 0x384   :  { %4249 = vmatprep.subr.bf16.mxu0 %v6229_v52 }
 0x386   :  { %4125 = vmatpush1.bf16.msra.mxu1 %v6140_v63 }
 0x387   :  { %4126 = vmatprep.subr.bf16.mxu1 %v6148_v0 }
 0x38a   :  { %4127 = vmatpush1.bf16.msra.mxu1 %v6146_v3 }
 0x38b   :  { %4128 = vmatprep.subr.bf16.mxu1 %v6154_v4 }
 0x38e   :  { %4129 = vmatpush1.bf16.msra.mxu1 %v6152_v7  ;;  %v6227_v7 = vld [vmem:[#allocation13 + $0x388] ss:$28 sps:$4 sm:$0xff]  }
 0x38f   :  { %4130 = vmatprep.subr.bf16.mxu1 %v6160_v8  ;;  %v6232_v8 = vld [vmem:[#allocation13 + $0x3bc] ss:$28 sps:$4 sm:$0xff]  }
 0x392   :  { %4131 = vmatpush1.bf16.msra.mxu1 %v6158_v11  ;;  %v6233_v11 = vld [vmem:[#allocation13 + $0x3c0] ss:$28 sps:$4 sm:$0xff]  }
 0x393   :  { %4132 = vmatprep.subr.bf16.mxu1 %v6166_v12  ;;  %v6238_v12 = vld [vmem:[#allocation13 + $0x3f4] ss:$28 sps:$4 sm:$0xff]  }
 0x396   :  { %4133 = vmatpush1.bf16.msra.mxu1 %v6164_v15  ;;  %v6239_v15 = vld [vmem:[#allocation13 + $0x3f8] ss:$28 sps:$4 sm:$0xff]  }
 0x397   :  { %4134 = vmatprep.subr.bf16.mxu1 %v6172_v16  ;;  %v6244_v16 = vld [vmem:[#allocation13 + $0x42c] ss:$28 sps:$4 sm:$0xff]  }
 0x39a   :  { %4135 = vmatpush1.bf16.msra.mxu1 %v6170_v19  ;;  %v6245_v19 = vld [vmem:[#allocation13 + $0x430] ss:$28 sps:$4 sm:$0xff]  }
 0x39b   :  { %4136 = vmatprep.subr.bf16.mxu1 %v6178_v20  ;;  %v6250_v20 = vld [vmem:[#allocation13 + $0x464] ss:$28 sps:$4 sm:$0xff]  }
 0x39e   :  { %4137 = vmatpush1.bf16.msra.mxu1 %v6176_v23  ;;  %v6251_v23 = vld [vmem:[#allocation13 + $0x468] ss:$28 sps:$4 sm:$0xff]  }
 0x39f   :  { %4138 = vmatprep.subr.bf16.mxu1 %v6184_v24  ;;  %v6256_v24 = vld [vmem:[#allocation13 + $0x49c] ss:$28 sps:$4 sm:$0xff]  }
 0x3a2   :  { %4139 = vmatpush1.bf16.msra.mxu1 %v6182_v32  ;;  %v6257_v32 = vld [vmem:[#allocation13 + $0x4a0] ss:$28 sps:$4 sm:$0xff]  }
 0x3a3   :  { %4140 = vmatprep.subr.bf16.mxu1 %v6190_v35  ;;  %v2408_v35 = vrot.slane %v6974_v53, %v6947_v31 }
 0x3a6   :  { %4141 = vmatpush1.bf16.msra.mxu1 %v6188_v37  ;;  %v6265_v37 = vld [vmem:[#allocation13 + $0x4dc] ss:$28 sps:$4 sm:$0xff]  }
 0x3a7   :  { %4142 = vmatprep.subr.bf16.mxu1 %v6196_v38  ;;  %v2412_v38 = vrot.slane %v6974_v53, %v6956_v34 }
 0x3aa   :  { %4143 = vmatpush1.bf16.msra.mxu1 %v6194_v39 }
 0x3ab   :  { %4144 = vmatprep.subr.bf16.mxu1 %v6202_v40  ;;  %v6260_v40 = vld [vmem:[#allocation13 + $0x4d0] ss:$28 sps:$4 sm:$0xff]  }
 0x3ae   :  { %4145 = vmatpush1.bf16.msra.mxu1 %v6200_v41  ;;  %v6263_v41 = vld [vmem:[#allocation13 + $0x4d8] ss:$28 sps:$4 sm:$0xff]  }
 0x3af   :  { %4146 = vmatprep.subr.bf16.mxu1 %v6208_v42 }
 0x3b2   :  { %4147 = vmatpush1.bf16.msra.mxu1 %v6206_v43 }
 0x3b3   :  { %4148 = vmatprep.subr.bf16.mxu1 %v6214_v44  ;;  %v6268_v44 = vld [vmem:[#allocation13 + $0x50c] ss:$28 sps:$4 sm:$0xff]  }
 0x3b6   :  { %4149 = vmatpush1.bf16.msra.mxu1 %v6212_v45 }
 0x3b7   :  { %4150 = vmatprep.subr.bf16.mxu1 %v6220_v47 }
 0x3ba   :  { %4151 = vmatpush1.bf16.msra.mxu1 %v6218_v49 }
 0x3bb   :  { %4163 = vmatprep.subr.bf16.mxu1 %v6226_v51  ;;  %v6269_v51 = vld [vmem:[#allocation13 + $0x510] ss:$28 sps:$4 sm:$0xff]  }
 0x430   :  { %v2611_v56 = vpop.f32.mrb[4].mxu1 }
 0x431   :  { %v2612_v57 = vadd.f32 %v2611_v56, %v2400_v54  ;;  %v2613_v58 = vpop.f32.mrb[5].mxu1 }
 0x432   :  { %v2614_v59 = vadd.f32 %v2613_v58, %v2404_v55  ;;  %v2615_v60 = vpop.f32.mrb[6].mxu1 }
 0x433   :  { %v2616_v61 = vadd.f32 %v2615_v60, %v2400_v54  ;;  %v2617_v62 = vpop.f32.mrb[7].mxu1  ;;  %v2663_v0 = vmax.f32 %v2612_v57, 0.0  ;;  %v6274_v54 = vld [vmem:[#allocation13 + $0x544] ss:$28 sps:$4 sm:$0xff]  }
 0x434   :  { %v2618_v63 = vadd.f32 %v2617_v62, %v2404_v55  ;;  %v2664_v2 = vmax.f32 %v2614_v59, 0.0  ;;  %v6277_v55 = vld [vmem:[#allocation13 + $0x54c] ss:$28 sps:$4 sm:$0xff]   ;;  %v6272_v60 = vld [vmem:[#allocation13 + $0x540] ss:$28 sps:$4 sm:$0xff]  }
 0x435   :  { %v2667_v1 = vmax.f32 %v2616_v61, 0.0  ;;  %v6275_v61 = vld [vmem:[#allocation13 + $0x548] ss:$28 sps:$4 sm:$0xff]   ;;  %v6280_v62 = vld [vmem:[#allocation13 + $0x57c] ss:$28 sps:$4 sm:$0xff]  }
 0x436   :  { %v2668_v3 = vmax.f32 %v2618_v63, 0.0  ;;  %v6283_v63 = vld [vmem:[#allocation13 + $0x584] ss:$28 sps:$4 sm:$0xff]  }
 0x437   :  { %v6980_v4 = vpack.c.bf16 %v2667_v1, %v2663_v0  ;;  %v6278_v0 = vld [vmem:[#allocation13 + $0x578] ss:$28 sps:$4 sm:$0xff]   ;;  %v6281_v1 = vld [vmem:[#allocation13 + $0x580] ss:$28 sps:$4 sm:$0xff]  }
 0x438   :  { %v6982_v5 = vpack.c.bf16 %v2668_v3, %v2664_v2  ;;  %v6286_v2 = vld [vmem:[#allocation13 + $0x5b4] ss:$28 sps:$4 sm:$0xff]   ;;  %v6289_v3 = vld [vmem:[#allocation13 + $0x5bc] ss:$28 sps:$4 sm:$0xff]  }
 0x43a   :  { %4152 = vmatprep.mubr.bf16.mxu1 %v6982_v5  ;;  %4238 = vmatprep.mubr.bf16.mxu0 %v6982_v5 }
 0x43b   :  { %4153 = vmatmul.mubr.bf16.vlgmr.msra.gmra.mrb[12].mxu1 %v6980_v4  ;;  %4239 = vmatmul.mubr.bf16.vlgmr.msra.gmra.mrb[8].mxu0 %v6980_v4 }
 0x43c   :  { %4164 = vmatpush1.bf16.msra.mxu1 %v6224_v6  ;;  %4250 = vmatpush1.bf16.msra.mxu0 %v6227_v7  ;;  %v6284_v6 = vld [vmem:[#allocation13 + $0x5b0] ss:$28 sps:$4 sm:$0xff]   ;;  %v6287_v7 = vld [vmem:[#allocation13 + $0x5b8] ss:$28 sps:$4 sm:$0xff]  }
 0x43d   :  { %4165 = vmatprep.subr.bf16.mxu1 %v6232_v8  ;;  %4251 = vmatprep.subr.bf16.mxu0 %v6235_v9  ;;  %v6292_v8 = vld [vmem:[#allocation13 + $0x5ec] ss:$28 sps:$4 sm:$0xff]   ;;  %v6295_v9 = vld [vmem:[#allocation13 + $0x5f4] ss:$28 sps:$4 sm:$0xff]  }
 0x440   :  { %4166 = vmatpush1.bf16.msra.mxu1 %v6230_v10  ;;  %4252 = vmatpush1.bf16.msra.mxu0 %v6233_v11  ;;  %v6290_v10 = vld [vmem:[#allocation13 + $0x5e8] ss:$28 sps:$4 sm:$0xff]   ;;  %v6293_v11 = vld [vmem:[#allocation13 + $0x5f0] ss:$28 sps:$4 sm:$0xff]  }
 0x441   :  { %4167 = vmatprep.subr.bf16.mxu1 %v6238_v12  ;;  %4253 = vmatprep.subr.bf16.mxu0 %v6241_v13  ;;  %v6298_v12 = vld [vmem:[#allocation13 + $0x624] ss:$28 sps:$4 sm:$0xff]   ;;  %v6301_v13 = vld [vmem:[#allocation13 + $0x62c] ss:$28 sps:$4 sm:$0xff]  }
 0x444   :  { %4168 = vmatpush1.bf16.msra.mxu1 %v6236_v14  ;;  %4254 = vmatpush1.bf16.msra.mxu0 %v6239_v15  ;;  %v6296_v14 = vld [vmem:[#allocation13 + $0x620] ss:$28 sps:$4 sm:$0xff]   ;;  %v6299_v15 = vld [vmem:[#allocation13 + $0x628] ss:$28 sps:$4 sm:$0xff]  }
 0x445   :  { %4169 = vmatprep.subr.bf16.mxu1 %v6244_v16  ;;  %4255 = vmatprep.subr.bf16.mxu0 %v6247_v17  ;;  %v6304_v16 = vld [vmem:[#allocation13 + $0x65c] ss:$28 sps:$4 sm:$0xff]   ;;  %v6307_v17 = vld [vmem:[#allocation13 + $0x664] ss:$28 sps:$4 sm:$0xff]  }
 0x448   :  { %4170 = vmatpush1.bf16.msra.mxu1 %v6242_v18  ;;  %4256 = vmatpush1.bf16.msra.mxu0 %v6245_v19  ;;  %v6302_v18 = vld [vmem:[#allocation13 + $0x658] ss:$28 sps:$4 sm:$0xff]   ;;  %v6305_v19 = vld [vmem:[#allocation13 + $0x660] ss:$28 sps:$4 sm:$0xff]  }
 0x449   :  { %4171 = vmatprep.subr.bf16.mxu1 %v6250_v20  ;;  %4257 = vmatprep.subr.bf16.mxu0 %v6253_v21  ;;  %v6310_v20 = vld [vmem:[#allocation13 + $0x694] ss:$28 sps:$4 sm:$0xff]   ;;  %v6313_v21 = vld [vmem:[#allocation13 + $0x69c] ss:$28 sps:$4 sm:$0xff]  }
 0x44c   :  { %4172 = vmatpush1.bf16.msra.mxu1 %v6248_v22  ;;  %4258 = vmatpush1.bf16.msra.mxu0 %v6251_v23  ;;  %v6308_v22 = vld [vmem:[#allocation13 + $0x690] ss:$28 sps:$4 sm:$0xff]   ;;  %v6311_v23 = vld [vmem:[#allocation13 + $0x698] ss:$28 sps:$4 sm:$0xff]  }
 0x44d   :  { %4173 = vmatprep.subr.bf16.mxu1 %v6256_v24  ;;  %4259 = vmatprep.subr.bf16.mxu0 %v6259_v25  ;;  %v6316_v24 = vld [vmem:[#allocation13 + $0x6cc] ss:$28 sps:$4 sm:$0xff]   ;;  %v6319_v25 = vld [vmem:[#allocation13 + $0x6d4] ss:$28 sps:$4 sm:$0xff]  }
 0x450   :  { %v2654_v39 = vpop.f32.mrb[8].mxu1  ;;  %4174 = vmatpush1.bf16.msra.mxu1 %v6254_v26  ;;  %4260 = vmatpush1.bf16.msra.mxu0 %v6257_v32  ;;  %v6314_v26 = vld [vmem:[#allocation13 + $0x6c8] ss:$28 sps:$4 sm:$0xff]   ;;  %v6317_v32 = vld [vmem:[#allocation13 + $0x6d0] ss:$28 sps:$4 sm:$0xff]  }
 0x451   :  { %v2655_v42 = vadd.f32 %v2654_v39, %v2408_v35  ;;  %v2656_v43 = vpop.f32.mrb[9].mxu1  ;;  %4175 = vmatprep.subr.bf16.mxu1 %v6262_v36  ;;  %4261 = vmatprep.subr.bf16.mxu0 %v6265_v37  ;;  %v6323_v36 = vld [vmem:[#allocation13 + $0x1d8] ss:$28 sps:$4 sm:$0xff]   ;;  %v6320_v37 = vld [vmem:[#allocation13 + $0x10] ss:$28 sps:$4 sm:$0xff]  }
 0x452   :  { %v2657_v45 = vadd.f32 %v2656_v43, %v2412_v38  ;;  %v2658_v46 = vpop.f32.mrb[10].mxu1  ;;  %v6327_v39 = vld [vmem:[#allocation13 + $0x4c] ss:$28 sps:$4 sm:$0xff]   ;;  %v6332_v43 = vld [vmem:[#allocation13 + $0x84] ss:$28 sps:$4 sm:$0xff]  }
 0x453   :  { %v2659_v47 = vadd.f32 %v2658_v46, %v2408_v35  ;;  %v2660_v48 = vpop.f32.mrb[11].mxu1  ;;  %v2665_v52 = vmax.f32 %v2655_v42, 0.0  ;;  %v6322_v35 = vld [vmem:[#allocation13 + $0x14] ss:$28 sps:$4 sm:$0xff]   ;;  %v6337_v46 = vld [vmem:[#allocation13 + $0xbc] ss:$28 sps:$4 sm:$0xff]  }
 0x454   :  { %v2661_v49 = vadd.f32 %v2660_v48, %v2412_v38  ;;  %4176 = vmatpush1.bf16.msra.mxu1 %v6260_v40  ;;  %4262 = vmatpush1.bf16.msra.mxu0 %v6263_v41  ;;  %v2666_v56 = vmax.f32 %v2657_v45, 0.0  ;;  %v6324_v38 = vld [vmem:[#allocation13 + $0x18] ss:$28 sps:$4 sm:$0xff]   ;;  %v6328_v40 = vld [vmem:[#allocation13 + $0x210] ss:$28 sps:$4 sm:$0xff]  }
 0x455   :  { %v2669_v53 = vmax.f32 %v2659_v47, 0.0  ;;  %4177 = vmatprep.subr.bf16.mxu1 %v6268_v44  ;;  %4263 = vmatprep.subr.bf16.mxu0 %v6271_v30  ;;  %v6325_v41 = vld [vmem:[#allocation13 + $0x48] ss:$28 sps:$4 sm:$0xff]   ;;  %v6329_v42 = vld [vmem:[#allocation13 + $0x50] ss:$28 sps:$4 sm:$0xff]  }
 0x456   :  { %v2670_v57 = vmax.f32 %v2661_v49, 0.0  ;;  %v6333_v44 = vld [vmem:[#allocation13 + $0x248] ss:$28 sps:$4 sm:$0xff]   ;;  %v6330_v30 = vld [vmem:[#allocation13 + $0x80] ss:$28 sps:$4 sm:$0xff]  }
 0x457   :  { %v6992_v58 = vpack.c.bf16 %v2669_v53, %v2665_v52  ;;  %v6334_v45 = vld [vmem:[#allocation13 + $0x88] ss:$28 sps:$4 sm:$0xff]   ;;  %v6338_v47 = vld [vmem:[#allocation13 + $0x280] ss:$28 sps:$4 sm:$0xff]   ;;  %v6335_v48 = vld [vmem:[#allocation13 + $0xb8] ss:$28 sps:$4 sm:$0xff]  }
 0x458   :  { %v6994_v59 = vpack.c.bf16 %v2670_v57, %v2666_v56  ;;  %4178 = vmatpush1.bf16.msra.mxu1 %v6266_v50  ;;  %4264 = vmatpush1.bf16.msra.mxu0 %v6269_v51  ;;  %v6339_v49 = vld [vmem:[#allocation13 + $0xc0] ss:$28 sps:$4 sm:$0xff]   ;;  %v6342_v50 = vld [vmem:[#allocation13 + $0xf4] ss:$28 sps:$4 sm:$0xff]   ;;  %v6347_v53 = vld [vmem:[#allocation13 + $0x12c] ss:$28 sps:$4 sm:$0xff]  }
 0x459   :  { %4179 = vmatprep.subr.bf16.mxu1 %v6274_v54  ;;  %4265 = vmatprep.subr.bf16.mxu0 %v6277_v55  ;;  %v6340_v51 = vld [vmem:[#allocation13 + $0xf0] ss:$28 sps:$4 sm:$0xff]   ;;  %v6344_v52 = vld [vmem:[#allocation13 + $0xf8] ss:$28 sps:$4 sm:$0xff]   ;;  %v6345_v55 = vld [vmem:[#allocation13 + $0x128] ss:$28 sps:$4 sm:$0xff]  }
 0x45a   :  { %4195 = vmatprep.mubr.bf16.mxu1 %v6994_v59  ;;  %4281 = vmatprep.mubr.bf16.mxu0 %v6994_v59  ;;  %v6348_v54 = vld [vmem:[#allocation13 + $0x2f0] ss:$28 sps:$4 sm:$0xff]   ;;  %v6352_v57 = vld [vmem:[#allocation13 + $0x164] ss:$28 sps:$4 sm:$0xff]  }
 0x45b   :  { %v6349_v56 = vld [vmem:[#allocation13 + $0x130] ss:$28 sps:$4 sm:$0xff]  }
 0x45c   :  { %4180 = vmatpush1.bf16.msra.mxu1 %v6272_v60  ;;  %4266 = vmatpush1.bf16.msra.mxu0 %v6275_v61  ;;  %v6353_v60 = vld [vmem:[#allocation13 + $0x328] ss:$28 sps:$4 sm:$0xff]   ;;  %v6350_v61 = vld [vmem:[#allocation13 + $0x160] ss:$28 sps:$4 sm:$0xff]  }
 0x45d   :  { %4181 = vmatprep.subr.bf16.mxu1 %v6280_v62  ;;  %4267 = vmatprep.subr.bf16.mxu0 %v6283_v63  ;;  %v6354_v62 = vld [vmem:[#allocation13 + $0x168] ss:$28 sps:$4 sm:$0xff]   ;;  %v6357_v63 = vld [vmem:[#allocation13 + $0x19c] ss:$28 sps:$4 sm:$0xff]  }
 0x460   :  { %4182 = vmatpush1.bf16.msra.mxu1 %v6278_v0  ;;  %4268 = vmatpush1.bf16.msra.mxu0 %v6281_v1  ;;  %v6358_v0 = vld [vmem:[#allocation13 + $0x360] ss:$28 sps:$4 sm:$0xff]   ;;  %v6355_v1 = vld [vmem:[#allocation13 + $0x198] ss:$28 sps:$4 sm:$0xff]  }
 0x461   :  { %4183 = vmatprep.subr.bf16.mxu1 %v6286_v2  ;;  %4269 = vmatprep.subr.bf16.mxu0 %v6289_v3  ;;  %v6359_v2 = vld [vmem:[#allocation13 + $0x1a0] ss:$28 sps:$4 sm:$0xff]   ;;  %v6362_v3 = vld [vmem:[#allocation13 + $0x1d4] ss:$28 sps:$4 sm:$0xff]  }
 0x464   :  { %4184 = vmatpush1.bf16.msra.mxu1 %v6284_v6  ;;  %4270 = vmatpush1.bf16.msra.mxu0 %v6287_v7  ;;  %v6363_v6 = vld [vmem:[#allocation13 + $0x558] ss:$28 sps:$4 sm:$0xff]   ;;  %v6360_v7 = vld [vmem:[#allocation13 + $0x1d0] ss:$28 sps:$4 sm:$0xff]  }
 0x465   :  { %4185 = vmatprep.subr.bf16.mxu1 %v6292_v8  ;;  %4271 = vmatprep.subr.bf16.mxu0 %v6295_v9  ;;  %v6364_v8 = vld [vmem:[#allocation13 + $0x398] ss:$28 sps:$4 sm:$0xff]   ;;  %v6367_v9 = vld [vmem:[#allocation13 + $0x20c] ss:$28 sps:$4 sm:$0xff]  }
 0x468   :  { %4186 = vmatpush1.bf16.msra.mxu1 %v6290_v10  ;;  %4272 = vmatpush1.bf16.msra.mxu0 %v6293_v11  ;;  %v6368_v10 = vld [vmem:[#allocation13 + $0x590] ss:$28 sps:$4 sm:$0xff]   ;;  %v6365_v11 = vld [vmem:[#allocation13 + $0x208] ss:$28 sps:$4 sm:$0xff]  }
 0x469   :  { %4187 = vmatprep.subr.bf16.mxu1 %v6298_v12  ;;  %4273 = vmatprep.subr.bf16.mxu0 %v6301_v13  ;;  %v6369_v12 = vld [vmem:[#allocation13 + $0x3d0] ss:$28 sps:$4 sm:$0xff]   ;;  %v6372_v13 = vld [vmem:[#allocation13 + $0x244] ss:$28 sps:$4 sm:$0xff]  }
 0x46c   :  { %4188 = vmatpush1.bf16.msra.mxu1 %v6296_v14  ;;  %4274 = vmatpush1.bf16.msra.mxu0 %v6299_v15  ;;  %v6373_v14 = vld [vmem:[#allocation13 + $0x5c8] ss:$28 sps:$4 sm:$0xff]   ;;  %v6370_v15 = vld [vmem:[#allocation13 + $0x240] ss:$28 sps:$4 sm:$0xff]  }
 0x46d   :  { %4189 = vmatprep.subr.bf16.mxu1 %v6304_v16  ;;  %4275 = vmatprep.subr.bf16.mxu0 %v6307_v17  ;;  %v6374_v16 = vld [vmem:[#allocation13 + $0x408] ss:$28 sps:$4 sm:$0xff]   ;;  %v6377_v17 = vld [vmem:[#allocation13 + $0x27c] ss:$28 sps:$4 sm:$0xff]  }
 0x470   :  { %4190 = vmatpush1.bf16.msra.mxu1 %v6302_v18  ;;  %4276 = vmatpush1.bf16.msra.mxu0 %v6305_v19  ;;  %v6378_v18 = vld [vmem:[#allocation13 + $0x600] ss:$28 sps:$4 sm:$0xff]   ;;  %v6375_v19 = vld [vmem:[#allocation13 + $0x278] ss:$28 sps:$4 sm:$0xff]  }
 0x471   :  { %4191 = vmatprep.subr.bf16.mxu1 %v6310_v20  ;;  %4277 = vmatprep.subr.bf16.mxu0 %v6313_v21  ;;  %v6379_v20 = vld [vmem:[#allocation13 + $0x440] ss:$28 sps:$4 sm:$0xff]   ;;  %v6382_v21 = vld [vmem:[#allocation13 + $0x2b4] ss:$28 sps:$4 sm:$0xff]  }
 0x474   :  { %4192 = vmatpush1.bf16.msra.mxu1 %v6308_v22  ;;  %4278 = vmatpush1.bf16.msra.mxu0 %v6311_v23  ;;  %v6383_v22 = vld [vmem:[#allocation13 + $0x638] ss:$28 sps:$4 sm:$0xff]   ;;  %v6380_v23 = vld [vmem:[#allocation13 + $0x2b0] ss:$28 sps:$4 sm:$0xff]  }
 0x475   :  { %4193 = vmatprep.subr.bf16.mxu1 %v6316_v24  ;;  %4279 = vmatprep.subr.bf16.mxu0 %v6319_v25  ;;  %v6384_v24 = vld [vmem:[#allocation13 + $0x478] ss:$28 sps:$4 sm:$0xff]   ;;  %v6387_v25 = vld [vmem:[#allocation13 + $0x2ec] ss:$28 sps:$4 sm:$0xff]  }
 0x478   :  { %4194 = vmatpush1.bf16.msra.mxu1 %v6314_v26  ;;  %4280 = vmatpush1.bf16.msra.mxu0 %v6317_v32  ;;  %v6388_v26 = vld [vmem:[#allocation13 + $0x670] ss:$28 sps:$4 sm:$0xff]   ;;  %v6385_v32 = vld [vmem:[#allocation13 + $0x2e8] ss:$28 sps:$4 sm:$0xff]  }
 0x479   :  { %4292 = vmatprep.subr.bf16.mxu1 %v6322_v35  ;;  %5519 = vmatprep.subr.bf16.mxu0 %v6323_v36  ;;  %v6389_v35 = vld [vmem:[#allocation13 + $0x4b0] ss:$28 sps:$4 sm:$0xff]   ;;  %v6392_v36 = vld [vmem:[#allocation13 + $0x324] ss:$28 sps:$4 sm:$0xff]  }
 0x47b   :  { %4196 = vmatmul.mubr.bf16.vlgmr.msra.gmra.mrb[12].mxu1 %v6992_v58  ;;  %4282 = vmatmul.mubr.bf16.vlgmr.msra.gmra.mrb[8].mxu0 %v6992_v58 }
 0x47c   :  { %4293 = vmatpush1.bf16.msra.mxu1 %v6320_v37  ;;  %4324 = vmatprep.mubr.bf16.mxu1 %v6982_v5  ;;  %v6393_v37 = vld [vmem:[#allocation13 + $0x6a8] ss:$28 sps:$4 sm:$0xff]  }
 0x47d   :  { %5520 = vmatpush3.bf16.msra.mxu0 %v6324_v38  ;;  %4410 = vmatprep.mubr.bf16.mxu0 %v6982_v5  ;;  %v6343_v5 = vld [vmem:[#allocation13 + $0x2b8] ss:$28 sps:$4 sm:$0xff]   ;;  %v6390_v38 = vld [vmem:[#allocation13 + $0x320] ss:$28 sps:$4 sm:$0xff]  }
 0x47e   :  { %4294 = vmatprep.subr.bf16.mxu1 %v6327_v39  ;;  %5521 = vmatprep.subr.bf16.mxu0 %v6328_v40  ;;  %v6394_v39 = vld [vmem:[#allocation13 + $0x4e8] ss:$28 sps:$4 sm:$0xff]   ;;  %v6397_v40 = vld [vmem:[#allocation13 + $0x35c] ss:$28 sps:$4 sm:$0xff]  }
 0x480   :  { %4295 = vmatpush1.bf16.msra.mxu1 %v6325_v41  ;;  %v6398_v41 = vld [vmem:[#allocation13 + $0x6e0] ss:$28 sps:$4 sm:$0xff]  }
 0x481   :  { %5522 = vmatpush3.bf16.msra.mxu0 %v6329_v42  ;;  %4296 = vmatprep.subr.bf16.mxu1 %v6332_v43  ;;  %v6395_v42 = vld [vmem:[#allocation13 + $0x358] ss:$28 sps:$4 sm:$0xff]   ;;  %v6399_v43 = vld [vmem:[#allocation13 + $0x520] ss:$28 sps:$4 sm:$0xff]  }
 0x482   :  { %5523 = vmatprep.subr.bf16.mxu0 %v6333_v44  ;;  %v6402_v44 = vld [vmem:[#allocation13 + $0x394] ss:$28 sps:$4 sm:$0xff]  }
 0x484   :  { %4297 = vmatpush1.bf16.msra.mxu1 %v6330_v30  ;;  %v6400_v30 = vld [vmem:[#allocation13 + $0x390] ss:$28 sps:$4 sm:$0xff]  }
 0x485   :  { %5524 = vmatpush3.bf16.msra.mxu0 %v6334_v45  ;;  %4298 = vmatprep.subr.bf16.mxu1 %v6337_v46  ;;  %v6405_v45 = vld [vmem:[#allocation13 + $0x3cc] ss:$28 sps:$4 sm:$0xff]  }
 0x486   :  { %5525 = vmatprep.subr.bf16.mxu0 %v6338_v47  ;;  %v6403_v46 = vld [vmem:[#allocation13 + $0x3c8] ss:$28 sps:$4 sm:$0xff]  }
 0x487   :  { %v6408_v47 = vld [vmem:[#allocation13 + $0x404] ss:$28 sps:$4 sm:$0xff]  }
 0x488   :  { %4299 = vmatpush1.bf16.msra.mxu1 %v6335_v48  ;;  %v6406_v48 = vld [vmem:[#allocation13 + $0x400] ss:$28 sps:$4 sm:$0xff]  }
 0x489   :  { %5526 = vmatpush3.bf16.msra.mxu0 %v6339_v49  ;;  %4300 = vmatprep.subr.bf16.mxu1 %v6342_v50  ;;  %v6411_v49 = vld [vmem:[#allocation13 + $0x43c] ss:$28 sps:$4 sm:$0xff]  }
 0x48a   :  { %5527 = vmatprep.subr.bf16.mxu0 %v6343_v5  ;;  %v6409_v50 = vld [vmem:[#allocation13 + $0x438] ss:$28 sps:$4 sm:$0xff]  }
 0x48b   :  { %v6414_v5 = vld [vmem:[#allocation13 + $0x474] ss:$28 sps:$4 sm:$0xff]  }
 0x48c   :  { %4301 = vmatpush1.bf16.msra.mxu1 %v6340_v51  ;;  %v6412_v51 = vld [vmem:[#allocation13 + $0x470] ss:$28 sps:$4 sm:$0xff]  }
 0x48d   :  { %5528 = vmatpush3.bf16.msra.mxu0 %v6344_v52  ;;  %4302 = vmatprep.subr.bf16.mxu1 %v6347_v53  ;;  %v6415_v52 = vld [vmem:[#allocation13 + $0x4a8] ss:$28 sps:$4 sm:$0xff]  }
 0x48e   :  { %5529 = vmatprep.subr.bf16.mxu0 %v6348_v54  ;;  %v6420_v53 = vld [vmem:[#allocation13 + $0x4e4] ss:$28 sps:$4 sm:$0xff]   ;;  %v6423_v54 = vld [vmem:[#allocation13 + $0x51c] ss:$28 sps:$4 sm:$0xff]  }
 0x490   :  { %4303 = vmatpush1.bf16.msra.mxu1 %v6345_v55  ;;  %v6421_v55 = vld [vmem:[#allocation13 + $0x518] ss:$28 sps:$4 sm:$0xff]  }
 0x491   :  { %5530 = vmatpush3.bf16.msra.mxu0 %v6349_v56  ;;  %4304 = vmatprep.subr.bf16.mxu1 %v6352_v57  ;;  %v6426_v56 = vld [vmem:[#allocation13 + $0x554] ss:$28 sps:$4 sm:$0xff]  }
 0x492   :  { %5531 = vmatprep.subr.bf16.mxu0 %v6353_v60  ;;  %v6424_v57 = vld [vmem:[#allocation13 + $0x550] ss:$28 sps:$4 sm:$0xff]  }
 0x493   :  { %v6429_v60 = vld [vmem:[#allocation13 + $0x58c] ss:$28 sps:$4 sm:$0xff]  }
 0x494   :  { %4305 = vmatpush1.bf16.msra.mxu1 %v6350_v61  ;;  %v6427_v61 = vld [vmem:[#allocation13 + $0x588] ss:$28 sps:$4 sm:$0xff]  }
 0x495   :  { %5532 = vmatpush3.bf16.msra.mxu0 %v6354_v62  ;;  %4306 = vmatprep.subr.bf16.mxu1 %v6357_v63  ;;  %v6432_v62 = vld [vmem:[#allocation13 + $0x5c4] ss:$28 sps:$4 sm:$0xff]  }
 0x496   :  { %5533 = vmatprep.subr.bf16.mxu0 %v6358_v0  ;;  %v6430_v63 = vld [vmem:[#allocation13 + $0x5c0] ss:$28 sps:$4 sm:$0xff]  }
 0x497   :  { %v6435_v0 = vld [vmem:[#allocation13 + $0x5fc] ss:$28 sps:$4 sm:$0xff]  }
 0x498   :  { %4307 = vmatpush1.bf16.msra.mxu1 %v6355_v1  ;;  %v6433_v1 = vld [vmem:[#allocation13 + $0x5f8] ss:$28 sps:$4 sm:$0xff]  }
 0x499   :  { %5534 = vmatpush3.bf16.msra.mxu0 %v6359_v2  ;;  %4308 = vmatprep.subr.bf16.mxu1 %v6362_v3  ;;  %v6438_v2 = vld [vmem:[#allocation13 + $0x634] ss:$28 sps:$4 sm:$0xff]  }
 0x49a   :  { %5541 = vmatprep.subr.bf16.mxu0 %v6363_v6  ;;  %v6436_v3 = vld [vmem:[#allocation13 + $0x630] ss:$28 sps:$4 sm:$0xff]  }
 0x49b   :  { %v6441_v6 = vld [vmem:[#allocation13 + $0x66c] ss:$28 sps:$4 sm:$0xff]  }
 0x49c   :  { %4411 = vmatmul.mubr.bf16.vlgmr.msra.gmra.mrb[12].mxu0 %v6980_v4  ;;  %4309 = vmatpush1.bf16.msra.mxu1 %v6360_v7  ;;  %v6439_v7 = vld [vmem:[#allocation13 + $0x668] ss:$28 sps:$4 sm:$0xff]  }
 0x49d   :  { %5542 = vmatpush3.bf16.msra.mxu0 %v6364_v8  ;;  %4451 = vmatprep.mubr.bf16.mxu0 %v6994_v59  ;;  %v6444_v8 = vld [vmem:[#allocation13 + $0x6a4] ss:$28 sps:$4 sm:$0xff]  }
 0x49e   :  { %4310 = vmatprep.subr.bf16.mxu1 %v6367_v9  ;;  %5543 = vmatprep.subr.bf16.mxu0 %v6368_v10  ;;  %v6442_v9 = vld [vmem:[#allocation13 + $0x6a0] ss:$28 sps:$4 sm:$0xff]  }
 0x49f   :  { %v6447_v10 = vld [vmem:[#allocation13 + $0x6dc] ss:$28 sps:$4 sm:$0xff]  }
 0x4a0   :  { %4311 = vmatpush1.bf16.msra.mxu1 %v6365_v11  ;;  %v6445_v11 = vld [vmem:[#allocation13 + $0x6d8] ss:$28 sps:$4 sm:$0xff]  }
 0x4a1   :  { %5544 = vmatpush3.bf16.msra.mxu0 %v6369_v12  ;;  %4312 = vmatprep.subr.bf16.mxu1 %v6372_v13  ;;  %v7011_v12 = vld [vmem:[%s7358_s10] sm:$0xff] }
 0x4a2   :  { %5545 = vmatprep.subr.bf16.mxu0 %v6373_v14  ;;  %v2936_v13 = vrot.slane %v7011_v12, %v6944_v29  ;;  %v2944_v14 = vrot.slane %v7011_v12, %v6947_v31 }
 0x4a4   :  { %4313 = vmatpush1.bf16.msra.mxu1 %v6370_v15  ;;  %v2940_v15 = vrot.slane %v7011_v12, %v6953_v33 }
 0x4a5   :  { %5546 = vmatpush3.bf16.msra.mxu0 %v6374_v16  ;;  %4314 = vmatprep.subr.bf16.mxu1 %v6377_v17  ;;  %v2948_v16 = vrot.slane %v7011_v12, %v6956_v34 }
 0x4a6   :  { %5547 = vmatprep.subr.bf16.mxu0 %v6378_v18 }
 0x4a8   :  { %4315 = vmatpush1.bf16.msra.mxu1 %v6375_v19 }
 0x4a9   :  { %5548 = vmatpush3.bf16.msra.mxu0 %v6379_v20  ;;  %4316 = vmatprep.subr.bf16.mxu1 %v6382_v21 }
 0x4aa   :  { %5549 = vmatprep.subr.bf16.mxu0 %v6383_v22 }
 0x4ac   :  { %4317 = vmatpush1.bf16.msra.mxu1 %v6380_v23 }
 0x4ad   :  { %5550 = vmatpush3.bf16.msra.mxu0 %v6384_v24  ;;  %4318 = vmatprep.subr.bf16.mxu1 %v6387_v25 }
 0x4ae   :  { %5551 = vmatprep.subr.bf16.mxu0 %v6388_v26 }
 0x4b0   :  { %4319 = vmatpush1.bf16.msra.mxu1 %v6385_v32 }
 0x4b1   :  { %5552 = vmatpush3.bf16.msra.mxu0 %v6389_v35  ;;  %4320 = vmatprep.subr.bf16.mxu1 %v6392_v36 }
 0x4b2   :  { %5553 = vmatprep.subr.bf16.mxu0 %v6393_v37 }
 0x4b4   :  { %4321 = vmatpush1.bf16.msra.mxu1 %v6390_v38 }
 0x4b5   :  { %5554 = vmatpush3.bf16.msra.mxu0 %v6394_v39  ;;  %4322 = vmatprep.subr.bf16.mxu1 %v6397_v40 }
 0x4b6   :  { %5555 = vmatprep.subr.bf16.mxu0 %v6398_v41 }
 0x4b8   :  { %4323 = vmatpush1.bf16.msra.mxu1 %v6395_v42 }
 0x4b9   :  { %5556 = vmatpush3.bf16.msra.mxu0 %v6399_v43  ;;  %4335 = vmatprep.subr.bf16.mxu1 %v6402_v44 }
 0x4bb   :  { %4325 = vmatmul.mubr.bf16.vlgmr.msra.gmra.mrb[16].mxu1 %v6980_v4  ;;  %v6417_v4 = vld [vmem:[#allocation13 + $0x4ac] ss:$28 sps:$4 sm:$0xff]  }
 0x4bc   :  { %4452 = vmatmul.mubr.bf16.vlgmr.msra.gmra.mrb[16].mxu0 %v6992_v58  ;;  %4336 = vmatpush1.bf16.msra.mxu1 %v6400_v30 }
 0x4bd   :  { %4367 = vmatprep.mubr.bf16.mxu1 %v6994_v59  ;;  %4337 = vmatprep.subr.bf16.mxu1 %v6405_v45  ;;  %v6418_v59 = vld [vmem:[#allocation13 + $0x4e0] ss:$28 sps:$4 sm:$0xff]  }
 0x4c0   :  { %4338 = vmatpush1.bf16.msra.mxu1 %v6403_v46 }
 0x4c1   :  { %4339 = vmatprep.subr.bf16.mxu1 %v6408_v47 }
 0x4c4   :  { %4340 = vmatpush1.bf16.msra.mxu1 %v6406_v48 }
 0x4c5   :  { %4341 = vmatprep.subr.bf16.mxu1 %v6411_v49 }
 0x4c8   :  { %4342 = vmatpush1.bf16.msra.mxu1 %v6409_v50 }
 0x4c9   :  { %4343 = vmatprep.subr.bf16.mxu1 %v6414_v5 }
 0x4cc   :  { %4344 = vmatpush1.bf16.msra.mxu1 %v6412_v51 }
 0x4cd   :  { %4345 = vmatprep.subr.bf16.mxu1 %v6417_v4 }
 0x4d0   :  { %4346 = vmatpush1.bf16.msra.mxu1 %v6415_v52 }
 0x4d1   :  { %4347 = vmatprep.subr.bf16.mxu1 %v6420_v53 }
 0x4d4   :  { %4348 = vmatpush1.bf16.msra.mxu1 %v6418_v59 }
 0x4d5   :  { %4349 = vmatprep.subr.bf16.mxu1 %v6423_v54 }
 0x4d8   :  { %4350 = vmatpush1.bf16.msra.mxu1 %v6421_v55 }
 0x4d9   :  { %4351 = vmatprep.subr.bf16.mxu1 %v6426_v56 }
 0x4dc   :  { %4352 = vmatpush1.bf16.msra.mxu1 %v6424_v57 }
 0x4dd   :  { %4353 = vmatprep.subr.bf16.mxu1 %v6429_v60 }
 0x4e0   :  { %4354 = vmatpush1.bf16.msra.mxu1 %v6427_v61 }
 0x4e1   :  { %4355 = vmatprep.subr.bf16.mxu1 %v6432_v62 }
 0x4e4   :  { %4356 = vmatpush1.bf16.msra.mxu1 %v6430_v63 }
 0x4e5   :  { %4357 = vmatprep.subr.bf16.mxu1 %v6435_v0 }
 0x4e8   :  { %4358 = vmatpush1.bf16.msra.mxu1 %v6433_v1 }
 0x4e9   :  { %4359 = vmatprep.subr.bf16.mxu1 %v6438_v2 }
 0x4ec   :  { %4360 = vmatpush1.bf16.msra.mxu1 %v6436_v3 }
 0x4ed   :  { %4361 = vmatprep.subr.bf16.mxu1 %v6441_v6 }
 0x4f0   :  { %4362 = vmatpush1.bf16.msra.mxu1 %v6439_v7  ;;  %v7061_v7 = vld [vmem:[#allocation4 + $0x8] sm:$0xff] }
 0x4f1   :  { %4363 = vmatprep.subr.bf16.mxu1 %v6444_v8  ;;  %v4784_v8 = vsub.f32 1.0, %v7061_v7 }
 0x4f4   :  { %4364 = vmatpush1.bf16.msra.mxu1 %v6442_v9  ;;  %v7064_v9 = vld [vmem:[#allocation4 + $0x40] sm:$0xff] }
 0x4f5   :  { %4365 = vmatprep.subr.bf16.mxu1 %v6447_v10  ;;  %v4791_v10 = vsub.f32 1.0, %v7064_v9 }
 0x4f8   :  { %4366 = vmatpush1.bf16.msra.mxu1 %v6445_v11 }
 0x4fb   :  { %4368 = vmatmul.mubr.bf16.vlgmr.msra.gmra.mrb[16].mxu1 %v6992_v58 }
 0x54e   :  { %v4197_v17 = vpop.f32.mrb[12].mxu1  ;;  %v4283_v18 = vpop.f32.mrb[8].mxu0 }
 0x54f   :  { %v7021_v58 = vadd.f32 %v4197_v17, %v2936_v13  ;;  %v7023_v19 = vadd.f32 %v4283_v18, %v2944_v14  ;;  %v4199_v20 = vpop.f32.mrb[13].mxu1  ;;  %v4285_v21 = vpop.f32.mrb[9].mxu0  ;;  %v7074_v17 = vld [vmem:[#allocation4 + $0x18] sm:$0xff] }
 0x550   :  { %v7025_v22 = vadd.f32 %v4199_v20, %v2940_v15  ;;  %v7027_v29 = vadd.f32 %v4285_v21, %v2948_v16  ;;  %v4201_v23 = vpop.f32.mrb[14].mxu1  ;;  %v4287_v31 = vpop.f32.mrb[10].mxu0  ;;  %v4786_v18 = vsub.f32 1.0, %v7074_v17  ;;  %v7077_v20 = vld [vmem:[#allocation4 + $0x10] sm:$0xff] }
 0x551   :  { %v4460_v24 = vand.u32 2147483647, %v7021_v58  ;;  %v4462_v33 = vand.u32 2147483647, %v7023_v19  ;;  %v4203_v25 = vpop.f32.mrb[15].mxu1  ;;  %v4289_v36 = vpop.f32.mrb[11].mxu0  ;;  %v7033_v38 = vadd.f32 %v4201_v23, %v2936_v13  ;;  %v7035_v42 = vadd.f32 %v4287_v31, %v2944_v14 }
 0x552   :  { %v4461_v34 = vand.u32 2147483647, %v7025_v22  ;;  %v4463_v35 = vand.u32 2147483647, %v7027_v29  ;;  %v7039_v47 = vadd.f32 %v4203_v25, %v2940_v15  ;;  %v7041_v49 = vadd.f32 %v4289_v36, %v2948_v16  ;;  %v7068_v13 = vld [vmem:[#allocation4] sm:$0xff]  ;;  %v7071_v15 = vld [vmem:[#allocation4 + $0x38] sm:$0xff] }
 0x553   :  { %v4474_v26 = vsub.f32 0.0, %v4460_v24  ;;  %v4476_v32 = vsub.f32 0.0, %v4462_v33  ;;  %v4467_v44 = vand.u32 2147483647, %v7033_v38  ;;  %v4469_v45 = vand.u32 2147483647, %v7035_v42 }
 0x554   :  { %v4475_v37 = vsub.f32 0.0, %v4461_v34  ;;  %v4477_v41 = vsub.f32 0.0, %v4463_v35  ;;  %v4468_v5 = vand.u32 2147483647, %v7039_v47  ;;  %v4470_v4 = vand.u32 2147483647, %v7041_v49 }
 0x555   :  { %v4488_v39 = vmul.f32 1.442695, %v4474_v26  ;;  %v4492_v40 = vmul.f32 1.442695, %v4476_v32  ;;  %v4481_v46 = vsub.f32 0.0, %v4467_v44  ;;  %v4483_v48 = vsub.f32 0.0, %v4469_v45 }
 0x556   :  { %v4490_v43 = vmul.f32 1.442695, %v4475_v37  ;;  %v4494_v30 = vmul.f32 1.442695, %v4477_v41  ;;  %v4482_v52 = vsub.f32 0.0, %v4468_v5  ;;  %v4484_v53 = vsub.f32 0.0, %v4470_v4 }
 0x557   :  { %6452 = vpow2.f32 %v4488_v39  ;;  %v4502_v50 = vmul.f32 1.442695, %v4481_v46  ;;  %v4506_v51 = vmul.f32 1.442695, %v4483_v48  ;;  %v4783_v14 = vsub.f32 1.0, %v7068_v13  ;;  %v7080_v23 = vld [vmem:[#allocation4 + $0x48] sm:$0xff] }
 0x558   :  { %6454 = vpow2.f32 %v4492_v40  ;;  %v4504_v59 = vmul.f32 1.442695, %v4482_v52  ;;  %v4508_v54 = vmul.f32 1.442695, %v4484_v53  ;;  %v4790_v16 = vsub.f32 1.0, %v7071_v15 }
 0x559   :  { %6456 = vpow2.f32 %v4490_v43  ;;  %v4785_v21 = vsub.f32 1.0, %v7077_v20  ;;  %v4792_v31 = vsub.f32 1.0, %v7080_v23  ;;  %vm4558_vm0 = vcmp.ge.f32.partialorder %v7021_v58, 0.0 }
 0x55a   :  { %6458 = vpow2.f32 %v4494_v30  ;;  %v4670_v34 = vsub.f32 0.0, %v7021_v58  ;;  %vm4560_vm1 = vcmp.ge.f32.partialorder %v7023_v19, 0.0  ;;  %v4672_v26 = vsub.f32 0.0, %v7023_v19 }
 0x55b   :  { %6460 = vpow2.f32 %v4502_v50  ;;  %vm4559_vm2 = vcmp.ge.f32.partialorder %v7025_v22, 0.0  ;;  %v4671_v32 = vsub.f32 0.0, %v7025_v22  ;;  %v4673_v37 = vsub.f32 0.0, %v7027_v29 }
 0x55c   :  { %6462 = vpow2.f32 %v4506_v51  ;;  %v4677_v39 = vsub.f32 0.0, %v7033_v38  ;;  %v4679_v44 = vsub.f32 0.0, %v7035_v42  ;;  %v4678_v30 = vsub.f32 0.0, %v7039_v47 }
 0x55d   :  { %6464 = vpow2.f32 %v4504_v59  ;;  %vm4561_vm3 = vcmp.ge.f32.partialorder %v7027_v29, 0.0  ;;  %vm4565_vm4 = vcmp.ge.f32.partialorder %v7033_v38, 0.0  ;;  %vm4567_vm5 = vcmp.ge.f32.partialorder %v7035_v42, 0.0 }
 0x55e   :  { %6466 = vpow2.f32 %v4508_v54  ;;  %vm4566_vm6 = vcmp.ge.f32.partialorder %v7039_v47, 0.0  ;;  %vm4568_vm7 = vcmp.ge.f32.partialorder %v7041_v49, 0.0 }
 0x561   :  { %v6453_v55 = vpop.eup %6452 }
 0x562   :  { %v7045_v56 = vpop.eup %6454  ;;  %v4516_v57 = vadd.f32 1.0, %v6453_v55 }
 0x563   :  { %v7047_v60 = vpop.eup %6456  ;;  %v4518_v61 = vadd.f32 1.0, %v7045_v56 }
 0x564   :  { %v7050_v62 = vpop.eup %6458  ;;  %6468 = vlog2.f32 %v4516_v57  ;;  %v4517_v63 = vadd.f32 1.0, %v7047_v60 }
 0x565   :  { %6470 = vrcp.f32 %v4516_v57  ;;  %v7053_v0 = vpop.eup %6460  ;;  %v4519_v1 = vadd.f32 1.0, %v7050_v62 }
 0x566   :  { %6472 = vlog2.f32 %v4518_v61  ;;  %v7056_v2 = vpop.eup %6462  ;;  %v4523_v3 = vadd.f32 1.0, %v7053_v0 }
 0x567   :  { %6474 = vrcp.f32 %v4518_v61  ;;  %v7059_v6 = vpop.eup %6464  ;;  %v4525_v11 = vadd.f32 1.0, %v7056_v2 }
 0x568   :  { %6476 = vlog2.f32 %v4517_v63  ;;  %v4524_v24 = vadd.f32 1.0, %v7059_v6  ;;  %v7084_v33 = vpop.eup %6466 }
 0x569   :  { %6478 = vrcp.f32 %v4517_v63 }
 0x56a   :  { %6480 = vlog2.f32 %v4519_v1 }
 0x56b   :  { %6482 = vrcp.f32 %v4519_v1 }
 0x56c   :  { %6484 = vlog2.f32 %v4523_v3 }
 0x56d   :  { %6486 = vrcp.f32 %v4523_v3 }
 0x56e   :  { %v6469_v25 = vpop.eup %6468  ;;  %6488 = vlog2.f32 %v4525_v11 }
 0x56f   :  { %v6471_v35 = vpop.eup %6470  ;;  %v4531_v36 = vmul.f32 0.6931472, %v6469_v25  ;;  %6490 = vrcp.f32 %v4525_v11  ;;  %v5535_v40 = vpop.f32.mrb[12].mxu0 }
 0x570   :  { %v6473_v41 = vpop.eup %6472  ;;  %v4600_v43 = vmul.f32 %v6471_v35, %v6453_v55  ;;  %6492 = vlog2.f32 %v4524_v24  ;;  %v5536_v45 = vpop.f32.mrb[13].mxu0 }
 0x571   :  { %v6475_v46 = vpop.eup %6474  ;;  %v4628_v48 = vsub.f32 0.0, %v4531_v36  ;;  %v4642_v50 = vsub.f32 %v7021_v58, %v4531_v36  ;;  %v4684_v5 = vsub.f32 %v4670_v34, %v4531_v36  ;;  %v4535_v51 = vmul.f32 0.6931472, %v6473_v41  ;;  %v7098_v4 = vpop.f32.mrb[14].mxu0 }
 0x572   :  { %v6477_v52 = vpop.eup %6476  ;;  %v4614_v53 = vsel %vm4558_vm0, %v6471_v35, %v4600_v43  ;;  %v4602_v59 = vmul.f32 %v6475_v46, %v7045_v56  ;;  %6494 = vrcp.f32 %v4524_v24  ;;  %v7104_v54 = vadd.f32 %v5536_v45, %v5535_v40  ;;  %v7106_v55 = vpop.f32.mrb[15].mxu0 }
 0x573   :  { %v6479_v57 = vpop.eup %6478  ;;  %v4656_v61 = vsel %vm4558_vm0, %v4628_v48, %v4642_v50  ;;  %v4698_v63 = vsel %vm4558_vm0, %v4684_v5, %v4628_v48  ;;  %4907 = vst [vmem:[#allocation16] sm:$0xff] %v4614_v53  ;;  %v4630_v1 = vsub.f32 0.0, %v4535_v51  ;;  %v4644_v3 = vsub.f32 %v7023_v19, %v4535_v51 }
 0x574   :  { %v6481_v11 = vpop.eup %6480  ;;  %v4712_v56 = vmax.f32 %v4656_v61, -100.0  ;;  %v4726_v34 = vmax.f32 %v4698_v63, -100.0  ;;  %v4616_v24 = vsel %vm4560_vm1, %v6475_v46, %v4602_v59  ;;  %v4686_v25 = vsub.f32 %v4672_v26, %v4535_v51 }
 0x575   :  { %v6483_v35 = vpop.eup %6482  ;;  %v7117_v36 = vsel %vm4560_vm1, %v4630_v1, %v4644_v3  ;;  %4909 = vst [vmem:[#allocation16 + $0x10] sm:$0xff] %v4616_v24  ;;  %v4533_v40 = vmul.f32 0.6931472, %v6477_v52  ;;  %v4601_v58 = vmul.f32 %v6479_v57, %v7047_v60  ;;  %v4537_v41 = vmul.f32 0.6931472, %v6481_v11 }
 0x576   :  { %v6485_v43 = vpop.eup %6484  ;;  %v7121_v45 = vmul.f32 %v7068_v13, %v4712_v56  ;;  %v7125_v48 = vmul.f32 %v4783_v14, %v4726_v34  ;;  %v7129_v26 = vsel %vm4560_vm1, %v4686_v25, %v4630_v1  ;;  %v4526_v46 = vadd.f32 1.0, %v7084_v33 }
 0x577   :  { %v6487_v50 = vpop.eup %6486  ;;  %v4714_v60 = vmax.f32 %v7117_v36, -100.0  ;;  %v4615_v5 = vsel %vm4559_vm2, %v6479_v57, %v4601_v58  ;;  %v4629_v51 = vsub.f32 0.0, %v4533_v40  ;;  %v4643_v52 = vsub.f32 %v7025_v22, %v4533_v40 }
 0x578   :  { %v6489_v13 = vpop.eup %6488  ;;  %v4685_v14 = vsub.f32 %v4671_v32, %v4533_v40  ;;  %4908 = vst [vmem:[#allocation16 + $0x8] sm:$0xff] %v4615_v5  ;;  %v4603_v19 = vmul.f32 %v6483_v35, %v7050_v62  ;;  %v4631_v53 = vsub.f32 0.0, %v4537_v41  ;;  %v4645_v59 = vsub.f32 %v7027_v29, %v4537_v41 }
 0x579   :  { %v6491_v61 = vpop.eup %6490  ;;  %v4657_v63 = vsel %vm4559_vm2, %v4629_v51, %v4643_v52  ;;  %v4687_v1 = vsub.f32 %v4673_v37, %v4537_v41  ;;  %v4545_v3 = vmul.f32 0.6931472, %v6485_v43  ;;  %v4607_v57 = vmul.f32 %v6487_v50, %v7053_v0 }
 0x57a   :  { %v6493_v11 = vpop.eup %6492  ;;  %v4699_v56 = vsel %vm4559_vm2, %v4685_v14, %v4629_v51  ;;  %v4713_v34 = vmax.f32 %v4657_v63, -100.0  ;;  %v4617_v32 = vsel %vm4561_vm3, %v6483_v35, %v4603_v19  ;;  %v4659_v62 = vsel %vm4561_vm3, %v4631_v53, %v4645_v59 }
 0x57b   :  { %v4728_v24 = vmax.f32 %v7129_v26, -100.0  ;;  %v4727_v25 = vmax.f32 %v4699_v56, -100.0  ;;  %v4701_v37 = vsel %vm4561_vm3, %v4687_v1, %v4631_v53  ;;  %4910 = vst [vmem:[#allocation16 + $0x18] sm:$0xff] %v4617_v32  ;;  %v4621_v0 = vsel %vm4565_vm4, %v6487_v50, %v4607_v57 }
 0x57c   :  { %v6495_v40 = vpop.eup %6494  ;;  %v4770_v22 = vmul.f32 %v7061_v7, %v4713_v34  ;;  %v4715_v58 = vmax.f32 %v4659_v62, -100.0  ;;  %v4635_v41 = vsub.f32 0.0, %v4545_v3  ;;  %v4649_v35 = vsub.f32 %v7033_v38, %v4545_v3  ;;  %4914 = vst [vmem:[#allocation16 + $0x38] sm:$0xff] %v4621_v0 }
 0x57d   :  { %v4729_v43 = vmax.f32 %v4701_v37, -100.0  ;;  %v4691_v26 = vsub.f32 %v4677_v39, %v4545_v3  ;;  %v4549_v5 = vmul.f32 0.6931472, %v6489_v13  ;;  %v4609_v29 = vmul.f32 %v6491_v61, %v7056_v2 }
 0x57e   :  { %v4663_v51 = vsel %vm4565_vm4, %v4635_v41, %v4649_v35  ;;  %v4547_v52 = vmul.f32 0.6931472, %v6493_v11  ;;  %v4608_v50 = vmul.f32 %v6495_v40, %v7059_v6  ;;  %6496 = vlog2.f32 %v4526_v46 }
 0x57f   :  { %v4705_v14 = vsel %vm4565_vm4, %v4691_v26, %v4635_v41  ;;  %v4719_v19 = vmax.f32 %v4663_v51, -100.0  ;;  %v4623_v53 = vsel %vm4567_vm5, %v6491_v61, %v4609_v29  ;;  %v4637_v59 = vsub.f32 0.0, %v4549_v5 }
 0x580   :  { %v4733_v63 = vmax.f32 %v4705_v14, -100.0  ;;  %v4651_v39 = vsub.f32 %v7035_v42, %v4549_v5  ;;  %v4693_v2 = vsub.f32 %v4679_v44, %v4549_v5  ;;  %4916 = vst [vmem:[#allocation16 + $0x48] sm:$0xff] %v4623_v53  ;;  %v4622_v13 = vsel %vm4566_vm6, %v6495_v40, %v4608_v50 }
 0x581   :  { %v4798_v6 = vmul.f32 %v4784_v8, %v4727_v25  ;;  %v4636_v38 = vsub.f32 0.0, %v4547_v52  ;;  %v4650_v1 = vsub.f32 %v7039_v47, %v4547_v52  ;;  %v4692_v61 = vsub.f32 %v4678_v30, %v4547_v52  ;;  %4915 = vst [vmem:[#allocation16 + $0x40] sm:$0xff] %v4622_v13 }
 0x582   :  { %v4776_v3 = vmul.f32 %v7071_v15, %v4719_v19  ;;  %v4665_v57 = vsel %vm4567_vm5, %v4637_v59, %v4651_v39  ;;  %v4707_v44 = vsel %vm4567_vm5, %v4693_v2, %v4637_v59  ;;  %6498 = vrcp.f32 %v4526_v46 }
 0x583   :  { %v4721_v11 = vmax.f32 %v4665_v57, -100.0  ;;  %v4735_v56 = vmax.f32 %v4707_v44, -100.0  ;;  %v4664_v7 = vsel %vm4566_vm6, %v4636_v38, %v4650_v1  ;;  %v4706_v8 = vsel %vm4566_vm6, %v4692_v61, %v4636_v38 }
 0x584   :  { %v4804_v30 = vmul.f32 %v4790_v16, %v4733_v63  ;;  %v4720_v34 = vmax.f32 %v4664_v7, -100.0  ;;  %v4734_v32 = vmax.f32 %v4706_v8, -100.0  ;;  %v5540_v62 = vadd.f32 %v7106_v55, %v7098_v4 }
 0x585   :  { %v4778_v42 = vmul.f32 %v7080_v23, %v4721_v11  ;;  %v4806_v46 = vmul.f32 %v4792_v31, %v4735_v56  ;;  %v4771_v25 = vmul.f32 %v7077_v20, %v4714_v60  ;;  %v4772_v47 = vmul.f32 %v7074_v17, %v4715_v58 }
 0x586   :  { %v4777_v37 = vmul.f32 %v7064_v9, %v4720_v34  ;;  %v4805_v15 = vmul.f32 %v4791_v10, %v4734_v32  ;;  %v2959_v16 = vsub.s32 6, %v6941_v28  ;;  %v4799_v4 = vmul.f32 %v4785_v21, %v4728_v24  ;;  %v6543_v24 = vld [vmem:[#allocation4 + $0x50] sm:$0xff] }
 0x587   :  { %v4800_v23 = vmul.f32 %v4786_v18, %v4729_v43  ;;  %v4811_v31 = vadd.f32 %v7125_v48, %v7121_v45  ;;  %v4680_v36 = vsub.f32 0.0, %v7041_v49  ;;  %v4812_v60 = vadd.f32 %v4798_v6, %v4770_v22 }
 0x588   :  { %v6497_v55 = vpop.eup %6496  ;;  %v4818_v0 = vadd.f32 %v4804_v30, %v4776_v3  ;;  %v4819_v40 = vadd.f32 %v4805_v15, %v4777_v37  ;;  %v4813_v9 = vadd.f32 %v4799_v4, %v4771_v25  ;;  %v4820_v41 = vadd.f32 %v4806_v46, %v4778_v42 }
 0x589   :  { %v4551_v58 = vmul.f32 0.6931472, %v6497_v55  ;;  %v4814_v10 = vadd.f32 %v4800_v23, %v4772_v47  ;;  %v4839_v35 = vadd.f32 %v4812_v60, %v4811_v31  ;;  %v4793_v43 = vsub.f32 1.0, %v6543_v24 }
 0x58a   :  { %v4847_v26 = vadd.f32 %v4819_v40, %v4818_v0  ;;  %v2960_v51 = vrot.slane %v7011_v12, %v2959_v16  ;;  %v6544_v40 = vld [vmem:[#allocation4 + $0x30] sm:$0xff]  ;;  %vm4892_vm1 = vcmask 7168  }
 0x58b   :  { %v4638_v20 = vsub.f32 0.0, %v4551_v58  ;;  %v4652_v21 = vsub.f32 %v7041_v49, %v4551_v58  ;;  %v4694_v17 = vsub.f32 %v4680_v36, %v4551_v58  ;;  %v4840_v45 = vadd.f32 %v4839_v35, %v4813_v9 }
 0x58c   :  { %v6499_v18 = vpop.eup %6498  ;;  %v4848_v48 = vadd.f32 %v4847_v26, %v4820_v41  ;;  %v4413_v49 = vadd.f32 %v7104_v54, %v2960_v51  ;;  %v4416_v38 = vadd.f32 %v5540_v62, %v2960_v51  ;;  %v4789_v58 = vsub.f32 1.0, %v6544_v40 }
 0x58d   :  { %v4610_v22 = vmul.f32 %v6499_v18, %v7084_v33  ;;  %v4666_v5 = vsel %vm4568_vm7, %v4638_v20, %v4652_v21  ;;  %v4708_v29 = vsel %vm4568_vm7, %v4694_v17, %v4638_v20  ;;  %v7211_v14 = vadd.f32 %v4840_v45, %v4814_v10 }
 0x58e   :  { %v4722_v52 = vmax.f32 %v4666_v5, -100.0  ;;  %v4736_v50 = vmax.f32 %v4708_v29, -100.0 }
 0x58f   :  { %v4624_v19 = vsel %vm4568_vm7, %v6499_v18, %v4610_v22  ;;  %v5557_v53 = vpop.f32.mrb[16].mxu0  ;;  %v6545_v18 = vld [vmem:[#allocation4 + $0x68] sm:$0xff] }
 0x590   :  { %4917 = vst [vmem:[#allocation16 + $0x50] sm:$0xff] %v4624_v19  ;;  %v5558_v59 = vpop.f32.mrb[17].mxu0  ;;  %v4779_v63 = vmul.f32 %v6543_v24, %v4722_v52  ;;  %v4807_v39 = vmul.f32 %v4793_v43, %v4736_v50  ;;  %v4796_v24 = vsub.f32 1.0, %v6545_v18 }
 0x591   :  { %v5559_v2 = vadd.f32 %v5558_v59, %v5557_v53  ;;  %v5560_v13 = vpop.f32.mrb[18].mxu0  ;;  %v2951_v53 = vsub.s32 4, %v6941_v28  ;;  %v2955_v59 = vsub.s32 5, %v6941_v28 }
 0x592   :  { %v5561_v6 = vpop.f32.mrb[19].mxu0  ;;  %v4821_v33 = vadd.f32 %v4807_v39, %v4779_v63 }
 0x593   :  { %v4454_v1 = vadd.f32 %v5559_v2, %v4413_v49  ;;  %v5562_v61 = vadd.f32 %v5561_v6, %v5560_v13  ;;  %v2952_v63 = vrot.slane %v7011_v12, %v2951_v53  ;;  %v2956_v39 = vrot.slane %v7011_v12, %v2955_v59 }
 0x594   :  { %v7214_v3 = vadd.f32 %v4848_v48, %v4821_v33 }
 0x595   :  { %v4466_v57 = vand.u32 2147483647, %v4454_v1  ;;  %v4457_v44 = vadd.f32 %v5562_v61, %v4416_v38  ;;  %v4676_v47 = vsub.f32 0.0, %v4454_v1  ;;  %vm4564_vm8 = vcmp.ge.f32.partialorder %v4454_v1, 0.0 }
 0x597   :  { %v4480_v11 = vsub.f32 0.0, %v4466_v57  ;;  %v4473_v56 = vand.u32 2147483647, %v4457_v44  ;;  %v4683_v15 = vsub.f32 0.0, %v4457_v44  ;;  %vm4571_vm9 = vcmp.ge.f32.partialorder %v4457_v44, 0.0 }
 0x599   :  { %v4500_v7 = vmul.f32 1.442695, %v4480_v11  ;;  %v4487_v8 = vsub.f32 0.0, %v4473_v56 }
 0x59b   :  { %6500 = vpow2.f32 %v4500_v7  ;;  %v4514_v30 = vmul.f32 1.442695, %v4487_v8 }
 0x59d   :  { %6502 = vpow2.f32 %v4514_v30 }
 0x5a5   :  { %v6501_v34 = vpop.eup %6500 }
 0x5a6   :  { %v4522_v54 = vadd.f32 1.0, %v6501_v34 }
 0x5a7   :  { %v6503_v32 = vpop.eup %6502 }
 0x5a8   :  { %6504 = vlog2.f32 %v4522_v54  ;;  %v4529_v42 = vadd.f32 1.0, %v6503_v32 }
 0x5a9   :  { %6506 = vrcp.f32 %v4522_v54 }
 0x5aa   :  { %6508 = vlog2.f32 %v4529_v42 }
 0x5ab   :  { %6510 = vrcp.f32 %v4529_v42 }
 0x5b2   :  { %v6505_v62 = vpop.eup %6504 }
 0x5b3   :  { %v6507_v46 = vpop.eup %6506  ;;  %v4543_v25 = vmul.f32 0.6931472, %v6505_v62 }
 0x5b4   :  { %v6509_v37 = vpop.eup %6508  ;;  %v4606_v16 = vmul.f32 %v6507_v46, %v6501_v34 }
 0x5b5   :  { %v6511_v4 = vpop.eup %6510  ;;  %v4648_v23 = vsub.f32 %v4454_v1, %v4543_v25  ;;  %v4690_v31 = vsub.f32 %v4676_v47, %v4543_v25  ;;  %v4557_v55 = vmul.f32 0.6931472, %v6509_v37  ;;  %v4634_v36 = vsub.f32 0.0, %v4543_v25 }
 0x5b6   :  { %v4613_v60 = vmul.f32 %v6511_v4, %v6503_v32  ;;  %v4620_v0 = vsel %vm4564_vm8, %v6507_v46, %v4606_v16 }
 0x5b7   :  { %v4655_v9 = vsub.f32 %v4457_v44, %v4557_v55  ;;  %v4697_v10 = vsub.f32 %v4683_v15, %v4557_v55  ;;  %v4662_v41 = vsel %vm4564_vm8, %v4634_v36, %v4648_v23  ;;  %v4704_v35 = vsel %vm4564_vm8, %v4690_v31, %v4634_v36  ;;  %4913 = vst [vmem:[#allocation16 + $0x30] sm:$0xff] %v4620_v0  ;;  %v7240_v31 = vld [vmem:[#allocation4 + $0x60] sm:$0xff] }
 0x5b8   :  { %v4627_v26 = vsel %vm4571_vm9, %v6511_v4, %v4613_v60  ;;  %v4718_v20 = vmax.f32 %v4662_v41, -100.0  ;;  %v4732_v21 = vmax.f32 %v4704_v35, -100.0  ;;  %v4641_v17 = vsub.f32 0.0, %v4557_v55  ;;  %v7245_v0 = vld [vmem:[#allocation4 + $0x20] sm:$0xff] }
 0x5b9   :  { %4920 = vst [vmem:[#allocation16 + $0x68] sm:$0xff] %v4627_v26  ;;  %v4741_v23 = vand.u32 127, %v374_v27  ;;  %v4795_v55 = vsub.f32 1.0, %v7240_v31 }
 0x5ba   :  { %v4775_v43 = vmul.f32 %v6544_v40, %v4718_v20  ;;  %v4803_v45 = vmul.f32 %v4789_v58, %v4732_v21  ;;  %v4669_v48 = vsel %vm4571_vm9, %v4641_v17, %v4655_v9  ;;  %v4711_v22 = vsel %vm4571_vm9, %v4697_v10, %v4641_v17  ;;  %v7248_v58 = vld [vmem:[#allocation4 + $0x28] sm:$0xff]  ;;  %v6549_v10 = vld [vmem:[#allocation4 + $0x58] sm:$0xff] }
 0x5bb   :  { %v4725_v5 = vmax.f32 %v4669_v48, -100.0  ;;  %v4739_v29 = vmax.f32 %v4711_v22, -100.0  ;;  %v7243_v36 = vadd.s32 768, %v4741_v23  ;;  %v4787_v40 = vsub.f32 1.0, %v7245_v0 }
 0x5bc   :  { %v7219_v51 = vadd.f32 %v4803_v45, %v4775_v43  ;;  %v4788_v9 = vsub.f32 1.0, %v7248_v58  ;;  %v4794_v41 = vsub.f32 1.0, %v6549_v10 }
 0x5bd   :  { %v4782_v52 = vmul.f32 %v6545_v18, %v4725_v5  ;;  %v4810_v50 = vmul.f32 %v4796_v24, %v4739_v29  ;;  %vm4754_vm14 = vcmp.lt.s32.totalorder %v7243_v36, 784 }
 0x5bf   :  { %v7221_v19 = vadd.f32 %v4810_v50, %v4782_v52 }
 0x5ce   :  { %v4369_v49 = vpop.f32.mrb[16].mxu1 }
 0x5cf   :  { %v7227_v2 = vadd.f32 %v4369_v49, %v2952_v63  ;;  %v4371_v13 = vpop.f32.mrb[17].mxu1 }
 0x5d0   :  { %v7229_v6 = vadd.f32 %v4371_v13, %v2956_v39  ;;  %v4373_v33 = vpop.f32.mrb[18].mxu1 }
 0x5d1   :  { %v4464_v38 = vand.u32 2147483647, %v7227_v2  ;;  %v7232_v1 = vadd.f32 %v4373_v33, %v2952_v63  ;;  %v4375_v61 = vpop.f32.mrb[19].mxu1  ;;  %vm4562_vm10 = vcmp.ge.f32.partialorder %v7227_v2, 0.0  ;;  %v4674_v26 = vsub.f32 0.0, %v7227_v2 }
 0x5d2   :  { %v4465_v57 = vand.u32 2147483647, %v7229_v6  ;;  %v7235_v44 = vadd.f32 %v4375_v61, %v2956_v39  ;;  %vm4563_vm11 = vcmp.ge.f32.partialorder %v7229_v6, 0.0  ;;  %v4675_v17 = vsub.f32 0.0, %v7229_v6 }
 0x5d3   :  { %v4478_v11 = vsub.f32 0.0, %v4464_v38  ;;  %v4471_v56 = vand.u32 2147483647, %v7232_v1  ;;  %vm4569_vm12 = vcmp.ge.f32.partialorder %v7232_v1, 0.0  ;;  %v4681_v18 = vsub.f32 0.0, %v7232_v1 }
 0x5d4   :  { %v4479_v12 = vsub.f32 0.0, %v4465_v57  ;;  %v4472_v7 = vand.u32 2147483647, %v7235_v44  ;;  %vm4570_vm13 = vcmp.ge.f32.partialorder %v7235_v44, 0.0  ;;  %v4682_v50 = vsub.f32 0.0, %v7235_v44 }
 0x5d5   :  { %v4496_v8 = vmul.f32 1.442695, %v4478_v11  ;;  %v4485_v30 = vsub.f32 0.0, %v4471_v56 }
 0x5d6   :  { %v4498_v34 = vmul.f32 1.442695, %v4479_v12  ;;  %v4486_v54 = vsub.f32 0.0, %v4472_v7 }
 0x5d7   :  { %6512 = vpow2.f32 %v4496_v8  ;;  %v4510_v32 = vmul.f32 1.442695, %v4485_v30 }
 0x5d8   :  { %6514 = vpow2.f32 %v4498_v34  ;;  %v4512_v42 = vmul.f32 1.442695, %v4486_v54 }
 0x5d9   :  { %6516 = vpow2.f32 %v4510_v32 }
 0x5da   :  { %6518 = vpow2.f32 %v4512_v42 }
 0x5e1   :  { %v6513_v62 = vpop.eup %6512 }
 0x5e2   :  { %v6515_v46 = vpop.eup %6514  ;;  %v4520_v25 = vadd.f32 1.0, %v6513_v62 }
 0x5e3   :  { %v6517_v47 = vpop.eup %6516  ;;  %v4521_v37 = vadd.f32 1.0, %v6515_v46 }
 0x5e4   :  { %v6519_v15 = vpop.eup %6518  ;;  %6520 = vlog2.f32 %v4520_v25  ;;  %v4527_v16 = vadd.f32 1.0, %v6517_v47 }
 0x5e5   :  { %6522 = vrcp.f32 %v4520_v25  ;;  %v4528_v4 = vadd.f32 1.0, %v6519_v15 }
 0x5e6   :  { %6524 = vlog2.f32 %v4521_v37 }
 0x5e7   :  { %6526 = vrcp.f32 %v4521_v37 }
 0x5e8   :  { %6528 = vlog2.f32 %v4527_v16 }
 0x5e9   :  { %6530 = vrcp.f32 %v4527_v16 }
 0x5ea   :  { %6532 = vlog2.f32 %v4528_v4 }
 0x5eb   :  { %6534 = vrcp.f32 %v4528_v4 }
 0x5ee   :  { %v6521_v60 = vpop.eup %6520 }
 0x5ef   :  { %v6523_v27 = vpop.eup %6522  ;;  %v4539_v35 = vmul.f32 0.6931472, %v6521_v60 }
 0x5f0   :  { %v6525_v20 = vpop.eup %6524  ;;  %v4604_v21 = vmul.f32 %v6523_v27, %v6513_v62 }
 0x5f1   :  { %v6527_v24 = vpop.eup %6526  ;;  %v4646_v43 = vsub.f32 %v7227_v2, %v4539_v35  ;;  %v4688_v45 = vsub.f32 %v4674_v26, %v4539_v35  ;;  %v4541_v48 = vmul.f32 0.6931472, %v6525_v20  ;;  %v4632_v22 = vsub.f32 0.0, %v4539_v35 }
 0x5f2   :  { %v6529_v5 = vpop.eup %6528  ;;  %v4618_v29 = vsel %vm4562_vm10, %v6523_v27, %v4604_v21  ;;  %v4605_v52 = vmul.f32 %v6527_v24, %v6515_v46 }
 0x5f3   :  { %v6531_v53 = vpop.eup %6530  ;;  %4911 = vst [vmem:[#allocation16 + $0x20] sm:$0xff] %v4618_v29  ;;  %v4647_v59 = vsub.f32 %v7229_v6, %v4541_v48  ;;  %v4689_v63 = vsub.f32 %v4675_v17, %v4541_v48  ;;  %v4553_v39 = vmul.f32 0.6931472, %v6529_v5  ;;  %v4633_v49 = vsub.f32 0.0, %v4541_v48 }
 0x5f4   :  { %v6533_v13 = vpop.eup %6532  ;;  %v4619_v33 = vsel %vm4563_vm11, %v6527_v24, %v4605_v52  ;;  %v4611_v38 = vmul.f32 %v6531_v53, %v6517_v47  ;;  %v4660_v61 = vsel %vm4562_vm10, %v4632_v22, %v4646_v43  ;;  %v4702_v57 = vsel %vm4562_vm10, %v4688_v45, %v4632_v22 }
 0x5f5   :  { %v6535_v11 = vpop.eup %6534  ;;  %4912 = vst [vmem:[#allocation16 + $0x28] sm:$0xff] %v4619_v33  ;;  %v4639_v56 = vsub.f32 0.0, %v4553_v39  ;;  %v4653_v12 = vsub.f32 %v7232_v1, %v4553_v39  ;;  %v4695_v7 = vsub.f32 %v4681_v18, %v4553_v39  ;;  %v4555_v8 = vmul.f32 0.6931472, %v6533_v13 }
 0x5f6   :  { %v4625_v30 = vsel %vm4569_vm12, %v6531_v53, %v4611_v38  ;;  %v4612_v34 = vmul.f32 %v6535_v11, %v6519_v15  ;;  %v4661_v54 = vsel %vm4563_vm11, %v4633_v49, %v4647_v59  ;;  %v4703_v32 = vsel %vm4563_vm11, %v4689_v63, %v4633_v49  ;;  %v4868_v53 = vpop.xlane.xlu1 %4867 }
 0x5f7   :  { %v4667_v2 = vsel %vm4569_vm12, %v4639_v56, %v4653_v12  ;;  %v4709_v42 = vsel %vm4569_vm12, %v4695_v7, %v4639_v56  ;;  %4918 = vst [vmem:[#allocation16 + $0x58] sm:$0xff] %v4625_v30  ;;  %v4654_v62 = vsub.f32 %v7235_v44, %v4555_v8  ;;  %v4696_v46 = vsub.f32 %v4682_v50, %v4555_v8 }
 0x5f8   :  { %v4723_v25 = vmax.f32 %v4667_v2, -100.0  ;;  %v4737_v47 = vmax.f32 %v4709_v42, -100.0  ;;  %v4626_v37 = vsel %vm4570_vm13, %v6535_v11, %v4612_v34  ;;  %v4716_v15 = vmax.f32 %v4660_v61, -100.0 }
 0x5f9   :  { %4919 = vst [vmem:[#allocation16 + $0x60] sm:$0xff] %v4626_v37  ;;  %v4717_v16 = vmax.f32 %v4661_v54, -100.0  ;;  %v4730_v6 = vmax.f32 %v4702_v57, -100.0  ;;  %v4731_v4 = vmax.f32 %v4703_v32, -100.0  ;;  %v4640_v23 = vsub.f32 0.0, %v4555_v8 }
 0x5fa   :  { %v4773_v1 = vmul.f32 %v7245_v0, %v4716_v15  ;;  %v4780_v60 = vmul.f32 %v6549_v10, %v4723_v25  ;;  %v4808_v27 = vmul.f32 %v4794_v41, %v4737_v47  ;;  %v6775_v41 = vmov 0.0  }
 0x5fb   :  { %v4774_v35 = vmul.f32 %v7248_v58, %v4717_v16  ;;  %v4801_v26 = vmul.f32 %v4787_v40, %v4730_v6  ;;  %v4802_v20 = vmul.f32 %v4788_v9, %v4731_v4  ;;  %v4668_v21 = vsel %vm4570_vm13, %v4640_v23, %v4654_v62 }
 0x5fc   :  { %v4710_v17 = vsel %vm4570_vm13, %v4696_v46, %v4640_v23  ;;  %v4724_v18 = vmax.f32 %v4668_v21, -100.0  ;;  %v4822_v36 = vadd.f32 %v4808_v27, %v4780_v60  ;;  %v5516_v45 = vsel %vm4754_vm14, 1.0, %v6775_v41 }
 0x5fd   :  { %v4815_v24 = vadd.f32 %v4801_v26, %v4773_v1  ;;  %v4816_v43 = vadd.f32 %v4802_v20, %v4774_v35  ;;  %v4738_v10 = vmax.f32 %v4710_v17, -100.0  ;;  %v4831_v9 = vmul.f32 %v5516_v45, %v7219_v51  ;;  %v4870_v51 = vpop.xlane.xlu1 %4869 }
 0x5fe   :  { %v4781_v48 = vmul.f32 %v7240_v31, %v4724_v18  ;;  %v4850_v0 = vadd.f32 %v7214_v3, %v4822_v36  ;;  %v4838_v29 = vmul.f32 %v5516_v45, %v7221_v19  ;;  %v4881_v3 = vstv %s7348_s0  ;;  %s6776_s0 = smov [#allocation16]  }
 0x5ff   :  { %v4842_v40 = vadd.f32 %v7211_v14, %v4815_v24  ;;  %v4809_v58 = vmul.f32 %v4795_v55, %v4738_v10  ;;  %v4876_v14 = vadd.s32 8, %v6941_v28  ;;  %v4871_v55 = vmul.f32 -0.5, %v4868_v53  ;;  %s4938_s29 = sshll.u32 %s6776_s0, 4  ;;  %s4939_s29 = int_to_ptr.vmem [resolvable:$true] %s4938_s29 }
 0x600   :  { %vm4882_vm15 = vcmp.lt.s32.totalorder %v6941_v28, %v4881_v3  ;;  %v4872_v49 = vmul.f32 -0.5, %v4870_v51  ;;  %s6682_s30 = scalar_lea.vmem %s4939_s29, 1792  ;;  %p6687_p7 = scmp.lt.s32.totalorder %s4939_s29, %s4939_s29 }
 0x601   :  { %v4843_v44 = vadd.f32 %v4842_v40, %v4816_v43  ;;  %v4823_v22 = vadd.f32 %v4809_v58, %v4781_v48  ;;  %vm4883_vm0 = vcmp.lt.s32.totalorder %v4876_v14, %v4881_v3  ;;  %v5517_v39 = vsel %vm4882_vm15, 1.0, %v6775_v41  ;;  %p6683_p6 = scmp.ne.s32.totalorder %s4939_s29, %s6682_s30  ;;  %p6688_p8 = scmp.lt.s32.totalorder %s6682_s30, %s6682_s30 }
 0x602   :  { %v5518_v33 = vsel %vm4883_vm0, 1.0, %v6775_v41 }
 0x603   :  { %v4844_v5 = vadd.f32 %v4843_v44, %v4831_v9  ;;  %v4851_v52 = vadd.f32 %v4850_v0, %v4823_v22  ;;  %p6689_p9 = por %p6688_p8, %p6687_p7 }
 0x605   :  { %4845 = vadd.xlane.f32.xlu0 %v4844_v5  ;;  %v4852_v50 = vadd.f32 %v4851_v52, %v4838_v29  ;;  %p6690_p10 = pnand %p6689_p9, %p6683_p6 }
 0x609   :  { %4853 = vadd.xlane.f32.xlu0 %v4852_v50 }
 0x692   :  { %v4846_v31 = vpop.xlane.xlu0 %4845 }
 0x693   :  { %v4855_v59 = vsub.f32 0.0, %v4846_v31 }
 0x695   :  { %v4888_v63 = vadd.f32 %v4871_v55, %v4855_v59 }
 0x696   :  { %v4854_v19 = vpop.xlane.xlu0 %4853 }
 0x697   :  { %v4856_v13 = vsub.f32 0.0, %v4854_v19  ;;  %v4890_v61 = vmul.f32 %v5517_v39, %v4888_v63 }
 0x699   :  { %v4889_v38 = vadd.f32 %v4872_v49, %v4856_v13  ;;  %v4893_v11 = vsel %vm4892_vm1, %v4890_v61, 0.0 }
 0x69b   :  { %v4891_v57 = vmul.f32 %v5518_v33, %v4889_v38 }
 0x69d   :  { %v4894_v56 = vsel %vm4892_vm1, %v4891_v57, 0.0 }
 0x69e   :  { %v4895_v12 = vadd.f32 %v4894_v56, %v4893_v11 }
 0x6a0   :  { %4896 = vadd.xlane.f32.xlu0 %v4895_v12 }
 0x6a1   :  { %6693 = shalt.err (!%p6690_p10)
}
 0x6a2   :  { %s6694_s17 = scalar_lea.hbm %s7360_s12, 1792 }
 0x6a3   :  { %p6695_p11 = scmp.ne.s32.totalorder %s7360_s12, %s6694_s17  ;;  %p6698_p12 = scmp.lt.u32.totalorder %s6694_s17, %s7360_s12 }
 0x6a5   :  { %p6700_p13 = pnand %p6698_p12, %p6695_p11 }
 0x6a7   :  { %6703 = shalt.err (!%p6700_p13)
}
 0x6a8   :  { %4944 = dma.vmem_to_hbm [thread:$0]  %s4939_s29, 1792, %s7360_s12, [#allocation17], %s6765_s5, %s6765_s5, %s6766_s23  }
 0x6a9   :  { %s6777_s25 = smov [#allocation18]  }
 0x6aa   :  { %s4950_s15 = sshll.u32 %s6777_s25, 4  ;;  %s4951_s15 = int_to_ptr.vmem [resolvable:$true] %s4950_s15 }
 0x6ab   :  { %s6704_s9 = scalar_lea.vmem %s4951_s15, 256  ;;  %p6709_p1 = scmp.lt.s32.totalorder %s4951_s15, %s4951_s15 }
 0x6ac   :  { %p6705_p0 = scmp.ne.s32.totalorder %s4951_s15, %s6704_s9  ;;  %p6710_p2 = scmp.lt.s32.totalorder %s6704_s9, %s6704_s9 }
 0x6ae   :  { %p6711_p3 = por %p6710_p2, %p6709_p1 }
 0x6b0   :  { %p6712_p4 = pnand %p6711_p3, %p6705_p0 }
 0x6b2   :  { %6715 = shalt.err (!%p6712_p4)
}
 0x6b3   :  { %s6716_s27 = scalar_lea.hbm %s7361_s13, 256 }
 0x6b4   :  { %p6717_p5 = scmp.ne.s32.totalorder %s7361_s13, %s6716_s27  ;;  %p6720_p6 = scmp.lt.u32.totalorder %s6716_s27, %s7361_s13 }
 0x6b6   :  { %p6722_p7 = pnand %p6720_p6, %p6717_p5 }
 0x6b8   :  { %6725 = shalt.err (!%p6722_p7)
}
 0x6b9   :  { %4956 = dma.vmem_to_hbm [thread:$0]  %s4951_s15, 256, %s7361_s13, [#allocation17], %s6761_s18, %s6761_s18, %s6762_s19  }
 0x6ba   :  { %s6778_s3 = smov [#allocation15]  }
 0x6bb   :  { %s4929_s10 = sshll.u32 %s6778_s3, 4  ;;  %s4930_s10 = int_to_ptr.vmem [resolvable:$true] %s4929_s10 }
 0x6bc   :  { %s6726_s0 = scalar_lea.vmem %s4930_s10, 128  ;;  %p6731_p9 = scmp.lt.s32.totalorder %s4930_s10, %s4930_s10 }
 0x6bd   :  { %p6727_p8 = scmp.ne.s32.totalorder %s4930_s10, %s6726_s0  ;;  %p6732_p10 = scmp.lt.s32.totalorder %s6726_s0, %s6726_s0 }
 0x6bf   :  { %p6733_p11 = por %p6732_p10, %p6731_p9 }
 0x6c1   :  { %p6734_p12 = pnand %p6733_p11, %p6727_p8 }
 0x72d   :  { %v4897_v28 = vpop.xlane.xlu0 %4896 }
 0x72e   :  { %v4898_v7 = vrot.slane %v4897_v28, 4 }
 0x730   :  { %v4899_v8 = vadd.f32 %v4898_v7, %v4897_v28 }
 0x732   :  { %v4900_v30 = vrot.slane %v4899_v8, 2 }
 0x734   :  { %v4901_v34 = vadd.f32 %v4900_v30, %v4899_v8 }
 0x736   :  { %v4902_v54 = vrot.slane %v4901_v34, 1 }
 0x738   :  { %v4903_v32 = vadd.f32 %v4902_v54, %v4901_v34 }
 0x73a   :  { %5627 = vpush %v4903_v32 }
 0x76b   :  { %s5628_s2 = spop %5627 }
 0x76c   :  { %v4905_v2 = vstv %s5628_s2 }
 0x76d   :  { %4906 = vst [vmem:[#allocation15] sm:$0xff] %v4905_v2 }
 0x76e   :  { %6737 = shalt.err (!%p6734_p12)
}
 0x76f   :  { %s6738_s19 = scalar_lea.hbm %s7359_s11, 128 }
 0x770   :  { %p6739_p13 = scmp.ne.s32.totalorder %s7359_s11, %s6738_s19  ;;  %p6742_p0 = scmp.lt.u32.totalorder %s6738_s19, %s7359_s11 }
 0x772   :  { %p6744_p1 = pnand %p6742_p0, %p6739_p13 }
 0x774   :  { %6747 = shalt.err (!%p6744_p1)
}
 0x775   :  { %4932 = dma.vmem_to_hbm [thread:$0]  %s4930_s10, 128, %s7359_s11, [#allocation6]  }
 0x776   :  { %6756 = dma.done.wait [#allocation6], 128  }
 0x777   :  { %6757 = vsyncadd [#allocation6], 4294967168 }
 0x778   :  { %6758 = dma.done.wait [#allocation17], 2048  }
 0x779   :  { %6759 = vsyncadd [#allocation17], 4294965248 }
 0x77a   :  { %4966 = vsyncpa [#allocation5], 1 }
 0x77b   :  { %4967 = vsyncpa [#allocation8], 1 }
 0x77c   :  { %4968 = vsyncpa [#allocation11], 1 }
 0x77d   :  { %4969 = vsyncpa [#allocation14], 1 }
 0x77e   :  { %4970 = vsyncpa [#allocation6], 1 }
 0x77f   :  { %4971 = vsyncpa [#allocation17], 1 }

</bundles_post_ra>
